<compile_context>
chip_gen: v7x
topology: tpu7x:2x2x1
jax: 0.10.0
libtpu: 0.0.40
codegen_flags: <defaults>
</compile_context>

<pallas_src>
import math

import jax
import jax.numpy as jnp
from jax.experimental import pallas as pl
from jax.experimental.pallas import tpu as pltpu


def critic_kernel(state_ref, action_ref, w1s_ref, w1a_ref, b1_ref,
                  gamma_ref, beta_ref, w2_ref, b2_ref, w3t_ref,
                  out_ref, h1n_ref, q_acc_ref):
    j = pl.program_id(0)

    # ---- layer 1 + ReLU + BatchNorm1d (training stats), once, full batch ----
    @pl.when(j == 0)
    def _():
        h1 = (jnp.dot(state_ref[...], w1s_ref[...],
                      preferred_element_type=jnp.float32)
              + jnp.dot(action_ref[...], w1a_ref[...],
                        preferred_element_type=jnp.float32)
              + b1_ref[...])
        h1 = jnp.maximum(h1, 0.0)

        mean = jnp.mean(h1, axis=0, keepdims=True)                  # (1, H0)
        centered = h1 - mean
        var = jnp.mean(centered * centered, axis=0, keepdims=True)  # biased
        scale = gamma_ref[...] * jax.lax.rsqrt(var + 1e-5)          # fold gamma
        h1n = centered * scale + beta_ref[...]

        h1n_ref[...] = h1n.astype(jnp.bfloat16)   # persists across grid steps
        q_acc_ref[...] = jnp.zeros_like(q_acc_ref)

    # ---- layer 2 column-tile + ReLU, layer 3 partial reduction fused (f32) ----
    h2 = jnp.dot(h1n_ref[...], w2_ref[...],
                 preferred_element_type=jnp.float32) + b2_ref[...]
    h2 = jnp.maximum(h2, 0.0)
    # Lane-dense (1, tn) w3 tile: VPU multiply + XLU lane-reduce, f32 accumulate.
    q_acc_ref[...] += jnp.sum(h2 * w3t_ref[...], axis=-1, keepdims=True)

    # ---- finalize (b3 is added in the wrapper) ----
    @pl.when(j == pl.num_programs(0) - 1)
    def _():
        out_ref[...] = q_acc_ref[...]


def critic_forward(state, action, kparams, *, tn=1024):
    """state: (B, obs) f32, action: (B, act) f32, kparams from prepare_params."""
    (w1s, w1a, b1, gamma, beta, w2, b2, w3t, b3) = kparams
    B, obs = state.shape
    act = action.shape[1]
    H0, H1 = w2.shape
    assert H1 % tn == 0, "hidden[1] must be divisible by the column tile"
    nt = H1 // tn   # default tn=1024 -> nt=1: whole w2 resident, one grid step

    # Activations fed to the MXU in bf16 (weights are already bf16).
    state16 = state.astype(jnp.bfloat16)
    action16 = action.astype(jnp.bfloat16)

    grid_spec = pltpu.PrefetchScalarGridSpec(
        num_scalar_prefetch=0,
        grid=(nt,),
        in_specs=[
            pl.BlockSpec((B, obs), lambda j: (0, 0)),    # state
            pl.BlockSpec((B, act), lambda j: (0, 0)),    # action
            pl.BlockSpec((obs, H0), lambda j: (0, 0)),   # w1 (state rows)
            pl.BlockSpec((act, H0), lambda j: (0, 0)),   # w1 (action rows)
            pl.BlockSpec((1, H0), lambda j: (0, 0)),     # b1
            pl.BlockSpec((1, H0), lambda j: (0, 0)),     # gamma
            pl.BlockSpec((1, H0), lambda j: (0, 0)),     # beta
            pl.BlockSpec((H0, tn), lambda j: (0, j)),    # w2 column tile
            pl.BlockSpec((1, tn), lambda j: (0, j)),     # b2 tile
            pl.BlockSpec((1, tn), lambda j: (0, j)),     # w3^T tile (lane-dense)
        ],
        out_specs=pl.BlockSpec((B, 1), lambda j: (0, 0)),
        scratch_shapes=[
            pltpu.VMEM((B, H0), jnp.bfloat16),   # normalized layer-1 activations
            pltpu.VMEM((B, 1), jnp.float32),     # q accumulator
        ],
    )

    q = pl.pallas_call(
        critic_kernel,
        out_shape=jax.ShapeDtypeStruct((B, 1), jnp.float32),
        grid_spec=grid_spec,
        compiler_params=pltpu.CompilerParams(
            dimension_semantics=("arbitrary",),       # reduction over w2 columns
            vmem_limit_bytes=16 * 1024 * 1024,
        ),
    )(state16, action16, w1s, w1a, b1, gamma, beta, w2, b2, w3t)

    return q + b3   # final bias folded in the wrapper (cheaper than a (1,1) block)


def init_params(key, observation_size, num_actions, hidden=(1024, 1024)):
    """PyTorch nn.Linear-style init: U[-1/sqrt(fan_in), 1/sqrt(fan_in)]."""
    d_in = observation_size + num_actions
    h0, h1 = hidden
    ks = jax.random.split(key, 6)

    def lin(kw, kb, fan_in, fan_out):
        bound = 1.0 / math.sqrt(fan_in)
        w = jax.random.uniform(kw, (fan_in, fan_out), jnp.float32, -bound, bound)
        b = jax.random.uniform(kb, (1, fan_out), jnp.float32, -bound, bound)
        return w, b

    w1, b1 = lin(ks[0], ks[1], d_in, h0)
    w2, b2 = lin(ks[2], ks[3], h0, h1)
    w3, b3 = lin(ks[4], ks[5], h1, 1)
    gamma = jnp.ones((1, h0), jnp.float32)   # BatchNorm1d weight init
    beta = jnp.zeros((1, h0), jnp.float32)   # BatchNorm1d bias init
    return (w1, b1, gamma, beta, w2, b2, w3, b3)


def prepare_params(params, observation_size):
    """Split w1 into state/action halves, cast big weights to bf16, lane-dense w3."""
    (w1, b1, gamma, beta, w2, b2, w3, b3) = params
    w1s = w1[:observation_size].astype(jnp.bfloat16)
    w1a = w1[observation_size:].astype(jnp.bfloat16)
    w3t = jnp.transpose(w3)                   # (1, H1), kept f32 (tiny, lane-dense)
    return (w1s, w1a, b1, gamma, beta,
            w2.astype(jnp.bfloat16), b2,
            w3t, b3)


def critic_reference(state, action, kparams):
    """Pure-JAX reference mirroring the kernel's bf16 matmul / f32-accum math."""
    (w1s, w1a, b1, gamma, beta, w2, b2, w3t, b3) = kparams
    s16 = state.astype(jnp.bfloat16)
    a16 = action.astype(jnp.bfloat16)
    h1 = (jnp.dot(s16, w1s, preferred_element_type=jnp.float32)
          + jnp.dot(a16, w1a, preferred_element_type=jnp.float32) + b1)
    h1 = jnp.maximum(h1, 0.0)
    mean = jnp.mean(h1, axis=0, keepdims=True)
    var = jnp.mean((h1 - mean) ** 2, axis=0, keepdims=True)
    scale = gamma * jax.lax.rsqrt(var + 1e-5)
    h1n = ((h1 - mean) * scale + beta).astype(jnp.bfloat16)
    h2 = jnp.maximum(jnp.dot(h1n, w2, preferred_element_type=jnp.float32) + b2, 0.0)
    return jnp.sum(h2 * w3t, axis=-1, keepdims=True) + b3


if __name__ == "__main__":
    OBS_SIZE = 24
    NUM_ACTIONS = 8
    BATCH = 8

    key = jax.random.PRNGKey(0)
    k_state, k_action, k_params = jax.random.split(key, 3)

    state = jax.random.normal(k_state, (BATCH, OBS_SIZE), jnp.float32)
    action = jax.random.normal(k_action, (BATCH, NUM_ACTIONS), jnp.float32)

    params = init_params(k_params, OBS_SIZE, NUM_ACTIONS)
    kparams = prepare_params(params, OBS_SIZE)

    q = critic_forward(state, action, kparams)
    q = jax.block_until_ready(q)

    q_ref = critic_reference(state, action, kparams)
    assert q.shape == (BATCH, 1)
    max_err = float(jnp.max(jnp.abs(q - q_ref)))
    assert jnp.allclose(q, q_ref, atol=5e-2, rtol=5e-2), \
        f"mismatch vs JAX reference (max abs err {max_err})"

    print("KERNEL_OK")
</pallas_src>

<mosaic_0001>
module attributes {stable_mosaic.version = 11 : i64} {
  func.func @critic_kernel(%arg0: i32, %arg1: memref<8x24xbf16, #tpu.memory_space<vmem>>, %arg2: memref<8x8xbf16, #tpu.memory_space<vmem>>, %arg3: memref<24x1024xbf16, #tpu.memory_space<vmem>>, %arg4: memref<8x1024xbf16, #tpu.memory_space<vmem>>, %arg5: memref<1x1024xf32, #tpu.memory_space<vmem>>, %arg6: memref<1x1024xf32, #tpu.memory_space<vmem>>, %arg7: memref<1x1024xf32, #tpu.memory_space<vmem>>, %arg8: memref<1024x1024xbf16, #tpu.memory_space<vmem>>, %arg9: memref<1x1024xf32, #tpu.memory_space<vmem>>, %arg10: memref<1x1024xf32, #tpu.memory_space<vmem>>, %arg11: memref<8x1xf32, #tpu.memory_space<vmem>>, %arg12: memref<8x1024xbf16, #tpu.memory_space<vmem>>, %arg13: memref<8x1xf32, #tpu.memory_space<vmem>>) attributes {dimension_semantics = [#tpu.dimension_semantics<arbitrary>], iteration_bounds = array<i64: 1>, scalar_prefetch = 0 : i64, scratch_operands = 2 : i64, tpu.core_type = #tpu.core_type<tc>, window_params = [{pipeline_mode = #tpu.pipeline_mode<synchronous>, transform_indices = @transform_0, window_bounds = array<i64: 8, 24>}, {pipeline_mode = #tpu.pipeline_mode<synchronous>, transform_indices = @transform_1, window_bounds = array<i64: 8, 8>}, {pipeline_mode = #tpu.pipeline_mode<synchronous>, transform_indices = @transform_2, window_bounds = array<i64: 24, 1024>}, {pipeline_mode = #tpu.pipeline_mode<synchronous>, transform_indices = @transform_3, window_bounds = array<i64: 8, 1024>}, {pipeline_mode = #tpu.pipeline_mode<synchronous>, transform_indices = @transform_4, window_bounds = array<i64: 1, 1024>}, {pipeline_mode = #tpu.pipeline_mode<synchronous>, transform_indices = @transform_5, window_bounds = array<i64: 1, 1024>}, {pipeline_mode = #tpu.pipeline_mode<synchronous>, transform_indices = @transform_6, window_bounds = array<i64: 1, 1024>}, {transform_indices = @transform_7, window_bounds = array<i64: 1024, 1024>}, {transform_indices = @transform_8, window_bounds = array<i64: 1, 1024>}, {transform_indices = @transform_9, window_bounds = array<i64: 1, 1024>}, {pipeline_mode = #tpu.pipeline_mode<synchronous>, transform_indices = @transform_10, window_bounds = array<i64: 8, 1>}]} {
    %c0_i32 = arith.constant 0 : i32
    %0 = arith.cmpi eq, %arg0, %c0_i32 : i32
    %1 = arith.extui %0 : i1 to i32
    %c0_i32_0 = arith.constant 0 : i32
    %2 = arith.cmpi ne, %1, %c0_i32_0 : i32
    scf.if %2 {
      %c0_16 = arith.constant 0 : index
      %c0_17 = arith.constant 0 : index
      %22 = vector.load %arg1[%c0_16, %c0_17] : memref<8x24xbf16, #tpu.memory_space<vmem>>, vector<8x24xbf16>
      %c0_18 = arith.constant 0 : index
      %c0_19 = arith.constant 0 : index
      %23 = vector.load %arg3[%c0_18, %c0_19] : memref<24x1024xbf16, #tpu.memory_space<vmem>>, vector<24x1024xbf16>
      %cst_20 = arith.constant dense<0.000000e+00> : vector<8x1024xf32>
      %24 = tpu.matmul %22, %23, %cst_20 {dimension_numbers = #tpu.dot_dimension_numbers<[1], [0], [0], [1], [0, 0, 1, 1], [], []>} : vector<8x24xbf16>, vector<24x1024xbf16>, vector<8x1024xf32> -> vector<8x1024xf32>
      %c0_21 = arith.constant 0 : index
      %c0_22 = arith.constant 0 : index
      %25 = vector.load %arg2[%c0_21, %c0_22] : memref<8x8xbf16, #tpu.memory_space<vmem>>, vector<8x8xbf16>
      %c0_23 = arith.constant 0 : index
      %c0_24 = arith.constant 0 : index
      %26 = vector.load %arg4[%c0_23, %c0_24] : memref<8x1024xbf16, #tpu.memory_space<vmem>>, vector<8x1024xbf16>
      %cst_25 = arith.constant dense<0.000000e+00> : vector<8x1024xf32>
      %27 = tpu.matmul %25, %26, %cst_25 {dimension_numbers = #tpu.dot_dimension_numbers<[1], [0], [0], [1], [0, 0, 1, 1], [], []>} : vector<8x8xbf16>, vector<8x1024xbf16>, vector<8x1024xf32> -> vector<8x1024xf32>
      %28 = arith.addf %24, %27 : vector<8x1024xf32>
      %c0_26 = arith.constant 0 : index
      %c0_27 = arith.constant 0 : index
      %29 = vector.load %arg5[%c0_26, %c0_27] : memref<1x1024xf32, #tpu.memory_space<vmem>>, vector<1x1024xf32>
      %30 = vector.broadcast %29 : vector<1x1024xf32> to vector<8x1024xf32>
      %31 = arith.addf %28, %30 : vector<8x1024xf32>
      %cst_28 = arith.constant 0.000000e+00 : f32
      %32 = vector.broadcast %cst_28 : f32 to vector<8x1024xf32>
      %33 = arith.maximumf %31, %32 : vector<8x1024xf32>
      %cst_29 = arith.constant dense<0.000000e+00> : vector<1024xf32>
      %34 = vector.multi_reduction <add>, %33, %cst_29 [0] : vector<8x1024xf32> to vector<1024xf32>
      %35 = vector.shape_cast %34 : vector<1024xf32> to vector<1x1024xf32>
      %cst_30 = arith.constant 8.000000e+00 : f32
      %36 = vector.broadcast %cst_30 : f32 to vector<1x1024xf32>
      %37 = arith.divf %35, %36 : vector<1x1024xf32>
      %38 = vector.broadcast %37 : vector<1x1024xf32> to vector<8x1024xf32>
      %39 = arith.subf %33, %38 : vector<8x1024xf32>
      %40 = arith.mulf %39, %39 : vector<8x1024xf32>
      %cst_31 = arith.constant dense<0.000000e+00> : vector<1024xf32>
      %41 = vector.multi_reduction <add>, %40, %cst_31 [0] : vector<8x1024xf32> to vector<1024xf32>
      %42 = vector.shape_cast %41 : vector<1024xf32> to vector<1x1024xf32>
      %cst_32 = arith.constant 8.000000e+00 : f32
      %43 = vector.broadcast %cst_32 : f32 to vector<1x1024xf32>
      %44 = arith.divf %42, %43 : vector<1x1024xf32>
      %c0_33 = arith.constant 0 : index
      %c0_34 = arith.constant 0 : index
      %45 = vector.load %arg6[%c0_33, %c0_34] : memref<1x1024xf32, #tpu.memory_space<vmem>>, vector<1x1024xf32>
      %cst_35 = arith.constant 9.99999974E-6 : f32
      %46 = vector.broadcast %cst_35 : f32 to vector<1x1024xf32>
      %47 = arith.addf %44, %46 : vector<1x1024xf32>
      %48 = math.rsqrt %47 : vector<1x1024xf32>
      %49 = arith.mulf %45, %48 : vector<1x1024xf32>
      %50 = vector.broadcast %49 : vector<1x1024xf32> to vector<8x1024xf32>
      %51 = arith.mulf %39, %50 : vector<8x1024xf32>
      %c0_36 = arith.constant 0 : index
      %c0_37 = arith.constant 0 : index
      %52 = vector.load %arg7[%c0_36, %c0_37] : memref<1x1024xf32, #tpu.memory_space<vmem>>, vector<1x1024xf32>
      %53 = vector.broadcast %52 : vector<1x1024xf32> to vector<8x1024xf32>
      %54 = arith.addf %51, %53 : vector<8x1024xf32>
      %55 = arith.truncf %54 : vector<8x1024xf32> to vector<8x1024xbf16>
      %c0_38 = arith.constant 0 : index
      %c0_39 = arith.constant 0 : index
      %56 = vector.load %arg12[%c0_38, %c0_39] : memref<8x1024xbf16, #tpu.memory_space<vmem>>, vector<8x1024xbf16>
      tpu.vector_store %arg12[%c0_38, %c0_39], %55 {strides = array<i32>} : memref<8x1024xbf16, #tpu.memory_space<vmem>>, vector<8x1024xbf16>,
      %cst_40 = arith.constant 0.000000e+00 : f32
      %57 = vector.broadcast %cst_40 : f32 to vector<8x1xf32>
      %c0_41 = arith.constant 0 : index
      %c0_42 = arith.constant 0 : index
      %58 = vector.load %arg13[%c0_41, %c0_42] : memref<8x1xf32, #tpu.memory_space<vmem>>, vector<8x1xf32>
      tpu.vector_store %arg13[%c0_41, %c0_42], %57 {strides = array<i32>} : memref<8x1xf32, #tpu.memory_space<vmem>>, vector<8x1xf32>,
    } else {
    }
    %c0 = arith.constant 0 : index
    %c0_1 = arith.constant 0 : index
    %3 = vector.load %arg12[%c0, %c0_1] : memref<8x1024xbf16, #tpu.memory_space<vmem>>, vector<8x1024xbf16>
    %c0_2 = arith.constant 0 : index
    %c0_3 = arith.constant 0 : index
    %4 = vector.load %arg8[%c0_2, %c0_3] : memref<1024x1024xbf16, #tpu.memory_space<vmem>>, vector<1024x1024xbf16>
    %cst = arith.constant dense<0.000000e+00> : vector<8x1024xf32>
    %5 = tpu.matmul %3, %4, %cst {dimension_numbers = #tpu.dot_dimension_numbers<[1], [0], [0], [1], [0, 0, 1, 1], [], []>} : vector<8x1024xbf16>, vector<1024x1024xbf16>, vector<8x1024xf32> -> vector<8x1024xf32>
    %c0_4 = arith.constant 0 : index
    %c0_5 = arith.constant 0 : index
    %6 = vector.load %arg9[%c0_4, %c0_5] : memref<1x1024xf32, #tpu.memory_space<vmem>>, vector<1x1024xf32>
    %7 = vector.broadcast %6 : vector<1x1024xf32> to vector<8x1024xf32>
    %8 = arith.addf %5, %7 : vector<8x1024xf32>
    %cst_6 = arith.constant 0.000000e+00 : f32
    %9 = vector.broadcast %cst_6 : f32 to vector<8x1024xf32>
    %10 = arith.maximumf %8, %9 : vector<8x1024xf32>
    %c0_7 = arith.constant 0 : index
    %c0_8 = arith.constant 0 : index
    %11 = vector.load %arg13[%c0_7, %c0_8] : memref<8x1xf32, #tpu.memory_space<vmem>>, vector<8x1xf32>
    %c0_9 = arith.constant 0 : index
    %c0_10 = arith.constant 0 : index
    %12 = vector.load %arg10[%c0_9, %c0_10] : memref<1x1024xf32, #tpu.memory_space<vmem>>, vector<1x1024xf32>
    %13 = vector.broadcast %12 : vector<1x1024xf32> to vector<8x1024xf32>
    %14 = arith.mulf %10, %13 : vector<8x1024xf32>
    %cst_11 = arith.constant dense<0.000000e+00> : vector<8xf32>
    %15 = vector.multi_reduction <add>, %14, %cst_11 [1] : vector<8x1024xf32> to vector<8xf32>
    %16 = vector.shape_cast %15 : vector<8xf32> to vector<8x1xf32>
    %17 = arith.addf %11, %16 : vector<8x1xf32>
    %c0_12 = arith.constant 0 : index
    %c0_13 = arith.constant 0 : index
    %18 = vector.load %arg13[%c0_12, %c0_13] : memref<8x1xf32, #tpu.memory_space<vmem>>, vector<8x1xf32>
    tpu.vector_store %arg13[%c0_12, %c0_13], %17 {strides = array<i32>} : memref<8x1xf32, #tpu.memory_space<vmem>>, vector<8x1xf32>,
    %c0_i32_14 = arith.constant 0 : i32
    %19 = arith.cmpi eq, %arg0, %c0_i32_14 : i32
    %20 = arith.extui %19 : i1 to i32
    %c0_i32_15 = arith.constant 0 : i32
    %21 = arith.cmpi ne, %20, %c0_i32_15 : i32
    scf.if %21 {
      %c0_16 = arith.constant 0 : index
      %c0_17 = arith.constant 0 : index
      %22 = vector.load %arg13[%c0_16, %c0_17] : memref<8x1xf32, #tpu.memory_space<vmem>>, vector<8x1xf32>
      %c0_18 = arith.constant 0 : index
      %c0_19 = arith.constant 0 : index
      %23 = vector.load %arg11[%c0_18, %c0_19] : memref<8x1xf32, #tpu.memory_space<vmem>>, vector<8x1xf32>
      tpu.vector_store %arg11[%c0_18, %c0_19], %22 {strides = array<i32>} : memref<8x1xf32, #tpu.memory_space<vmem>>, vector<8x1xf32>,
    } else {
    }
    return
  }
  func.func @transform_0(%arg0: i32) -> (i32, i32) {
    %c0_i32 = arith.constant 0 : i32
    %c0_i32_0 = arith.constant 0 : i32
    %c0_i32_1 = arith.constant 0 : i32
    return %c0_i32, %c0_i32_0 : i32, i32
  }
  func.func @transform_1(%arg0: i32) -> (i32, i32) {
    %c0_i32 = arith.constant 0 : i32
    %c0_i32_0 = arith.constant 0 : i32
    %c0_i32_1 = arith.constant 0 : i32
    return %c0_i32, %c0_i32_0 : i32, i32
  }
  func.func @transform_2(%arg0: i32) -> (i32, i32) {
    %c0_i32 = arith.constant 0 : i32
    %c0_i32_0 = arith.constant 0 : i32
    %c0_i32_1 = arith.constant 0 : i32
    return %c0_i32, %c0_i32_0 : i32, i32
  }
  func.func @transform_3(%arg0: i32) -> (i32, i32) {
    %c0_i32 = arith.constant 0 : i32
    %c0_i32_0 = arith.constant 0 : i32
    %c0_i32_1 = arith.constant 0 : i32
    return %c0_i32, %c0_i32_0 : i32, i32
  }
  func.func @transform_4(%arg0: i32) -> (i32, i32) {
    %c0_i32 = arith.constant 0 : i32
    %c0_i32_0 = arith.constant 0 : i32
    %c0_i32_1 = arith.constant 0 : i32
    return %c0_i32, %c0_i32_0 : i32, i32
  }
  func.func @transform_5(%arg0: i32) -> (i32, i32) {
    %c0_i32 = arith.constant 0 : i32
    %c0_i32_0 = arith.constant 0 : i32
    %c0_i32_1 = arith.constant 0 : i32
    return %c0_i32, %c0_i32_0 : i32, i32
  }
  func.func @transform_6(%arg0: i32) -> (i32, i32) {
    %c0_i32 = arith.constant 0 : i32
    %c0_i32_0 = arith.constant 0 : i32
    %c0_i32_1 = arith.constant 0 : i32
    return %c0_i32, %c0_i32_0 : i32, i32
  }
  func.func @transform_7(%arg0: i32) -> (i32, i32) {
    %c0_i32 = arith.constant 0 : i32
    %c0_i32_0 = arith.constant 0 : i32
    return %c0_i32, %arg0 : i32, i32
  }
  func.func @transform_8(%arg0: i32) -> (i32, i32) {
    %c0_i32 = arith.constant 0 : i32
    %c0_i32_0 = arith.constant 0 : i32
    return %c0_i32, %arg0 : i32, i32
  }
  func.func @transform_9(%arg0: i32) -> (i32, i32) {
    %c0_i32 = arith.constant 0 : i32
    %c0_i32_0 = arith.constant 0 : i32
    return %c0_i32, %arg0 : i32, i32
  }
  func.func @transform_10(%arg0: i32) -> (i32, i32) {
    %c0_i32 = arith.constant 0 : i32
    %c0_i32_0 = arith.constant 0 : i32
    %c0_i32_1 = arith.constant 0 : i32
    return %c0_i32, %c0_i32_0 : i32, i32
  }
}

</mosaic_0001>

<bundles_post_ra>
// kernel: tpu_custom_call.1
= control target key start
LH: loop header
LB: loop body
LE: loop exit
PB: predicated region body
PF: predicated region fallthrough
CT: control target
= control target key end

     0   :  { %15 = vsyncpa [#allocation5], 0  ;;  %s6356_s0 = inlined_call_operand.hbm [shape: bf16[8,24], index: 0, kind: input, shape index: {}]   ;;  %s6357_s1 = inlined_call_operand.hbm [shape: bf16[8,8], index: 1, kind: input, shape index: {}]   ;;  %s6358_s2 = inlined_call_operand.hbm [shape: bf16[24,1024], index: 2, kind: input, shape index: {}]   ;;  %s6359_s3 = inlined_call_operand.hbm [shape: bf16[8,1024], index: 3, kind: input, shape index: {}]   ;;  %s6360_s4 = inlined_call_operand.hbm [shape: f32[1,1024], index: 4, kind: input, shape index: {}]   ;;  %s6361_s5 = inlined_call_operand.hbm [shape: f32[1,1024], index: 5, kind: input, shape index: {}]   ;;  %s6362_s6 = inlined_call_operand.hbm [shape: f32[1,1024], index: 6, kind: input, shape index: {}]   ;;  %s6363_s7 = inlined_call_operand.hbm [shape: bf16[1024,1024], index: 7, kind: input, shape index: {}]   ;;  %s6364_s8 = inlined_call_operand.hbm [shape: f32[1,1024], index: 8, kind: input, shape index: {}]   ;;  %s6365_s9 = inlined_call_operand.hbm [shape: f32[1,1024], index: 9, kind: input, shape index: {}]   ;;  %s6366_s10 = inlined_call_operand.vmem [shape: f32[8,1], index: 10, kind: output, shape index: {}]  }
   0x1   :  { %16 = vsyncpa [#allocation7], 0 }
   0x2   :  { %17 = vsyncpa [#allocation10], 0 }
   0x3   :  { %18 = vsyncpa [#allocation13], 0 }
   0x4   :  { %19 = vsyncpa [#allocation16], 0 }
   0x5   :  { %20 = vsyncpa [#allocation19], 0  ;;  %s5842_s13 = smov [#allocation6]   ;;  %s5843_s15 = smov [#allocation9]  }
   0x6   :  { %s37_s14 = sshll.u32 %s5842_s13, 4  ;;  %s59_s16 = sshll.u32 %s5843_s15, 4  ;;  %s38_s14 = int_to_ptr.vmem [resolvable:$true] %s37_s14  ;;  %s60_s16 = int_to_ptr.vmem [resolvable:$true] %s59_s16 }
   0x7   :  { %s5610_s19 = scalar_lea.hbm %s6357_s1, 64 }
   0x8   :  { %p5611_p0 = scmp.ne.s32.totalorder %s6357_s1, %s5610_s19  ;;  %p5614_p1 = scmp.lt.u32.totalorder %s5610_s19, %s6357_s1 }
   0xa   :  { %p5616_p2 = pnand %p5614_p1, %p5611_p0 }
   0xc   :  { %5619 = shalt.err (!%p5616_p2)
}
   0xd   :  { %s5620_s24 = scalar_lea.vmem %s38_s14, 64  ;;  %p5625_p4 = scmp.lt.s32.totalorder %s38_s14, %s38_s14 }
   0xe   :  { %p5621_p3 = scmp.ne.s32.totalorder %s38_s14, %s5620_s24  ;;  %p5626_p5 = scmp.lt.s32.totalorder %s5620_s24, %s5620_s24 }
  0x10   :  { %p5627_p6 = por %p5626_p5, %p5625_p4 }
  0x12   :  { %p5628_p7 = pnand %p5627_p6, %p5621_p3 }
  0x14   :  { %5631 = shalt.err (!%p5628_p7)
}
  0x15   :  { %40 = dma.hbm_to_vmem [thread:$0]  %s6357_s1, 64, %s38_s14, [#allocation7]  }
  0x16   :  { %s5632_s29 = scalar_lea.hbm %s6359_s3, 512 }
  0x17   :  { %p5633_p8 = scmp.ne.s32.totalorder %s6359_s3, %s5632_s29  ;;  %p5636_p9 = scmp.lt.u32.totalorder %s5632_s29, %s6359_s3 }
  0x19   :  { %p5638_p10 = pnand %p5636_p9, %p5633_p8 }
  0x1b   :  { %5641 = shalt.err (!%p5638_p10)
}
  0x1c   :  { %s5642_s15 = scalar_lea.vmem %s60_s16, 512  ;;  %p5647_p12 = scmp.lt.s32.totalorder %s60_s16, %s60_s16 }
  0x1d   :  { %p5643_p11 = scmp.ne.s32.totalorder %s60_s16, %s5642_s15  ;;  %p5648_p13 = scmp.lt.s32.totalorder %s5642_s15, %s5642_s15 }
  0x1f   :  { %p5649_p0 = por %p5648_p13, %p5647_p12 }
  0x21   :  { %p5650_p1 = pnand %p5649_p0, %p5643_p11 }
  0x23   :  { %5653 = shalt.err (!%p5650_p1)
}
  0x24   :  { %62 = dma.hbm_to_vmem [thread:$0]  %s6359_s3, 512, %s60_s16, [#allocation10]  }
  0x25   :  { %s5844_s17 = smov [#allocation12]   ;;  %s5654_s21 = scalar_lea.hbm %s6361_s5, 128 }
  0x26   :  { %s79_s18 = sshll.u32 %s5844_s17, 4  ;;  %p5655_p2 = scmp.ne.s32.totalorder %s6361_s5, %s5654_s21  ;;  %s80_s18 = int_to_ptr.vmem [resolvable:$true] %s79_s18 }
  0x27   :  { %p5658_p3 = scmp.lt.u32.totalorder %s5654_s21, %s6361_s5 }
  0x29   :  { %p5660_p4 = pnand %p5658_p3, %p5655_p2 }
  0x2b   :  { %5663 = shalt.err (!%p5660_p4)
}
  0x2c   :  { %s5664_s26 = scalar_lea.vmem %s80_s18, 128  ;;  %p5669_p6 = scmp.lt.s32.totalorder %s80_s18, %s80_s18 }
  0x2d   :  { %p5665_p5 = scmp.ne.s32.totalorder %s80_s18, %s5664_s26  ;;  %p5670_p7 = scmp.lt.s32.totalorder %s5664_s26, %s5664_s26 }
  0x2f   :  { %p5671_p8 = por %p5670_p7, %p5669_p6 }
  0x31   :  { %p5672_p9 = pnand %p5671_p8, %p5665_p5 }
  0x33   :  { %5675 = shalt.err (!%p5672_p9)
}
  0x34   :  { %82 = dma.hbm_to_vmem [thread:$0]  %s6361_s5, 128, %s80_s18, [#allocation13]  }
  0x35   :  { %s5845_s27 = smov [#allocation15]   ;;  %s5846_s29 = smov [#allocation4]  }
  0x36   :  { %s98_s28 = sshll.u32 %s5845_s27, 4  ;;  %s27_s30 = sshll.u32 %s5846_s29, 4  ;;  %s99_s28 = int_to_ptr.vmem [resolvable:$true] %s98_s28  ;;  %s28_s30 = int_to_ptr.vmem [resolvable:$true] %s27_s30 }
  0x37   :  { %s5676_s13 = scalar_lea.hbm %s6363_s7, 65536 }
  0x38   :  { %p5677_p10 = scmp.ne.s32.totalorder %s6363_s7, %s5676_s13  ;;  %p5680_p11 = scmp.lt.u32.totalorder %s5676_s13, %s6363_s7 }
  0x3a   :  { %p5682_p12 = pnand %p5680_p11, %p5677_p10 }
  0x3c   :  { %5685 = shalt.err (!%p5682_p12)
}
  0x3d   :  { %s5686_s5 = scalar_lea.vmem %s99_s28, 65536  ;;  %p5691_p0 = scmp.lt.s32.totalorder %s99_s28, %s99_s28 }
  0x3e   :  { %p5687_p13 = scmp.ne.s32.totalorder %s99_s28, %s5686_s5  ;;  %p5692_p1 = scmp.lt.s32.totalorder %s5686_s5, %s5686_s5 }
  0x40   :  { %p5693_p2 = por %p5692_p1, %p5691_p0 }
  0x42   :  { %p5694_p3 = pnand %p5693_p2, %p5687_p13 }
  0x44   :  { %5697 = shalt.err (!%p5694_p3)
}
  0x45   :  { %s5847_s18 = smov 512   ;;  %s5848_s19 = smov 32  }
  0x46   :  { %104 = dma.hbm_to_vmem [thread:$0]  %s6363_s7, 65536, %s99_s28, [#allocation16], %s5847_s18, %s5847_s18, %s5848_s19  }
  0x47   :  { %s5698_s24 = scalar_lea.hbm %s6356_s0, 64 }
  0x48   :  { %p5699_p4 = scmp.ne.s32.totalorder %s6356_s0, %s5698_s24  ;;  %p5702_p5 = scmp.lt.u32.totalorder %s5698_s24, %s6356_s0 }
  0x4a   :  { %p5704_p6 = pnand %p5702_p5, %p5699_p4 }
  0x4c   :  { %5707 = shalt.err (!%p5704_p6)
}
  0x4d   :  { %s5708_s27 = scalar_lea.vmem %s28_s30, 64  ;;  %p5713_p8 = scmp.lt.s32.totalorder %s28_s30, %s28_s30 }
  0x4e   :  { %p5709_p7 = scmp.ne.s32.totalorder %s28_s30, %s5708_s27  ;;  %p5714_p9 = scmp.lt.s32.totalorder %s5708_s27, %s5708_s27 }
  0x50   :  { %p5715_p10 = por %p5714_p9, %p5713_p8 }
  0x52   :  { %p5716_p11 = pnand %p5715_p10, %p5709_p7 }
  0x54   :  { %5719 = shalt.err (!%p5716_p11)
}
  0x55   :  { %30 = dma.hbm_to_vmem [thread:$0]  %s6356_s0, 64, %s28_s30, [#allocation5]  }
  0x56   :  { %s5849_s29 = smov [#allocation8]   ;;  %s5850_s12 = smov [#allocation11]  }
  0x57   :  { %s46_s11 = sshll.u32 %s5849_s29, 4  ;;  %s69_s13 = sshll.u32 %s5850_s12, 4  ;;  %s47_s11 = int_to_ptr.vmem [resolvable:$true] %s46_s11  ;;  %s70_s13 = int_to_ptr.vmem [resolvable:$true] %s69_s13 }
  0x58   :  { %s5720_s14 = scalar_lea.hbm %s6358_s2, 1536 }
  0x59   :  { %p5721_p12 = scmp.ne.s32.totalorder %s6358_s2, %s5720_s14  ;;  %p5724_p13 = scmp.lt.u32.totalorder %s5720_s14, %s6358_s2 }
  0x5b   :  { %p5726_p0 = pnand %p5724_p13, %p5721_p12 }
  0x5d   :  { %5729 = shalt.err (!%p5726_p0)
}
  0x5e   :  { %s5730_s0 = scalar_lea.vmem %s47_s11, 1536  ;;  %p5735_p2 = scmp.lt.s32.totalorder %s47_s11, %s47_s11 }
  0x5f   :  { %p5731_p1 = scmp.ne.s32.totalorder %s47_s11, %s5730_s0  ;;  %p5736_p3 = scmp.lt.s32.totalorder %s5730_s0, %s5730_s0 }
  0x61   :  { %p5737_p4 = por %p5736_p3, %p5735_p2 }
  0x63   :  { %p5738_p5 = pnand %p5737_p4, %p5731_p1 }
  0x65   :  { %5741 = shalt.err (!%p5738_p5)
}
  0x66   :  { %52 = dma.hbm_to_vmem [thread:$0]  %s6358_s2, 1536, %s47_s11, [#allocation7], %s5847_s18, %s5847_s18, %s5848_s19  }
  0x67   :  { %s5742_s25 = scalar_lea.hbm %s6360_s4, 128 }
  0x68   :  { %p5743_p6 = scmp.ne.s32.totalorder %s6360_s4, %s5742_s25  ;;  %p5746_p7 = scmp.lt.u32.totalorder %s5742_s25, %s6360_s4 }
  0x6a   :  { %p5748_p8 = pnand %p5746_p7, %p5743_p6 }
  0x6c   :  { %5751 = shalt.err (!%p5748_p8)
}
  0x6d   :  { %s5752_s7 = scalar_lea.vmem %s70_s13, 128  ;;  %p5757_p10 = scmp.lt.s32.totalorder %s70_s13, %s70_s13 }
  0x6e   :  { %p5753_p9 = scmp.ne.s32.totalorder %s70_s13, %s5752_s7  ;;  %p5758_p11 = scmp.lt.s32.totalorder %s5752_s7, %s5752_s7 }
  0x70   :  { %p5759_p12 = por %p5758_p11, %p5757_p10 }
  0x72   :  { %p5760_p13 = pnand %p5759_p12, %p5753_p9 }
  0x74   :  { %5763 = shalt.err (!%p5760_p13)
}
  0x75   :  { %72 = dma.hbm_to_vmem [thread:$0]  %s6360_s4, 128, %s70_s13, [#allocation10]  }
  0x76   :  { %s5851_s19 = smov [#allocation14]   ;;  %s5852_s29 = smov [#allocation17]  }
  0x77   :  { %s89_s28 = sshll.u32 %s5851_s19, 4  ;;  %s111_s11 = sshll.u32 %s5852_s29, 4  ;;  %s90_s28 = int_to_ptr.vmem [resolvable:$true] %s89_s28  ;;  %s112_s11 = int_to_ptr.vmem [resolvable:$true] %s111_s11 }
  0x78   :  { %s5764_s1 = scalar_lea.hbm %s6362_s6, 128 }
  0x79   :  { %p5765_p0 = scmp.ne.s32.totalorder %s6362_s6, %s5764_s1  ;;  %p5768_p1 = scmp.lt.u32.totalorder %s5764_s1, %s6362_s6 }
  0x7b   :  { %p5770_p2 = pnand %p5768_p1, %p5765_p0 }
  0x7d   :  { %5773 = shalt.err (!%p5770_p2)
}
  0x7e   :  { %s5774_s4 = scalar_lea.vmem %s90_s28, 128  ;;  %p5779_p4 = scmp.lt.s32.totalorder %s90_s28, %s90_s28 }
  0x7f   :  { %p5775_p3 = scmp.ne.s32.totalorder %s90_s28, %s5774_s4  ;;  %p5780_p5 = scmp.lt.s32.totalorder %s5774_s4, %s5774_s4 }
  0x81   :  { %p5781_p6 = por %p5780_p5, %p5779_p4 }
  0x83   :  { %p5782_p7 = pnand %p5781_p6, %p5775_p3 }
  0x85   :  { %5785 = shalt.err (!%p5782_p7)
}
  0x86   :  { %92 = dma.hbm_to_vmem [thread:$0]  %s6362_s6, 128, %s90_s28, [#allocation13]  }
  0x87   :  { %s5786_s22 = scalar_lea.hbm %s6364_s8, 128 }
  0x88   :  { %p5787_p8 = scmp.ne.s32.totalorder %s6364_s8, %s5786_s22  ;;  %p5790_p9 = scmp.lt.u32.totalorder %s5786_s22, %s6364_s8 }
  0x8a   :  { %p5792_p10 = pnand %p5790_p9, %p5787_p8 }
  0x8c   :  { %5795 = shalt.err (!%p5792_p10)
}
  0x8d   :  { %s5796_s3 = scalar_lea.vmem %s112_s11, 128  ;;  %p5801_p12 = scmp.lt.s32.totalorder %s112_s11, %s112_s11 }
  0x8e   :  { %p5797_p11 = scmp.ne.s32.totalorder %s112_s11, %s5796_s3  ;;  %p5802_p13 = scmp.lt.s32.totalorder %s5796_s3, %s5796_s3 }
  0x90   :  { %p5803_p0 = por %p5802_p13, %p5801_p12 }
  0x92   :  { %p5804_p1 = pnand %p5803_p0, %p5797_p11 }
  0x94   :  { %5807 = shalt.err (!%p5804_p1)
}
  0x95   :  { %114 = dma.hbm_to_vmem [thread:$0]  %s6364_s8, 128, %s112_s11, [#allocation16]  }
  0x96   :  { %s5853_s27 = smov [#allocation18]   ;;  %s5808_s19 = scalar_lea.hbm %s6365_s9, 128 }
  0x97   :  { %s121_s7 = sshll.u32 %s5853_s27, 4  ;;  %p5809_p2 = scmp.ne.s32.totalorder %s6365_s9, %s5808_s19  ;;  %s122_s7 = int_to_ptr.vmem [resolvable:$true] %s121_s7 }
  0x98   :  { %p5812_p3 = scmp.lt.u32.totalorder %s5808_s19, %s6365_s9 }
  0x9a   :  { %p5814_p4 = pnand %p5812_p3, %p5809_p2 }
  0x9c   :  { %5817 = shalt.err (!%p5814_p4)
}
  0x9d   :  { %s5818_s1 = scalar_lea.vmem %s122_s7, 128  ;;  %p5823_p6 = scmp.lt.s32.totalorder %s122_s7, %s122_s7 }
  0x9e   :  { %p5819_p5 = scmp.ne.s32.totalorder %s122_s7, %s5818_s1  ;;  %p5824_p7 = scmp.lt.s32.totalorder %s5818_s1, %s5818_s1 }
  0xa0   :  { %p5825_p8 = por %p5824_p7, %p5823_p6 }
  0xa2   :  { %p5826_p9 = pnand %p5825_p8, %p5819_p5 }
  0xa4   :  { %5829 = shalt.err (!%p5826_p9)
}
  0xa5   :  { %124 = dma.hbm_to_vmem [thread:$0]  %s6365_s9, 128, %s122_s7, [#allocation19]  }
  0xa6   :  { %5830 = dma.done.wait [#allocation5], 64  }
  0xa7   :  { %5831 = vsyncadd [#allocation5], 4294967232 }
  0xa8   :  { %5832 = dma.done.wait [#allocation7], 1600  }
  0xa9   :  { %5833 = vsyncadd [#allocation7], 4294965696 }
  0xaa   :  { %5834 = dma.done.wait [#allocation10], 640  }
  0xab   :  { %5835 = vsyncadd [#allocation10], 4294966656 }
  0xac   :  { %5836 = dma.done.wait [#allocation13], 256  }
  0xad   :  { %5837 = vsyncadd [#allocation13], 4294967040 }
  0xae   :  { %5838 = dma.done.wait [#allocation16], 65664  }
  0xaf   :  { %5839 = vsyncadd [#allocation16], 4294901632 }
  0xb0   :  { %5840 = dma.done.wait [#allocation19], 128  }
  0xb1   :  { %5841 = vsyncadd [#allocation19], 4294967168  ;;  %v5854_v0 = vmov 0   ;;  %v174_v1 = vld [vmem:[#allocation9] sm:$0xff]  ;;  %vm202_vm0 = vcmask 1043456   ;;  %v175_v2 = vld [vmem:[#allocation9 + $0x8] sm:$0xff] }
  0xb2   :  { %259 = vmatprep.mubr.bf16.mxu0 %v5854_v0  ;;  %300 = vmatprep.mubr.bf16.mxu1 %v5854_v0  ;;  %v4932_v3 = vcombine.high %v174_v1, %v174_v1  ;;  %v4934_v4 = vcombine.high %v175_v2, %v175_v2  ;;  %v4931_v5 = vcombine.low %v174_v1, %v174_v1  ;;  %v176_v7 = vld [vmem:[#allocation9 + $0x10] sm:$0xff]  ;;  %v177_v8 = vld [vmem:[#allocation9 + $0x18] sm:$0xff]  ;;  %v161_v13 = vld [vmem:[#allocation8] sm:$0xff]  ;;  %vm198_vm1 = vcmask 64512  }
  0xb3   :  { %v4933_v6 = vcombine.low %v175_v2, %v175_v2  ;;  %v4936_v9 = vcombine.high %v176_v7, %v176_v7  ;;  %v4938_v10 = vcombine.high %v177_v8, %v177_v8  ;;  %v4935_v11 = vcombine.low %v176_v7, %v176_v7  ;;  %v165_v16 = vld [vmem:[#allocation8 + $0x20] sm:$0xff]  ;;  %v162_v17 = vld [vmem:[#allocation8 + $0x8] sm:$0xff]  ;;  %v173_v19 = vld [vmem:[#allocation6] sm:$0xf] }
  0xb4   :  { %v4937_v12 = vcombine.low %v177_v8, %v177_v8  ;;  %4939 = vmatprep.subr.msk.bf16.mxu0 %vm202_vm0, %v4932_v3  ;;  %4941 = vmatprep.subr.msk.bf16.mxu1 %vm202_vm0, %v4934_v4  ;;  %v204_v14 = vsel %vm202_vm0, %v4931_v5, 0  ;;  %v166_v18 = vld [vmem:[#allocation8 + $0x28] sm:$0xff]  ;;  %v4948_v22 = vcombine.high %v161_v13, %v165_v16  ;;  %v169_v24 = vld [vmem:[#allocation8 + $0x40] sm:$0xff]  ;;  %v4947_v26 = vcombine.low %v161_v13, %v165_v16  ;;  %v163_v32 = vld [vmem:[#allocation8 + $0x10] sm:$0xff] }
  0xb5   :  { %v210_v15 = vsel %vm202_vm0, %v4933_v6, 0  ;;  %228 = vmatpush1.bf16.msra.mxu0 %v204_v14  ;;  %v216_v20 = vsel %vm202_vm0, %v4935_v11, 0  ;;  %v4950_v23 = vcombine.high %v162_v17, %v166_v18  ;;  %v170_v25 = vld [vmem:[#allocation8 + $0x48] sm:$0xff]  ;;  %v4949_v27 = vcombine.low %v162_v17, %v166_v18  ;;  %v167_v33 = vld [vmem:[#allocation8 + $0x30] sm:$0xff]  ;;  %v164_v34 = vld [vmem:[#allocation8 + $0x18] sm:$0xff] }
  0xb6   :  { %269 = vmatpush1.bf16.msra.mxu1 %v210_v15  ;;  %4943 = vmatprep.subr.msk.bf16.mxu0 %vm202_vm0, %v4936_v9  ;;  %v222_v21 = vsel %vm202_vm0, %v4937_v12, 0  ;;  %v4956_v28 = vcombine.high %v169_v24, %v169_v24  ;;  %v4958_v29 = vcombine.high %v170_v25, %v170_v25  ;;  %v4955_v30 = vcombine.low %v169_v24, %v169_v24  ;;  %v168_v35 = vld [vmem:[#allocation8 + $0x38] sm:$0xff]  ;;  %v171_v40 = vld [vmem:[#allocation8 + $0x50] sm:$0xff]  ;;  %v1048_v53 = vld [vmem:[#allocation15 + $0x8] sm:$0xff] }
  0xb7   :  { %4945 = vmatprep.subr.msk.bf16.mxu1 %vm202_vm0, %v4938_v10  ;;  %v4957_v31 = vcombine.low %v170_v25, %v170_v25  ;;  %v4952_v38 = vcombine.high %v163_v32, %v167_v33  ;;  %v4954_v39 = vcombine.high %v164_v34, %v168_v35  ;;  %v172_v41 = vld [vmem:[#allocation8 + $0x58] sm:$0xff]  ;;  %vm451_vm2 = vcmask 195584   ;;  %v1052_v55 = vld [vmem:[#allocation15 + $0x28] sm:$0xff] }
  0xb8   :  { %4940 = vmatmul.mubr.msk.bf16.vlgmr.msra.gmra.mrb[0].mxu0 %vm198_vm1, %v173_v19  ;;  %v456_v36 = vsel %vm202_vm0, %v4955_v30, 0  ;;  %v160_v42 = vld [vmem:[#allocation4] sm:$0xf]  ;;  %v4951_v43 = vcombine.low %v163_v32, %v167_v33  ;;  %v4953_v44 = vcombine.low %v164_v34, %v168_v35  ;;  %v4960_v45 = vcombine.high %v171_v40, %v171_v40  ;;  %v1056_v61 = vld [vmem:[#allocation15 + $0x48] sm:$0xff] }
  0xb9   :  { %4942 = vmatmul.mubr.msk.bf16.vlgmr.msra.gmra.mrb[0].mxu1 %vm198_vm1, %v173_v19  ;;  %310 = vmatpush1.bf16.msra.mxu0 %v216_v20  ;;  %v462_v37 = vsel %vm202_vm0, %v4957_v31, 0  ;;  %v4962_v46 = vcombine.high %v172_v41, %v172_v41  ;;  %v4959_v47 = vcombine.low %v171_v40, %v171_v40  ;;  %v4961_v48 = vcombine.low %v172_v41, %v172_v41  ;;  %v1047_v51 = vld [vmem:[#allocation15] sm:$0xff]  ;;  %v1060_v63 = vld [vmem:[#allocation15 + $0x68] sm:$0xff] }
  0xba   :  { %351 = vmatpush1.bf16.msra.mxu1 %v222_v21  ;;  %341 = vmatprep.mubr.bf16.mxu0 %v5854_v0  ;;  %v1051_v52 = vld [vmem:[#allocation15 + $0x20] sm:$0xff]  ;;  %v4985_v57 = vcombine.low %v1048_v53, %v1052_v55  ;;  %v4986_v58 = vcombine.high %v1048_v53, %v1052_v55  ;;  %v4993_v1 = vcombine.low %v1056_v61, %v1060_v63  ;;  %v1064_v5 = vld [vmem:[#allocation15 + $0x88] sm:$0xff]  ;;  %vm1041_vm3 = vcmask 7168  }
  0xbb   :  { %382 = vmatprep.mubr.bf16.mxu1 %v5854_v0  ;;  %479 = vmatprep.subr.bf16.mxu0 %v4948_v22  ;;  %v468_v49 = vsel %vm202_vm0, %v4959_v47, 0  ;;  %v474_v50 = vsel %vm202_vm0, %v4961_v48, 0  ;;  %v4984_v54 = vcombine.high %v1047_v51, %v1051_v52  ;;  %v4983_v56 = vcombine.low %v1047_v51, %v1051_v52  ;;  %v1055_v59 = vld [vmem:[#allocation15 + $0x40] sm:$0xff]  ;;  %v1068_v7 = vld [vmem:[#allocation15 + $0xa8] sm:$0xff] }
  0xbc   :  { %520 = vmatprep.subr.bf16.mxu1 %v4950_v23  ;;  %v1059_v60 = vld [vmem:[#allocation15 + $0x60] sm:$0xff]  ;;  %v4994_v2 = vcombine.high %v1056_v61, %v1060_v63  ;;  %v5001_v9 = vcombine.low %v1064_v5, %v1068_v7  ;;  %v5002_v10 = vcombine.high %v1064_v5, %v1068_v7  ;;  %v1072_v13 = vld [vmem:[#allocation15 + $0xc8] sm:$0xff] }
  0xbd   :  { %v4992_v62 = vcombine.high %v1055_v59, %v1059_v60  ;;  %v1063_v3 = vld [vmem:[#allocation15 + $0x80] sm:$0xff]  ;;  %v1076_v15 = vld [vmem:[#allocation15 + $0xe8] sm:$0xff] }
  0xbe   :  { %v1067_v4 = vld [vmem:[#allocation15 + $0xa0] sm:$0xff]  ;;  %v5009_v17 = vcombine.low %v1072_v13, %v1076_v15  ;;  %v5010_v18 = vcombine.high %v1072_v13, %v1076_v15  ;;  %v1080_v21 = vld [vmem:[#allocation15 + $0x108] sm:$0xff] }
  0xbf   :  { %v5000_v6 = vcombine.high %v1063_v3, %v1067_v4  ;;  %v4999_v8 = vcombine.low %v1063_v3, %v1067_v4  ;;  %v1071_v11 = vld [vmem:[#allocation15 + $0xc0] sm:$0xff]  ;;  %v1084_v23 = vld [vmem:[#allocation15 + $0x128] sm:$0xff] }
  0xc0   :  { %4944 = vmatmul.mubr.msk.bf16.vlgmr.msra.gmra.mrb[4].mxu0 %vm198_vm1, %v173_v19  ;;  %v1075_v12 = vld [vmem:[#allocation15 + $0xe0] sm:$0xff]  ;;  %v5017_v25 = vcombine.low %v1080_v21, %v1084_v23  ;;  %v1092_v31 = vld [vmem:[#allocation15 + $0x168] sm:$0xff] }
  0xc1   :  { %4946 = vmatmul.mubr.msk.bf16.vlgmr.msra.gmra.mrb[4].mxu1 %vm198_vm1, %v173_v19  ;;  %480 = vmatpush1.bf16.msra.mxu0 %v4947_v26  ;;  %v5008_v14 = vcombine.high %v1071_v11, %v1075_v12  ;;  %v5007_v16 = vcombine.low %v1071_v11, %v1075_v12  ;;  %v1079_v19 = vld [vmem:[#allocation15 + $0x100] sm:$0xff]  ;;  %v5018_v26 = vcombine.high %v1080_v21, %v1084_v23  ;;  %v1108_v47 = vld [vmem:[#allocation15 + $0x1e8] sm:$0xff] }
  0xc2   :  { %521 = vmatpush1.bf16.msra.mxu1 %v4949_v27  ;;  %4963 = vmatprep.subr.msk.bf16.mxu0 %vm202_vm0, %v4956_v28  ;;  %v1083_v20 = vld [vmem:[#allocation15 + $0x120] sm:$0xff]  ;;  %v1112_v53 = vld [vmem:[#allocation15 + $0x208] sm:$0xff] }
  0xc3   :  { %4965 = vmatprep.subr.msk.bf16.mxu1 %vm202_vm0, %v4958_v29  ;;  %511 = vmatprep.mubr.bf16.mxu0 %v5854_v0  ;;  %v5016_v22 = vcombine.high %v1079_v19, %v1083_v20  ;;  %v5015_v24 = vcombine.low %v1079_v19, %v1083_v20  ;;  %v1087_v27 = vld [vmem:[#allocation15 + $0x140] sm:$0xff]  ;;  %v1088_v29 = vld [vmem:[#allocation15 + $0x148] sm:$0xff] }
  0xc4   :  { %552 = vmatprep.mubr.bf16.mxu1 %v5854_v0  ;;  %v1091_v28 = vld [vmem:[#allocation15 + $0x160] sm:$0xff]  ;;  %v5025_v33 = vcombine.low %v1088_v29, %v1092_v31  ;;  %v5026_v34 = vcombine.high %v1088_v29, %v1092_v31  ;;  %v1116_v55 = vld [vmem:[#allocation15 + $0x228] sm:$0xff] }
  0xc5   :  { %482 = vmatpush1.bf16.msra.mxu0 %v456_v36  ;;  %v5024_v30 = vcombine.high %v1087_v27, %v1091_v28  ;;  %v5023_v32 = vcombine.low %v1087_v27, %v1091_v28  ;;  %v1095_v35 = vld [vmem:[#allocation15 + $0x180] sm:$0xff]  ;;  %v1120_v61 = vld [vmem:[#allocation15 + $0x248] sm:$0xff] }
  0xc6   :  { %523 = vmatpush1.bf16.msra.mxu1 %v462_v37  ;;  %561 = vmatprep.subr.bf16.mxu0 %v4952_v38  ;;  %v1099_v36 = vld [vmem:[#allocation15 + $0x1a0] sm:$0xff]  ;;  %v1096_v37 = vld [vmem:[#allocation15 + $0x188] sm:$0xff] }
  0xc7   :  { %602 = vmatprep.subr.bf16.mxu1 %v4954_v39  ;;  %v5032_v38 = vcombine.high %v1095_v35, %v1099_v36  ;;  %v1100_v39 = vld [vmem:[#allocation15 + $0x1a8] sm:$0xff]  ;;  %v5031_v40 = vcombine.low %v1095_v35, %v1099_v36  ;;  %v1111_v51 = vld [vmem:[#allocation15 + $0x200] sm:$0xff] }
  0xc8   :  { %4964 = vmatmul.mubr.msk.bf16.vlgmr.msra.gmra.mrb[8].mxu0 %vm451_vm2, %v160_v42  ;;  %v5033_v41 = vcombine.low %v1096_v37, %v1100_v39  ;;  %v1115_v52 = vld [vmem:[#allocation15 + $0x220] sm:$0xff]  ;;  %v1124_v63 = vld [vmem:[#allocation15 + $0x268] sm:$0xff] }
  0xc9   :  { %4966 = vmatmul.mubr.msk.bf16.vlgmr.msra.gmra.mrb[8].mxu1 %vm451_vm2, %v160_v42  ;;  %562 = vmatpush1.bf16.msra.mxu0 %v4951_v43  ;;  %v1103_v43 = vld [vmem:[#allocation15 + $0x1c0] sm:$0xff]  ;;  %v1128_v5 = vld [vmem:[#allocation15 + $0x288] sm:$0xff] }
  0xca   :  { %603 = vmatpush1.bf16.msra.mxu1 %v4953_v44  ;;  %4967 = vmatprep.subr.msk.bf16.mxu0 %vm202_vm0, %v4960_v45  ;;  %v1107_v44 = vld [vmem:[#allocation15 + $0x1e0] sm:$0xff]  ;;  %v1104_v45 = vld [vmem:[#allocation15 + $0x1c8] sm:$0xff] }
  0xcb   :  { %4969 = vmatprep.subr.msk.bf16.mxu1 %vm202_vm0, %v4962_v46  ;;  %593 = vmatprep.mubr.bf16.mxu0 %v5854_v0  ;;  %v5040_v46 = vcombine.high %v1103_v43, %v1107_v44  ;;  %v5039_v48 = vcombine.low %v1103_v43, %v1107_v44  ;;  %v1127_v3 = vld [vmem:[#allocation15 + $0x280] sm:$0xff]  ;;  %v1132_v7 = vld [vmem:[#allocation15 + $0x2a8] sm:$0xff] }
  0xcc   :  { %634 = vmatprep.mubr.bf16.mxu1 %v5854_v0  ;;  %v4991_v0 = vcombine.low %v1055_v59, %v1059_v60  ;;  %v1119_v59 = vld [vmem:[#allocation15 + $0x240] sm:$0xff]  ;;  %v1136_v13 = vld [vmem:[#allocation15 + $0x2c8] sm:$0xff] }
  0xcd   :  { %564 = vmatpush1.bf16.msra.mxu0 %v468_v49  ;;  %v5041_v49 = vcombine.low %v1104_v45, %v1108_v47  ;;  %v1123_v60 = vld [vmem:[#allocation15 + $0x260] sm:$0xff]  ;;  %v1140_v15 = vld [vmem:[#allocation15 + $0x2e8] sm:$0xff] }
  0xce   :  { %605 = vmatpush1.bf16.msra.mxu1 %v474_v50  ;;  %4189 = vmatprep.subr.bf16.mxu0 %v4984_v54  ;;  %v5042_v50 = vcombine.high %v1104_v45, %v1108_v47  ;;  %v5048_v54 = vcombine.high %v1111_v51, %v1115_v52  ;;  %v1131_v4 = vld [vmem:[#allocation15 + $0x2a0] sm:$0xff]  ;;  %v1148_v23 = vld [vmem:[#allocation15 + $0x328] sm:$0xff] }
  0xcf   :  { %4353 = vmatprep.subr.bf16.mxu1 %v4986_v58  ;;  %v5050_v58 = vcombine.high %v1112_v53, %v1116_v55  ;;  %v1135_v11 = vld [vmem:[#allocation15 + $0x2c0] sm:$0xff]  ;;  %v1152_v29 = vld [vmem:[#allocation15 + $0x348] sm:$0xff] }
  0xd0   :  { %4968 = vmatmul.mubr.msk.bf16.vlgmr.msra.gmra.mrb[12].mxu0 %vm451_vm2, %v160_v42  ;;  %v1139_v12 = vld [vmem:[#allocation15 + $0x2e0] sm:$0xff]  ;;  %v1156_v31 = vld [vmem:[#allocation15 + $0x368] sm:$0xff] }
  0xd1   :  { %4970 = vmatmul.mubr.msk.bf16.vlgmr.msra.gmra.mrb[12].mxu1 %vm451_vm2, %v160_v42  ;;  %4190 = vmatpush1.bf16.msra.mxu0 %v4983_v56  ;;  %v5034_v42 = vcombine.high %v1096_v37, %v1100_v39  ;;  %v5047_v56 = vcombine.low %v1111_v51, %v1115_v52  ;;  %v1143_v19 = vld [vmem:[#allocation15 + $0x300] sm:$0xff]  ;;  %v1160_v37 = vld [vmem:[#allocation15 + $0x388] sm:$0xff] }
  0xd2   :  { %4354 = vmatpush1.bf16.msra.mxu1 %v4985_v57  ;;  %4191 = vmatprep.subr.bf16.mxu0 %v4992_v62  ;;  %v5049_v57 = vcombine.low %v1112_v53, %v1116_v55  ;;  %v5056_v62 = vcombine.high %v1119_v59, %v1123_v60  ;;  %v1147_v20 = vld [vmem:[#allocation15 + $0x320] sm:$0xff]  ;;  %v1164_v39 = vld [vmem:[#allocation15 + $0x3a8] sm:$0xff] }
  0xd3   :  { %4355 = vmatprep.subr.bf16.mxu1 %v4994_v2  ;;  %v5058_v2 = vcombine.high %v1120_v61, %v1124_v63  ;;  %v5080_v21 = vcombine.high %v1143_v19, %v1147_v20  ;;  %v1151_v27 = vld [vmem:[#allocation15 + $0x340] sm:$0xff]  ;;  %v1168_v45 = vld [vmem:[#allocation15 + $0x3c8] sm:$0xff] }
  0xd4   :  { %v1155_v28 = vld [vmem:[#allocation15 + $0x360] sm:$0xff]  ;;  %v6074_v53 = vld [vmem:[#allocation15 + $0x408] sm:$0xff] }
  0xd5   :  { %4192 = vmatpush1.bf16.msra.mxu0 %v4991_v0  ;;  %v5055_v0 = vcombine.low %v1119_v59, %v1123_v60  ;;  %v1159_v35 = vld [vmem:[#allocation15 + $0x380] sm:$0xff]  ;;  %v6078_v55 = vld [vmem:[#allocation15 + $0x428] sm:$0xff] }
  0xd6   :  { %4356 = vmatpush1.bf16.msra.mxu1 %v4993_v1  ;;  %4193 = vmatprep.subr.bf16.mxu0 %v5000_v6  ;;  %v5057_v1 = vcombine.low %v1120_v61, %v1124_v63  ;;  %v5064_v6 = vcombine.high %v1127_v3, %v1131_v4  ;;  %v1163_v36 = vld [vmem:[#allocation15 + $0x3a0] sm:$0xff] }
  0xd7   :  { %4357 = vmatprep.subr.bf16.mxu1 %v5002_v10  ;;  %v5066_v10 = vcombine.high %v1128_v5, %v1132_v7  ;;  %v1167_v43 = vld [vmem:[#allocation15 + $0x3c0] sm:$0xff] }
  0xd8   :  { %v1171_v44 = vld [vmem:[#allocation15 + $0x3e0] sm:$0xff] }
  0xd9   :  { %4194 = vmatpush1.bf16.msra.mxu0 %v4999_v8  ;;  %v5063_v8 = vcombine.low %v1127_v3, %v1131_v4  ;;  %v5104_v47 = vcombine.high %v1167_v43, %v1171_v44  ;;  %v6070_v51 = vld [vmem:[#allocation15 + $0x400] sm:$0xff]  ;;  %v645_v3 = vlaneseq }
  0xda   :  { %4358 = vmatpush1.bf16.msra.mxu1 %v5001_v9  ;;  %4195 = vmatprep.subr.bf16.mxu0 %v5008_v14  ;;  %v5065_v9 = vcombine.low %v1128_v5, %v1132_v7  ;;  %v5072_v14 = vcombine.high %v1135_v11, %v1139_v12  ;;  %v6072_v52 = vld [vmem:[#allocation15 + $0x420] sm:$0xff] }
  0xdb   :  { %4359 = vmatprep.subr.bf16.mxu1 %v5010_v18  ;;  %v5074_v18 = vcombine.high %v1136_v13, %v1140_v15  ;;  %v6086_v4 = vshrl.u32 %v645_v3, 7 }
  0xdd   :  { %4196 = vmatpush1.bf16.msra.mxu0 %v5007_v16  ;;  %v5071_v16 = vcombine.low %v1135_v11, %v1139_v12 }
  0xde   :  { %4360 = vmatpush1.bf16.msra.mxu1 %v5009_v17  ;;  %4197 = vmatprep.subr.bf16.mxu0 %v5016_v22  ;;  %v5073_v17 = vcombine.low %v1136_v13, %v1140_v15  ;;  %v1144_v22 = vld [vmem:[#allocation15 + $0x308] sm:$0xff]  ;;  %v6089_v13 = vsub.s32 0, %v6086_v4 }
  0xdf   :  { %4361 = vmatprep.subr.bf16.mxu1 %v5018_v26  ;;  %v5082_v26 = vcombine.high %v1144_v22, %v1148_v23  ;;  %v6094_v15 = vld [vmem:[#allocation11] sm:$0xff] }
  0xe1   :  { %4198 = vmatpush1.bf16.msra.mxu0 %v5015_v24  ;;  %v5079_v24 = vcombine.low %v1143_v19, %v1147_v20 }
  0xe2   :  { %4362 = vmatpush1.bf16.msra.mxu1 %v5017_v25  ;;  %4199 = vmatprep.subr.bf16.mxu0 %v5024_v30  ;;  %v5081_v25 = vcombine.low %v1144_v22, %v1148_v23  ;;  %v5088_v30 = vcombine.high %v1151_v27, %v1155_v28 }
  0xe3   :  { %4363 = vmatprep.subr.bf16.mxu1 %v5026_v34  ;;  %v5090_v34 = vcombine.high %v1152_v29, %v1156_v31 }
  0xe5   :  { %4200 = vmatpush1.bf16.msra.mxu0 %v5023_v32  ;;  %v5087_v32 = vcombine.low %v1151_v27, %v1155_v28 }
  0xe6   :  { %4364 = vmatpush1.bf16.msra.mxu1 %v5025_v33  ;;  %4201 = vmatprep.subr.bf16.mxu0 %v5032_v38  ;;  %v5089_v33 = vcombine.low %v1152_v29, %v1156_v31  ;;  %v5096_v38 = vcombine.high %v1159_v35, %v1163_v36 }
  0xe7   :  { %4365 = vmatprep.subr.bf16.mxu1 %v5034_v42  ;;  %v5098_v42 = vcombine.high %v1160_v37, %v1164_v39 }
  0xe9   :  { %4202 = vmatpush1.bf16.msra.mxu0 %v5031_v40  ;;  %v5095_v40 = vcombine.low %v1159_v35, %v1163_v36  ;;  %v6111_v36 = vsub.s32 4, %v6086_v4 }
  0xea   :  { %4366 = vmatpush1.bf16.msra.mxu1 %v5033_v41  ;;  %4203 = vmatprep.subr.bf16.mxu0 %v5040_v46  ;;  %v5097_v41 = vcombine.low %v1160_v37, %v1164_v39  ;;  %v5103_v46 = vcombine.low %v1167_v43, %v1171_v44  ;;  %v6114_v37 = vsub.s32 6, %v6086_v4 }
  0xeb   :  { %4367 = vmatprep.subr.bf16.mxu1 %v5042_v50 }
  0xed   :  { %4204 = vmatpush1.bf16.msra.mxu0 %v5039_v48  ;;  %v1172_v48 = vld [vmem:[#allocation15 + $0x3e8] sm:$0xff] }
  0xee   :  { %4368 = vmatpush1.bf16.msra.mxu1 %v5041_v49  ;;  %4205 = vmatprep.subr.bf16.mxu0 %v5048_v54  ;;  %v5105_v49 = vcombine.low %v1168_v45, %v1172_v48  ;;  %v5106_v50 = vcombine.high %v1168_v45, %v1172_v48  ;;  %v5112_v54 = vcombine.high %v6070_v51, %v6072_v52 }
  0xef   :  { %4369 = vmatprep.subr.bf16.mxu1 %v5050_v58  ;;  %v5114_v58 = vcombine.high %v6074_v53, %v6078_v55  ;;  %v664_v48 = vrot.slane %v6094_v15, %v6111_v36 }
  0xf1   :  { %4206 = vmatpush1.bf16.msra.mxu0 %v5047_v56  ;;  %v5111_v56 = vcombine.low %v6070_v51, %v6072_v52  ;;  %v1203_v51 = vld [vmem:[#allocation15 + $0x4e0] sm:$0xff]  ;;  %v1200_v52 = vld [vmem:[#allocation15 + $0x4c8] sm:$0xff] }
  0xf2   :  { %4370 = vmatpush1.bf16.msra.mxu1 %v5049_v57  ;;  %4207 = vmatprep.subr.bf16.mxu0 %v5056_v62  ;;  %v5113_v57 = vcombine.low %v6074_v53, %v6078_v55 }
  0xf3   :  { %4371 = vmatprep.subr.bf16.mxu1 %v5058_v2 }
  0xf5   :  { %4208 = vmatpush1.bf16.msra.mxu0 %v5055_v0 }
  0xf6   :  { %4372 = vmatpush1.bf16.msra.mxu1 %v5057_v1  ;;  %4209 = vmatprep.subr.bf16.mxu0 %v5064_v6 }
  0xf7   :  { %4373 = vmatprep.subr.bf16.mxu1 %v5066_v10 }
  0xf9   :  { %4210 = vmatpush1.bf16.msra.mxu0 %v5063_v8 }
  0xfa   :  { %4374 = vmatpush1.bf16.msra.mxu1 %v5065_v9  ;;  %4211 = vmatprep.subr.bf16.mxu0 %v5072_v14  ;;  %v6092_v14 = vsub.s32 2, %v6086_v4 }
  0xfb   :  { %4375 = vmatprep.subr.bf16.mxu1 %v5074_v18  ;;  %v648_v18 = vrot.slane %v6094_v15, %v6089_v13 }
  0xfc   :  { %v656_v19 = vrot.slane %v6094_v15, %v6092_v14 }
  0xfd   :  { %4212 = vmatpush1.bf16.msra.mxu0 %v5071_v16  ;;  %v6097_v16 = vsub.s32 1, %v6086_v4 }
  0xfe   :  { %4376 = vmatpush1.bf16.msra.mxu1 %v5073_v17  ;;  %4213 = vmatprep.subr.bf16.mxu0 %v5080_v21  ;;  %v6100_v17 = vsub.s32 3, %v6086_v4 }
  0xff   :  { %4377 = vmatprep.subr.bf16.mxu1 %v5082_v26  ;;  %v652_v22 = vrot.slane %v6094_v15, %v6097_v16 }
 0x100   :  { %v660_v23 = vrot.slane %v6094_v15, %v6100_v17 }
 0x101   :  { %4214 = vmatpush1.bf16.msra.mxu0 %v5079_v24 }
 0x102   :  { %4378 = vmatpush1.bf16.msra.mxu1 %v5081_v25  ;;  %4215 = vmatprep.subr.bf16.mxu0 %v5088_v30 }
 0x103   :  { %4379 = vmatprep.subr.bf16.mxu1 %v5090_v34 }
 0x105   :  { %4216 = vmatpush1.bf16.msra.mxu0 %v5087_v32 }
 0x106   :  { %4380 = vmatpush1.bf16.msra.mxu1 %v5089_v33  ;;  %4217 = vmatprep.subr.bf16.mxu0 %v5096_v38 }
 0x107   :  { %4381 = vmatprep.subr.bf16.mxu1 %v5098_v42 }
 0x109   :  { %4218 = vmatpush1.bf16.msra.mxu0 %v5095_v40  ;;  %v6117_v40 = vsub.s32 5, %v6086_v4 }
 0x10a   :  { %4382 = vmatpush1.bf16.msra.mxu1 %v5097_v41  ;;  %4219 = vmatprep.subr.bf16.mxu0 %v5104_v47  ;;  %v6120_v41 = vsub.s32 7, %v6086_v4 }
 0x10b   :  { %4383 = vmatprep.subr.bf16.mxu1 %v5106_v50 }
 0x10d   :  { %4220 = vmatpush1.bf16.msra.mxu0 %v5103_v46 }
 0x10e   :  { %4384 = vmatpush1.bf16.msra.mxu1 %v5105_v49  ;;  %4230 = vmatprep.subr.bf16.mxu0 %v5112_v54  ;;  %v672_v49 = vrot.slane %v6094_v15, %v6114_v37 }
 0x10f   :  { %4394 = vmatprep.subr.bf16.mxu1 %v5114_v58 }
 0x18b   :  { %v261_v59 = vpop.f32.mrb[0].mxu0 }
 0x18c   :  { %v302_v60 = vpop.f32.mrb[0].mxu1  ;;  %v263_v61 = vpop.f32.mrb[1].mxu0 }
 0x18d   :  { %v304_v62 = vpop.f32.mrb[1].mxu1  ;;  %v265_v63 = vpop.f32.mrb[2].mxu0 }
 0x18e   :  { %v306_v0 = vpop.f32.mrb[2].mxu1  ;;  %v266_v1 = vpop.f32.mrb[3].mxu0 }
 0x18f   :  { %v307_v2 = vpop.f32.mrb[3].mxu1 }
 0x193   :  { %v343_v5 = vpop.f32.mrb[4].mxu0 }
 0x194   :  { %v384_v6 = vpop.f32.mrb[4].mxu1  ;;  %v345_v7 = vpop.f32.mrb[5].mxu0 }
 0x195   :  { %v386_v8 = vpop.f32.mrb[5].mxu1  ;;  %v347_v9 = vpop.f32.mrb[6].mxu0 }
 0x196   :  { %v388_v10 = vpop.f32.mrb[6].mxu1  ;;  %v348_v11 = vpop.f32.mrb[7].mxu0 }
 0x197   :  { %v389_v12 = vpop.f32.mrb[7].mxu1 }
 0x19b   :  { %v513_v20 = vpop.f32.mrb[8].mxu0 }
 0x19c   :  { %v554_v21 = vpop.f32.mrb[8].mxu1  ;;  %v514_v24 = vadd.f32 %v513_v20, %v261_v59  ;;  %v515_v26 = vpop.f32.mrb[9].mxu0 }
 0x19d   :  { %v555_v25 = vadd.f32 %v554_v21, %v302_v60  ;;  %v556_v27 = vpop.f32.mrb[9].mxu1  ;;  %v516_v28 = vadd.f32 %v515_v26, %v263_v61  ;;  %v517_v30 = vpop.f32.mrb[10].mxu0  ;;  %v668_v60 = vrot.slane %v6094_v15, %v6117_v40  ;;  %v676_v61 = vrot.slane %v6094_v15, %v6120_v41 }
 0x19e   :  { %v557_v29 = vadd.f32 %v556_v27, %v304_v62  ;;  %v558_v31 = vpop.f32.mrb[10].mxu1  ;;  %v685_v32 = vadd.f32 %v648_v18, %v514_v24  ;;  %v518_v34 = vpop.f32.mrb[11].mxu0 }
 0x19f   :  { %v687_v33 = vadd.f32 %v656_v19, %v555_v25  ;;  %v559_v35 = vpop.f32.mrb[11].mxu1  ;;  %v686_v38 = vadd.f32 %v652_v22, %v516_v28 }
 0x1a0   :  { %v688_v39 = vadd.f32 %v660_v23, %v557_v29  ;;  %v6122_v42 = vmax.f32 %v685_v32, 0.0 }
 0x1a1   :  { %v6124_v43 = vmax.f32 %v687_v33, 0.0  ;;  %v6126_v44 = vmax.f32 %v686_v38, 0.0 }
 0x1a2   :  { %v6128_v45 = vmax.f32 %v688_v39, 0.0  ;;  %v701_v46 = vrot.slane %v6122_v42, 4 }
 0x1a3   :  { %v713_v47 = vrot.slane %v6124_v43, 4  ;;  %v707_v50 = vrot.slane %v6126_v44, 4  ;;  %v595_v58 = vpop.f32.mrb[12].mxu0 }
 0x1a4   :  { %v719_v54 = vrot.slane %v6128_v45, 4  ;;  %v636_v59 = vpop.f32.mrb[12].mxu1  ;;  %v702_v62 = vadd.f32 %v701_v46, %v6122_v42  ;;  %v596_v0 = vadd.f32 %v595_v58, %v343_v5  ;;  %v597_v2 = vpop.f32.mrb[13].mxu0 }
 0x1a5   :  { %v714_v63 = vadd.f32 %v713_v47, %v6124_v43  ;;  %v637_v1 = vadd.f32 %v636_v59, %v384_v6  ;;  %v638_v3 = vpop.f32.mrb[13].mxu1  ;;  %v708_v9 = vadd.f32 %v707_v50, %v6126_v44  ;;  %v598_v11 = vadd.f32 %v597_v2, %v345_v7  ;;  %v599_v18 = vpop.f32.mrb[14].mxu0 }
 0x1a6   :  { %v720_v10 = vadd.f32 %v719_v54, %v6128_v45  ;;  %v639_v12 = vadd.f32 %v638_v3, %v386_v8  ;;  %v640_v19 = vpop.f32.mrb[14].mxu1  ;;  %v703_v20 = vrot.slane %v702_v62, 2  ;;  %v689_v22 = vadd.f32 %v664_v48, %v596_v0  ;;  %v600_v23 = vpop.f32.mrb[15].mxu0 }
 0x1a7   :  { %v715_v21 = vrot.slane %v714_v63, 2  ;;  %v691_v15 = vadd.f32 %v672_v49, %v637_v1  ;;  %v641_v24 = vpop.f32.mrb[15].mxu1  ;;  %v709_v25 = vrot.slane %v708_v9, 2  ;;  %v690_v5 = vadd.f32 %v668_v60, %v598_v11 }
 0x1a8   :  { %v721_v26 = vrot.slane %v720_v10, 2  ;;  %v692_v6 = vadd.f32 %v676_v61, %v639_v12  ;;  %v704_v27 = vadd.f32 %v703_v20, %v702_v62  ;;  %v6146_v29 = vmax.f32 %v689_v22, 0.0 }
 0x1a9   :  { %v716_v28 = vadd.f32 %v715_v21, %v714_v63  ;;  %v6148_v30 = vmax.f32 %v691_v15, 0.0  ;;  %v710_v7 = vadd.f32 %v709_v25, %v708_v9  ;;  %v6150_v31 = vmax.f32 %v690_v5, 0.0 }
 0x1aa   :  { %v722_v8 = vadd.f32 %v721_v26, %v720_v10  ;;  %v6152_v32 = vmax.f32 %v692_v6, 0.0  ;;  %v705_v33 = vrot.slane %v704_v27, 1  ;;  %v725_v35 = vrot.slane %v6146_v29, 4 }
 0x1ab   :  { %v717_v34 = vrot.slane %v716_v28, 1  ;;  %v737_v38 = vrot.slane %v6148_v30, 4  ;;  %v711_v39 = vrot.slane %v710_v7, 1  ;;  %v731_v47 = vrot.slane %v6150_v31, 4 }
 0x1ac   :  { %v723_v46 = vrot.slane %v722_v8, 1  ;;  %v743_v48 = vrot.slane %v6152_v32, 4  ;;  %v706_v49 = vadd.f32 %v705_v33, %v704_v27  ;;  %v726_v54 = vadd.f32 %v725_v35, %v6146_v29 }
 0x1ad   :  { %v718_v50 = vadd.f32 %v717_v34, %v716_v28  ;;  %v738_v58 = vadd.f32 %v737_v38, %v6148_v30  ;;  %v712_v59 = vadd.f32 %v711_v39, %v710_v7  ;;  %v732_v61 = vadd.f32 %v731_v47, %v6150_v31 }
 0x1ae   :  { %v724_v60 = vadd.f32 %v723_v46, %v722_v8  ;;  %v744_v62 = vadd.f32 %v743_v48, %v6152_v32  ;;  %v750_v63 = vmul.f32 0.125, %v706_v49  ;;  %v727_v1 = vrot.slane %v726_v54, 2 }
 0x1af   :  { %v752_v0 = vmul.f32 0.125, %v718_v50  ;;  %v739_v2 = vrot.slane %v738_v58, 2  ;;  %v751_v3 = vmul.f32 0.125, %v712_v59  ;;  %v733_v10 = vrot.slane %v732_v61, 2 }
 0x1b0   :  { %v753_v9 = vmul.f32 0.125, %v724_v60  ;;  %v745_v11 = vrot.slane %v744_v62, 2  ;;  %v6163_v12 = vsub.f32 %v6122_v42, %v750_v63  ;;  %v728_v19 = vadd.f32 %v727_v1, %v726_v54 }
 0x1b1   :  { %v6166_v18 = vsub.f32 %v6124_v43, %v752_v0  ;;  %v740_v20 = vadd.f32 %v739_v2, %v738_v58  ;;  %v6169_v21 = vsub.f32 %v6126_v44, %v751_v3  ;;  %v734_v15 = vadd.f32 %v733_v10, %v732_v61 }
 0x1b2   :  { %v6172_v22 = vsub.f32 %v6128_v45, %v753_v9  ;;  %v746_v23 = vadd.f32 %v745_v11, %v744_v62  ;;  %v766_v24 = vmul.f32 %v6163_v12, %v6163_v12  ;;  %v729_v25 = vrot.slane %v728_v19, 1 }
 0x1b3   :  { %v768_v42 = vmul.f32 %v6166_v18, %v6166_v18  ;;  %v741_v26 = vrot.slane %v740_v20, 1  ;;  %v767_v43 = vmul.f32 %v6169_v21, %v6169_v21  ;;  %v735_v5 = vrot.slane %v734_v15, 1 }
 0x1b4   :  { %v769_v44 = vmul.f32 %v6172_v22, %v6172_v22  ;;  %v747_v6 = vrot.slane %v746_v23, 1  ;;  %v774_v45 = vrot.slane %v766_v24, 4  ;;  %v730_v28 = vadd.f32 %v729_v25, %v728_v19 }
 0x1b5   :  { %v786_v27 = vrot.slane %v768_v42, 4  ;;  %v742_v7 = vadd.f32 %v741_v26, %v740_v20  ;;  %v780_v8 = vrot.slane %v767_v43, 4  ;;  %v736_v34 = vadd.f32 %v735_v5, %v734_v15 }
 0x1b6   :  { %v792_v33 = vrot.slane %v769_v44, 4  ;;  %v748_v35 = vadd.f32 %v747_v6, %v746_v23  ;;  %v775_v38 = vadd.f32 %v774_v45, %v766_v24  ;;  %v754_v46 = vmul.f32 0.125, %v730_v28 }
 0x1b7   :  { %v787_v39 = vadd.f32 %v786_v27, %v768_v42  ;;  %v756_v47 = vmul.f32 0.125, %v742_v7  ;;  %v781_v48 = vadd.f32 %v780_v8, %v767_v43  ;;  %v755_v50 = vmul.f32 0.125, %v736_v34 }
 0x1b8   :  { %v793_v49 = vadd.f32 %v792_v33, %v769_v44  ;;  %v757_v54 = vmul.f32 0.125, %v748_v35  ;;  %v776_v58 = vrot.slane %v775_v38, 2  ;;  %v6183_v60 = vsub.f32 %v6146_v29, %v754_v46 }
 0x1b9   :  { %v788_v59 = vrot.slane %v787_v39, 2  ;;  %v6186_v61 = vsub.f32 %v6148_v30, %v756_v47  ;;  %v782_v62 = vrot.slane %v781_v48, 2  ;;  %v6189_v0 = vsub.f32 %v6150_v31, %v755_v50 }
 0x1ba   :  { %v794_v63 = vrot.slane %v793_v49, 2  ;;  %v6192_v1 = vsub.f32 %v6152_v32, %v757_v54  ;;  %v777_v2 = vadd.f32 %v776_v58, %v775_v38  ;;  %v770_v9 = vmul.f32 %v6183_v60, %v6183_v60 }
 0x1bb   :  { %v789_v3 = vadd.f32 %v788_v59, %v787_v39  ;;  %v772_v29 = vmul.f32 %v6186_v61, %v6186_v61  ;;  %v783_v10 = vadd.f32 %v782_v62, %v781_v48  ;;  %v771_v30 = vmul.f32 %v6189_v0, %v6189_v0 }
 0x1bc   :  { %v795_v11 = vadd.f32 %v794_v63, %v793_v49  ;;  %v773_v31 = vmul.f32 %v6192_v1, %v6192_v1  ;;  %v778_v19 = vrot.slane %v777_v2, 1  ;;  %v798_v32 = vrot.slane %v770_v9, 4 }
 0x1bd   :  { %v790_v20 = vrot.slane %v789_v3, 1  ;;  %v810_v15 = vrot.slane %v772_v29, 4  ;;  %v784_v23 = vrot.slane %v783_v10, 1  ;;  %v804_v42 = vrot.slane %v771_v30, 4 }
 0x1be   :  { %v796_v24 = vrot.slane %v795_v11, 1  ;;  %v816_v25 = vrot.slane %v773_v31, 4  ;;  %v779_v26 = vadd.f32 %v778_v19, %v777_v2  ;;  %v799_v44 = vadd.f32 %v798_v32, %v770_v9 }
 0x1bf   :  { %v791_v43 = vadd.f32 %v790_v20, %v789_v3  ;;  %v811_v5 = vadd.f32 %v810_v15, %v772_v29  ;;  %v785_v6 = vadd.f32 %v784_v23, %v783_v10  ;;  %v805_v27 = vadd.f32 %v804_v42, %v771_v30 }
 0x1c0   :  { %v797_v45 = vadd.f32 %v796_v24, %v795_v11  ;;  %v817_v28 = vadd.f32 %v816_v25, %v773_v31  ;;  %v822_v7 = vmul.f32 0.125, %v779_v26  ;;  %v800_v33 = vrot.slane %v799_v44, 2 }
 0x1c1   :  { %v824_v8 = vmul.f32 0.125, %v791_v43  ;;  %v812_v34 = vrot.slane %v811_v5, 2  ;;  %v823_v35 = vmul.f32 0.125, %v785_v6  ;;  %v806_v39 = vrot.slane %v805_v27, 2 }
 0x1c2   :  { %v825_v38 = vmul.f32 0.125, %v797_v45  ;;  %v818_v46 = vrot.slane %v817_v28, 2  ;;  %v831_v47 = vadd.f32 1e-05, %v822_v7  ;;  %v801_v49 = vadd.f32 %v800_v33, %v799_v44 }
 0x1c3   :  { %v833_v48 = vadd.f32 1e-05, %v824_v8  ;;  %v813_v50 = vadd.f32 %v812_v34, %v811_v5  ;;  %v832_v54 = vadd.f32 1e-05, %v823_v35  ;;  %v807_v59 = vadd.f32 %v806_v39, %v805_v27 }
 0x1c4   :  { %v834_v58 = vadd.f32 1e-05, %v825_v38  ;;  %v819_v62 = vadd.f32 %v818_v46, %v817_v28  ;;  %5594 = vrsqrt.f32 %v831_v47  ;;  %v802_v63 = vrot.slane %v801_v49, 1 }
 0x1c5   :  { %v814_v2 = vrot.slane %v813_v50, 1  ;;  %5596 = vrsqrt.f32 %v833_v48  ;;  %v808_v3 = vrot.slane %v807_v59, 1  ;;  %v5855_v11 = vmov 1966171168  }
 0x1c6   :  { %v820_v9 = vrot.slane %v819_v62, 1  ;;  %5598 = vrsqrt.f32 %v832_v54  ;;  %v803_v29 = vadd.f32 %v802_v63, %v801_v49  ;;  %v860_v30 = vunpack.c.l.s4 %v5855_v11  ;;  %v6203_v63 = vld [vmem:[#allocation14] sm:$0xff] }
 0x1c7   :  { %v815_v10 = vadd.f32 %v814_v2, %v813_v50  ;;  %5600 = vrsqrt.f32 %v834_v58  ;;  %v809_v31 = vadd.f32 %v808_v3, %v807_v59  ;;  %v964_v3 = vrot.slane %v6203_v63, %v6097_v16 }
 0x1c8   :  { %v821_v19 = vadd.f32 %v820_v9, %v819_v62  ;;  %v826_v20 = vmul.f32 0.125, %v803_v29  ;;  %v861_v25 = vunpack.c.0.s8 %v860_v30  ;;  %v960_v9 = vrot.slane %v6203_v63, %v6089_v13 }
 0x1c9   :  { %v828_v32 = vmul.f32 0.125, %v815_v10  ;;  %v827_v15 = vmul.f32 0.125, %v809_v31  ;;  %v972_v29 = vrot.slane %v6203_v63, %v6100_v17 }
 0x1ca   :  { %v829_v23 = vmul.f32 0.125, %v821_v19  ;;  %v835_v24 = vadd.f32 1e-05, %v826_v20  ;;  %v864_v6 = vsub.s32 %v861_v25, %v6086_v4  ;;  %v830_v4 = vld [vmem:[#allocation12] sm:$0xff]  ;;  %v968_v20 = vrot.slane %v6203_v63, %v6092_v14 }
 0x1cb   :  { %v837_v42 = vadd.f32 1e-05, %v828_v32  ;;  %v836_v26 = vadd.f32 1e-05, %v827_v15  ;;  %v980_v15 = vrot.slane %v6203_v63, %v6117_v40 }
 0x1cc   :  { %v838_v43 = vadd.f32 1e-05, %v829_v23  ;;  %5602 = vrsqrt.f32 %v835_v24 }
 0x1cd   :  { %5604 = vrsqrt.f32 %v837_v42 }
 0x1ce   :  { %v5595_v44 = vpop.eup %5594  ;;  %5606 = vrsqrt.f32 %v836_v26 }
 0x1cf   :  { %v5597_v5 = vpop.eup %5596  ;;  %5608 = vrsqrt.f32 %v838_v43 }
 0x1d0   :  { %v5599_v45 = vpop.eup %5598 }
 0x1d1   :  { %v5601_v27 = vpop.eup %5600  ;;  %v855_v28 = vcombine.low %v5595_v44, %v5599_v45  ;;  %v988_v44 = vrot.slane %v6203_v63, %v6120_v41  ;;  %v1183_v45 = vld [vmem:[#allocation15 + $0x440] sm:$0xff] }
 0x1d2   :  { %v856_v7 = vcombine.low %v5597_v5, %v5601_v27 }
 0x1d3   :  { %v865_v8 = vrot.slane %v855_v28, %v864_v6  ;;  %v1187_v28 = vld [vmem:[#allocation15 + $0x460] sm:$0xff] }
 0x1d4   :  { %v872_v33 = vrot.slane %v856_v7, %v864_v6  ;;  %v1184_v7 = vld [vmem:[#allocation15 + $0x448] sm:$0xff] }
 0x1d6   :  { %v5603_v34 = vpop.eup %5602  ;;  %v887_v35 = vcombine.low %v865_v8, %v872_v33  ;;  %v976_v33 = vrot.slane %v6203_v63, %v6111_v36 }
 0x1d7   :  { %v5605_v38 = vpop.eup %5604 }
 0x1d8   :  { %v5607_v39 = vpop.eup %5606  ;;  %v895_v58 = vrot.slane %v887_v35, %v864_v6  ;;  %v984_v35 = vrot.slane %v6203_v63, %v6114_v37 }
 0x1d9   :  { %v5609_v46 = vpop.eup %5608  ;;  %v857_v47 = vcombine.low %v5603_v34, %v5607_v39 }
 0x1da   :  { %v858_v48 = vcombine.low %v5605_v38, %v5609_v46  ;;  %v5120_v38 = vcombine.high %v1183_v45, %v1187_v28  ;;  %v1195_v46 = vld [vmem:[#allocation15 + $0x4a0] sm:$0xff] }
 0x1db   :  { %v879_v49 = vrot.slane %v857_v47, %v864_v6  ;;  %v1192_v47 = vld [vmem:[#allocation15 + $0x488] sm:$0xff] }
 0x1dc   :  { %v886_v50 = vrot.slane %v858_v48, %v864_v6  ;;  %v1196_v48 = vld [vmem:[#allocation15 + $0x4a8] sm:$0xff] }
 0x1dd   :  { %v5130_v63 = vcombine.high %v1192_v47, %v1196_v48 }
 0x1de   :  { %v888_v54 = vcombine.low %v879_v49, %v886_v50 }
 0x1e0   :  { %v902_v59 = vrot.slane %v888_v54, %v864_v6 }
 0x1e2   :  { %v903_v62 = vcombine.low %v895_v58, %v902_v59  ;;  %v5119_v58 = vcombine.low %v1183_v45, %v1187_v28  ;;  %v1228_v45 = vld [vmem:[#allocation15 + $0x5a8] sm:$0xff] }
 0x1e4   :  { %v905_v2 = vmul.f32 %v903_v62, %v830_v4 }
 0x1e6   :  { %v938_v10 = vrot.slane %v905_v2, %v6120_v41  ;;  %v914_v11 = vrot.slane %v905_v2, %v6097_v16  ;;  %v910_v30 = vrot.slane %v905_v2, %v6089_v13  ;;  %v922_v31 = vrot.slane %v905_v2, %v6100_v17 }
 0x1e7   :  { %v918_v19 = vrot.slane %v905_v2, %v6092_v14  ;;  %v930_v32 = vrot.slane %v905_v2, %v6117_v40  ;;  %v934_v49 = vrot.slane %v905_v2, %v6114_v37 }
 0x1e8   :  { %v954_v23 = vmul.f32 %v938_v10, %v6192_v1  ;;  %v948_v24 = vmul.f32 %v914_v11, %v6169_v21  ;;  %v947_v42 = vmul.f32 %v910_v30, %v6163_v12  ;;  %v950_v25 = vmul.f32 %v922_v31, %v6172_v22  ;;  %v1188_v1 = vld [vmem:[#allocation15 + $0x468] sm:$0xff] }
 0x1e9   :  { %v949_v26 = vmul.f32 %v918_v19, %v6166_v18  ;;  %v952_v43 = vmul.f32 %v930_v32, %v6189_v0  ;;  %v1191_v18 = vld [vmem:[#allocation15 + $0x480] sm:$0xff]  ;;  %v926_v0 = vrot.slane %v905_v2, %v6111_v36  ;;  %v5122_v39 = vcombine.high %v1184_v7, %v1188_v1  ;;  %v1208_v10 = vld [vmem:[#allocation15 + $0x508] sm:$0xff] }
 0x1ea   :  { %v998_v5 = vadd.f32 %v964_v3, %v948_v24  ;;  %v997_v6 = vadd.f32 %v960_v9, %v947_v42  ;;  %v1000_v27 = vadd.f32 %v972_v29, %v950_v25  ;;  %v6240_v34 = vadd.f32 %v988_v44, %v954_v23  ;;  %v1199_v2 = vld [vmem:[#allocation15 + $0x4c0] sm:$0xff]  ;;  %v1212_v11 = vld [vmem:[#allocation15 + $0x528] sm:$0xff] }
 0x1eb   :  { %v6229_v8 = vadd.f32 %v968_v20, %v949_v26  ;;  %v6231_v21 = vadd.f32 %v980_v15, %v952_v43  ;;  %v951_v54 = vmul.f32 %v926_v0, %v6183_v60  ;;  %v5121_v59 = vcombine.low %v1184_v7, %v1188_v1  ;;  %v1207_v9 = vld [vmem:[#allocation15 + $0x500] sm:$0xff]  ;;  %v1216_v23 = vld [vmem:[#allocation15 + $0x548] sm:$0xff] }
 0x1ec   :  { %v6233_v12 = vpack.c.bf16 %v998_v5, %v998_v5  ;;  %v6235_v22 = vpack.c.bf16 %v997_v6, %v997_v6  ;;  %v6249_v50 = vpack.c.bf16 %v1000_v27, %v1000_v27  ;;  %v953_v4 = vmul.f32 %v934_v49, %v6186_v61  ;;  %v1211_v29 = vld [vmem:[#allocation15 + $0x520] sm:$0xff]  ;;  %v1220_v24 = vld [vmem:[#allocation15 + $0x568] sm:$0xff] }
 0x1ed   :  { %v5128_v62 = vcombine.high %v1191_v18, %v1195_v46  ;;  %v6261_v60 = vadd.f32 %v976_v33, %v951_v54  ;;  %v5127_v55 = vcombine.low %v1191_v18, %v1195_v46  ;;  %v5136_v61 = vcombine.high %v1199_v2, %v1203_v51  ;;  %v1215_v32 = vld [vmem:[#allocation15 + $0x540] sm:$0xff]  ;;  %v1224_v6 = vld [vmem:[#allocation15 + $0x588] sm:$0xff] }
 0x1ee   :  { %4221 = vmatprep.mubr.bf16.mxu0 %v6233_v12  ;;  %4385 = vmatprep.mubr.bf16.mxu1 %v6233_v12  ;;  %v6263_v53 = vadd.f32 %v984_v35, %v953_v4  ;;  %v5135_v30 = vcombine.low %v1199_v2, %v1203_v51  ;;  %v5144_v19 = vcombine.high %v1207_v9, %v1211_v29  ;;  %v1219_v15 = vld [vmem:[#allocation15 + $0x560] sm:$0xff]  ;;  %v1232_v33 = vld [vmem:[#allocation15 + $0x5c8] sm:$0xff] }
 0x1ef   :  { %4222 = vmatmul.mubr.bf16.vlgmr.msra.gmra.mrb[16].mxu0 %v6235_v22  ;;  %4386 = vmatmul.mubr.bf16.vlgmr.msra.gmra.mrb[16].mxu1 %v6235_v22  ;;  %v5146_v20 = vcombine.high %v1208_v10, %v1212_v11  ;;  %v5143_v42 = vcombine.low %v1207_v9, %v1211_v29  ;;  %v5145_v25 = vcombine.low %v1208_v10, %v1212_v11  ;;  %v1223_v44 = vld [vmem:[#allocation15 + $0x580] sm:$0xff]  ;;  %v1236_v35 = vld [vmem:[#allocation15 + $0x5e8] sm:$0xff] }
 0x1f0   :  { %4231 = vmatpush1.bf16.msra.mxu0 %v5111_v56  ;;  %4395 = vmatpush1.bf16.msra.mxu1 %v5113_v57  ;;  %v1204_v56 = vld [vmem:[#allocation15 + $0x4e8] sm:$0xff]  ;;  %v5129_v57 = vcombine.low %v1192_v47, %v1196_v48  ;;  %v5152_v26 = vcombine.high %v1215_v32, %v1219_v15  ;;  %v5154_v43 = vcombine.high %v1216_v23, %v1220_v24  ;;  %v1227_v5 = vld [vmem:[#allocation15 + $0x5a0] sm:$0xff] }
 0x1f1   :  { %4262 = vmatprep.mubr.bf16.mxu0 %v6249_v50  ;;  %4426 = vmatprep.mubr.bf16.mxu1 %v6249_v50  ;;  %v5138_v3 = vcombine.high %v1200_v52, %v1204_v56  ;;  %v5137_v31 = vcombine.low %v1200_v52, %v1204_v56  ;;  %v5151_v27 = vcombine.low %v1215_v32, %v1219_v15  ;;  %v1231_v18 = vld [vmem:[#allocation15 + $0x5c0] sm:$0xff]  ;;  %v1240_v54 = vld [vmem:[#allocation15 + $0x608] sm:$0xff] }
 0x1f2   :  { %4232 = vmatprep.subr.bf16.mxu0 %v5120_v38  ;;  %4396 = vmatprep.subr.bf16.mxu1 %v5122_v39  ;;  %v5153_v28 = vcombine.low %v1216_v23, %v1220_v24  ;;  %v5160_v7 = vcombine.high %v1223_v44, %v1227_v5  ;;  %v5162_v1 = vcombine.high %v1224_v6, %v1228_v45  ;;  %v1235_v0 = vld [vmem:[#allocation15 + $0x5e0] sm:$0xff]  ;;  %v1248_v52 = vld [vmem:[#allocation15 + $0x648] sm:$0xff] }
 0x1f3   :  { %v5159_v38 = vcombine.low %v1223_v44, %v1227_v5  ;;  %v5161_v39 = vcombine.low %v1224_v6, %v1228_v45  ;;  %v5168_v46 = vcombine.high %v1231_v18, %v1235_v0  ;;  %v5170_v47 = vcombine.high %v1232_v33, %v1236_v35  ;;  %v1239_v48 = vld [vmem:[#allocation15 + $0x600] sm:$0xff]  ;;  %v1252_v56 = vld [vmem:[#allocation15 + $0x668] sm:$0xff] }
 0x1f4   :  { %4233 = vmatpush1.bf16.msra.mxu0 %v5119_v58  ;;  %4397 = vmatpush1.bf16.msra.mxu1 %v5121_v59  ;;  %v1243_v49 = vld [vmem:[#allocation15 + $0x620] sm:$0xff]  ;;  %v1244_v58 = vld [vmem:[#allocation15 + $0x628] sm:$0xff]  ;;  %v5167_v59 = vcombine.low %v1231_v18, %v1235_v0  ;;  %v5169_v4 = vcombine.low %v1232_v33, %v1236_v35 }
 0x1f5   :  { %4234 = vmatprep.subr.bf16.mxu0 %v5128_v62  ;;  %4398 = vmatprep.subr.bf16.mxu1 %v5130_v63  ;;  %v5176_v62 = vcombine.high %v1239_v48, %v1243_v49  ;;  %v5178_v63 = vcombine.high %v1240_v54, %v1244_v58  ;;  %v1247_v2 = vld [vmem:[#allocation15 + $0x640] sm:$0xff]  ;;  %v1256_v10 = vld [vmem:[#allocation15 + $0x688] sm:$0xff] }
 0x1f6   :  { %v1251_v51 = vld [vmem:[#allocation15 + $0x660] sm:$0xff]  ;;  %v1260_v11 = vld [vmem:[#allocation15 + $0x6a8] sm:$0xff] }
 0x1f7   :  { %v1255_v9 = vld [vmem:[#allocation15 + $0x680] sm:$0xff]  ;;  %v1264_v23 = vld [vmem:[#allocation15 + $0x6c8] sm:$0xff] }
 0x1f8   :  { %4235 = vmatpush1.bf16.msra.mxu0 %v5127_v55  ;;  %4399 = vmatpush1.bf16.msra.mxu1 %v5129_v57  ;;  %v5175_v55 = vcombine.low %v1239_v48, %v1243_v49  ;;  %v5177_v57 = vcombine.low %v1240_v54, %v1244_v58  ;;  %v1259_v29 = vld [vmem:[#allocation15 + $0x6a0] sm:$0xff]  ;;  %v1268_v24 = vld [vmem:[#allocation15 + $0x6e8] sm:$0xff] }
 0x1f9   :  { %4236 = vmatprep.subr.bf16.mxu0 %v5136_v61  ;;  %4400 = vmatprep.subr.bf16.mxu1 %v5138_v3  ;;  %v5184_v61 = vcombine.high %v1247_v2, %v1251_v51  ;;  %v5186_v3 = vcombine.high %v1248_v52, %v1252_v56  ;;  %v1263_v32 = vld [vmem:[#allocation15 + $0x6c0] sm:$0xff]  ;;  %v1272_v6 = vld [vmem:[#allocation15 + $0x708] sm:$0xff] }
 0x1fa   :  { %v1267_v15 = vld [vmem:[#allocation15 + $0x6e0] sm:$0xff]  ;;  %v1276_v45 = vld [vmem:[#allocation15 + $0x728] sm:$0xff] }
 0x1fb   :  { %v1271_v44 = vld [vmem:[#allocation15 + $0x700] sm:$0xff]  ;;  %v1280_v33 = vld [vmem:[#allocation15 + $0x748] sm:$0xff] }
 0x1fc   :  { %4237 = vmatpush1.bf16.msra.mxu0 %v5135_v30  ;;  %4401 = vmatpush1.bf16.msra.mxu1 %v5137_v31  ;;  %v5183_v30 = vcombine.low %v1247_v2, %v1251_v51  ;;  %v5185_v31 = vcombine.low %v1248_v52, %v1252_v56  ;;  %v1275_v5 = vld [vmem:[#allocation15 + $0x720] sm:$0xff]  ;;  %v1284_v35 = vld [vmem:[#allocation15 + $0x768] sm:$0xff] }
 0x1fd   :  { %4238 = vmatprep.subr.bf16.mxu0 %v5144_v19  ;;  %4402 = vmatprep.subr.bf16.mxu1 %v5146_v20  ;;  %v5192_v19 = vcombine.high %v1255_v9, %v1259_v29  ;;  %v5194_v20 = vcombine.high %v1256_v10, %v1260_v11  ;;  %v1279_v18 = vld [vmem:[#allocation15 + $0x740] sm:$0xff]  ;;  %v1288_v54 = vld [vmem:[#allocation15 + $0x788] sm:$0xff] }
 0x1fe   :  { %v1283_v0 = vld [vmem:[#allocation15 + $0x760] sm:$0xff]  ;;  %v1292_v58 = vld [vmem:[#allocation15 + $0x7a8] sm:$0xff] }
 0x1ff   :  { %v1287_v48 = vld [vmem:[#allocation15 + $0x780] sm:$0xff]  ;;  %v1296_v52 = vld [vmem:[#allocation15 + $0x7c8] sm:$0xff] }
 0x200   :  { %4239 = vmatpush1.bf16.msra.mxu0 %v5143_v42  ;;  %4403 = vmatpush1.bf16.msra.mxu1 %v5145_v25  ;;  %v5191_v42 = vcombine.low %v1255_v9, %v1259_v29  ;;  %v5193_v25 = vcombine.low %v1256_v10, %v1260_v11  ;;  %v1291_v49 = vld [vmem:[#allocation15 + $0x7a0] sm:$0xff]  ;;  %v1300_v56 = vld [vmem:[#allocation15 + $0x7e8] sm:$0xff] }
 0x201   :  { %4240 = vmatprep.subr.bf16.mxu0 %v5152_v26  ;;  %4404 = vmatprep.subr.bf16.mxu1 %v5154_v43  ;;  %v5200_v26 = vcombine.high %v1263_v32, %v1267_v15  ;;  %v5202_v43 = vcombine.high %v1264_v23, %v1268_v24  ;;  %v1295_v2 = vld [vmem:[#allocation15 + $0x7c0] sm:$0xff]  ;;  %v1304_v10 = vld [vmem:[#allocation15 + $0x808] sm:$0xff] }
 0x202   :  { %v1299_v51 = vld [vmem:[#allocation15 + $0x7e0] sm:$0xff]  ;;  %v1308_v11 = vld [vmem:[#allocation15 + $0x828] sm:$0xff] }
 0x203   :  { %v1303_v9 = vld [vmem:[#allocation15 + $0x800] sm:$0xff] }
 0x204   :  { %4241 = vmatpush1.bf16.msra.mxu0 %v5151_v27  ;;  %4405 = vmatpush1.bf16.msra.mxu1 %v5153_v28  ;;  %v5199_v27 = vcombine.low %v1263_v32, %v1267_v15  ;;  %v5201_v28 = vcombine.low %v1264_v23, %v1268_v24  ;;  %v1307_v29 = vld [vmem:[#allocation15 + $0x820] sm:$0xff]  ;;  %v1312_v23 = vld [vmem:[#allocation15 + $0x848] sm:$0xff] }
 0x205   :  { %4242 = vmatprep.subr.bf16.mxu0 %v5160_v7  ;;  %4406 = vmatprep.subr.bf16.mxu1 %v5162_v1  ;;  %v5208_v7 = vcombine.high %v1271_v44, %v1275_v5  ;;  %v5210_v1 = vcombine.high %v1272_v6, %v1276_v45  ;;  %v1311_v32 = vld [vmem:[#allocation15 + $0x840] sm:$0xff]  ;;  %v1316_v24 = vld [vmem:[#allocation15 + $0x868] sm:$0xff] }
 0x206   :  { %v1315_v15 = vld [vmem:[#allocation15 + $0x860] sm:$0xff] }
 0x208   :  { %4243 = vmatpush1.bf16.msra.mxu0 %v5159_v38  ;;  %4407 = vmatpush1.bf16.msra.mxu1 %v5161_v39  ;;  %v5207_v38 = vcombine.low %v1271_v44, %v1275_v5  ;;  %v5209_v39 = vcombine.low %v1272_v6, %v1276_v45  ;;  %v5248_v44 = vcombine.high %v1311_v32, %v1315_v15  ;;  %v1319_v6 = vld [vmem:[#allocation15 + $0x880] sm:$0xff] }
 0x209   :  { %4244 = vmatprep.subr.bf16.mxu0 %v5168_v46  ;;  %4408 = vmatprep.subr.bf16.mxu1 %v5170_v47  ;;  %v5216_v46 = vcombine.high %v1279_v18, %v1283_v0  ;;  %v5218_v47 = vcombine.high %v1280_v33, %v1284_v35  ;;  %v5250_v5 = vcombine.high %v1312_v23, %v1316_v24  ;;  %v1323_v45 = vld [vmem:[#allocation15 + $0x8a0] sm:$0xff] }
 0x20c   :  { %4245 = vmatpush1.bf16.msra.mxu0 %v5167_v59  ;;  %4409 = vmatpush1.bf16.msra.mxu1 %v5169_v4  ;;  %v5215_v59 = vcombine.low %v1279_v18, %v1283_v0  ;;  %v5217_v4 = vcombine.low %v1280_v33, %v1284_v35  ;;  %v1327_v18 = vld [vmem:[#allocation15 + $0x8c0] sm:$0xff]  ;;  %v1328_v33 = vld [vmem:[#allocation15 + $0x8c8] sm:$0xff] }
 0x20d   :  { %4246 = vmatprep.subr.bf16.mxu0 %v5176_v62  ;;  %4410 = vmatprep.subr.bf16.mxu1 %v5178_v63  ;;  %v5224_v62 = vcombine.high %v1287_v48, %v1291_v49  ;;  %v5226_v63 = vcombine.high %v1288_v54, %v1292_v58  ;;  %v1331_v0 = vld [vmem:[#allocation15 + $0x8e0] sm:$0xff]  ;;  %v1332_v35 = vld [vmem:[#allocation15 + $0x8e8] sm:$0xff] }
 0x210   :  { %4247 = vmatpush1.bf16.msra.mxu0 %v5175_v55  ;;  %4411 = vmatpush1.bf16.msra.mxu1 %v5177_v57  ;;  %v5223_v55 = vcombine.low %v1287_v48, %v1291_v49  ;;  %v5225_v57 = vcombine.low %v1288_v54, %v1292_v58  ;;  %v1335_v48 = vld [vmem:[#allocation15 + $0x900] sm:$0xff]  ;;  %v1336_v54 = vld [vmem:[#allocation15 + $0x908] sm:$0xff] }
 0x211   :  { %4248 = vmatprep.subr.bf16.mxu0 %v5184_v61  ;;  %4412 = vmatprep.subr.bf16.mxu1 %v5186_v3  ;;  %v5232_v61 = vcombine.high %v1295_v2, %v1299_v51  ;;  %v5234_v3 = vcombine.high %v1296_v52, %v1300_v56  ;;  %v1339_v49 = vld [vmem:[#allocation15 + $0x920] sm:$0xff]  ;;  %v1340_v58 = vld [vmem:[#allocation15 + $0x928] sm:$0xff] }
 0x214   :  { %4249 = vmatpush1.bf16.msra.mxu0 %v5183_v30  ;;  %4413 = vmatpush1.bf16.msra.mxu1 %v5185_v31  ;;  %v5231_v30 = vcombine.low %v1295_v2, %v1299_v51  ;;  %v5233_v31 = vcombine.low %v1296_v52, %v1300_v56  ;;  %v1343_v2 = vld [vmem:[#allocation15 + $0x940] sm:$0xff]  ;;  %v1344_v52 = vld [vmem:[#allocation15 + $0x948] sm:$0xff] }
 0x215   :  { %4250 = vmatprep.subr.bf16.mxu0 %v5192_v19  ;;  %4414 = vmatprep.subr.bf16.mxu1 %v5194_v20  ;;  %v5240_v19 = vcombine.high %v1303_v9, %v1307_v29  ;;  %v5242_v20 = vcombine.high %v1304_v10, %v1308_v11  ;;  %v1347_v51 = vld [vmem:[#allocation15 + $0x960] sm:$0xff]  ;;  %v1348_v56 = vld [vmem:[#allocation15 + $0x968] sm:$0xff] }
 0x218   :  { %4251 = vmatpush1.bf16.msra.mxu0 %v5191_v42  ;;  %4415 = vmatpush1.bf16.msra.mxu1 %v5193_v25  ;;  %v5239_v42 = vcombine.low %v1303_v9, %v1307_v29  ;;  %v6267_v25 = vpack.c.bf16 %v6229_v8, %v6229_v8  ;;  %v5247_v8 = vcombine.low %v1311_v32, %v1315_v15  ;;  %v1351_v9 = vld [vmem:[#allocation15 + $0x980] sm:$0xff] }
 0x219   :  { %4252 = vmatprep.subr.bf16.mxu0 %v5200_v26  ;;  %4416 = vmatprep.subr.bf16.mxu1 %v5202_v43  ;;  %v5241_v26 = vcombine.low %v1304_v10, %v1308_v11  ;;  %v6271_v43 = vpack.c.bf16 %v6231_v21, %v6231_v21  ;;  %v5256_v21 = vcombine.high %v1319_v6, %v1323_v45  ;;  %v1355_v29 = vld [vmem:[#allocation15 + $0x9a0] sm:$0xff]  ;;  %v1352_v10 = vld [vmem:[#allocation15 + $0x988] sm:$0xff] }
 0x21a   :  { %v1356_v11 = vld [vmem:[#allocation15 + $0x9a8] sm:$0xff]  ;;  %v1359_v32 = vld [vmem:[#allocation15 + $0x9c0] sm:$0xff] }
 0x21b   :  { %v1363_v15 = vld [vmem:[#allocation15 + $0x9e0] sm:$0xff] }
 0x21c   :  { %4253 = vmatpush1.bf16.msra.mxu0 %v5199_v27  ;;  %4417 = vmatpush1.bf16.msra.mxu1 %v5201_v28  ;;  %v1320_v27 = vld [vmem:[#allocation15 + $0x888] sm:$0xff] }
 0x21d   :  { %4254 = vmatprep.subr.bf16.mxu0 %v5208_v7  ;;  %4418 = vmatprep.subr.bf16.mxu1 %v5210_v1  ;;  %v1324_v28 = vld [vmem:[#allocation15 + $0x8a8] sm:$0xff]  ;;  %v5249_v7 = vcombine.low %v1312_v23, %v1316_v24 }
 0x21e   :  { %v5258_v1 = vcombine.high %v1320_v27, %v1324_v28  ;;  %v1360_v23 = vld [vmem:[#allocation15 + $0x9c8] sm:$0xff] }
 0x21f   :  { %v1364_v24 = vld [vmem:[#allocation15 + $0x9e8] sm:$0xff] }
 0x220   :  { %4255 = vmatpush1.bf16.msra.mxu0 %v5207_v38  ;;  %4419 = vmatpush1.bf16.msra.mxu1 %v5209_v39  ;;  %v5255_v38 = vcombine.low %v1319_v6, %v1323_v45  ;;  %v5257_v39 = vcombine.low %v1320_v27, %v1324_v28  ;;  %v1367_v6 = vld [vmem:[#allocation15 + $0xa00] sm:$0xff]  ;;  %v1368_v27 = vld [vmem:[#allocation15 + $0xa08] sm:$0xff] }
 0x221   :  { %4256 = vmatprep.subr.bf16.mxu0 %v5216_v46  ;;  %4420 = vmatprep.subr.bf16.mxu1 %v5218_v47  ;;  %v5264_v46 = vcombine.high %v1327_v18, %v1331_v0  ;;  %v5266_v47 = vcombine.high %v1328_v33, %v1332_v35  ;;  %v1371_v45 = vld [vmem:[#allocation15 + $0xa20] sm:$0xff]  ;;  %v1372_v28 = vld [vmem:[#allocation15 + $0xa28] sm:$0xff] }
 0x224   :  { %4257 = vmatpush1.bf16.msra.mxu0 %v5215_v59  ;;  %4421 = vmatpush1.bf16.msra.mxu1 %v5217_v4  ;;  %v5263_v59 = vcombine.low %v1327_v18, %v1331_v0  ;;  %v5265_v4 = vcombine.low %v1328_v33, %v1332_v35  ;;  %v1375_v18 = vld [vmem:[#allocation15 + $0xa40] sm:$0xff]  ;;  %v1376_v33 = vld [vmem:[#allocation15 + $0xa48] sm:$0xff] }
 0x225   :  { %4258 = vmatprep.subr.bf16.mxu0 %v5224_v62  ;;  %4422 = vmatprep.subr.bf16.mxu1 %v5226_v63  ;;  %v5272_v62 = vcombine.high %v1335_v48, %v1339_v49  ;;  %v5274_v63 = vcombine.high %v1336_v54, %v1340_v58  ;;  %v1379_v0 = vld [vmem:[#allocation15 + $0xa60] sm:$0xff]  ;;  %v1380_v35 = vld [vmem:[#allocation15 + $0xa68] sm:$0xff] }
 0x228   :  { %4259 = vmatpush1.bf16.msra.mxu0 %v5223_v55  ;;  %4423 = vmatpush1.bf16.msra.mxu1 %v5225_v57  ;;  %v5271_v55 = vcombine.low %v1335_v48, %v1339_v49  ;;  %v5273_v57 = vcombine.low %v1336_v54, %v1340_v58  ;;  %v1383_v48 = vld [vmem:[#allocation15 + $0xa80] sm:$0xff]  ;;  %v1384_v54 = vld [vmem:[#allocation15 + $0xa88] sm:$0xff] }
 0x229   :  { %4260 = vmatprep.subr.bf16.mxu0 %v5232_v61  ;;  %4424 = vmatprep.subr.bf16.mxu1 %v5234_v3  ;;  %v5280_v61 = vcombine.high %v1343_v2, %v1347_v51  ;;  %v5282_v3 = vcombine.high %v1344_v52, %v1348_v56  ;;  %v1387_v49 = vld [vmem:[#allocation15 + $0xaa0] sm:$0xff]  ;;  %v1388_v58 = vld [vmem:[#allocation15 + $0xaa8] sm:$0xff] }
 0x22c   :  { %4261 = vmatpush1.bf16.msra.mxu0 %v5231_v30  ;;  %4425 = vmatpush1.bf16.msra.mxu1 %v5233_v31  ;;  %v5279_v30 = vcombine.low %v1343_v2, %v1347_v51  ;;  %v5281_v31 = vcombine.low %v1344_v52, %v1348_v56  ;;  %v1391_v2 = vld [vmem:[#allocation15 + $0xac0] sm:$0xff]  ;;  %v1392_v52 = vld [vmem:[#allocation15 + $0xac8] sm:$0xff] }
 0x22d   :  { %4271 = vmatprep.subr.bf16.mxu0 %v5240_v19  ;;  %4435 = vmatprep.subr.bf16.mxu1 %v5242_v20  ;;  %v5288_v19 = vcombine.high %v1351_v9, %v1355_v29  ;;  %v5290_v20 = vcombine.high %v1352_v10, %v1356_v11  ;;  %v1395_v51 = vld [vmem:[#allocation15 + $0xae0] sm:$0xff]  ;;  %v1396_v56 = vld [vmem:[#allocation15 + $0xae8] sm:$0xff] }
 0x22f   :  { %4263 = vmatmul.mubr.bf16.vlgmr.msra.gmra.mrb[16].mxu0 %v6267_v25  ;;  %4427 = vmatmul.mubr.bf16.vlgmr.msra.gmra.mrb[16].mxu1 %v6267_v25 }
 0x230   :  { %4272 = vmatpush1.bf16.msra.mxu0 %v5239_v42  ;;  %4303 = vmatprep.mubr.bf16.mxu0 %v6271_v43  ;;  %v5287_v42 = vcombine.low %v1351_v9, %v1355_v29  ;;  %v1399_v9 = vld [vmem:[#allocation15 + $0xb00] sm:$0xff] }
 0x231   :  { %4436 = vmatpush1.bf16.msra.mxu1 %v5241_v26  ;;  %4467 = vmatprep.mubr.bf16.mxu1 %v6271_v43  ;;  %v5289_v26 = vcombine.low %v1352_v10, %v1356_v11  ;;  %v1403_v29 = vld [vmem:[#allocation15 + $0xb20] sm:$0xff]  ;;  %v1400_v10 = vld [vmem:[#allocation15 + $0xb08] sm:$0xff] }
 0x232   :  { %4273 = vmatprep.subr.bf16.mxu0 %v5248_v44  ;;  %4437 = vmatprep.subr.bf16.mxu1 %v5250_v5  ;;  %v5296_v44 = vcombine.high %v1359_v32, %v1363_v15  ;;  %v5298_v5 = vcombine.high %v1360_v23, %v1364_v24  ;;  %v1404_v11 = vld [vmem:[#allocation15 + $0xb28] sm:$0xff] }
 0x234   :  { %4274 = vmatpush1.bf16.msra.mxu0 %v5247_v8  ;;  %v5295_v8 = vcombine.low %v1359_v32, %v1363_v15  ;;  %v1407_v32 = vld [vmem:[#allocation15 + $0xb40] sm:$0xff] }
 0x235   :  { %4438 = vmatpush1.bf16.msra.mxu1 %v5249_v7  ;;  %4275 = vmatprep.subr.bf16.mxu0 %v5256_v21  ;;  %v5297_v7 = vcombine.low %v1360_v23, %v1364_v24  ;;  %v5304_v21 = vcombine.high %v1367_v6, %v1371_v45  ;;  %v1411_v15 = vld [vmem:[#allocation15 + $0xb60] sm:$0xff]  ;;  %v1408_v23 = vld [vmem:[#allocation15 + $0xb48] sm:$0xff] }
 0x236   :  { %4439 = vmatprep.subr.bf16.mxu1 %v5258_v1  ;;  %v5306_v1 = vcombine.high %v1368_v27, %v1372_v28  ;;  %v1412_v24 = vld [vmem:[#allocation15 + $0xb68] sm:$0xff] }
 0x238   :  { %4276 = vmatpush1.bf16.msra.mxu0 %v5255_v38  ;;  %v5303_v38 = vcombine.low %v1367_v6, %v1371_v45  ;;  %v1415_v6 = vld [vmem:[#allocation15 + $0xb80] sm:$0xff] }
 0x239   :  { %4440 = vmatpush1.bf16.msra.mxu1 %v5257_v39  ;;  %4277 = vmatprep.subr.bf16.mxu0 %v5264_v46  ;;  %v5305_v39 = vcombine.low %v1368_v27, %v1372_v28  ;;  %v5312_v46 = vcombine.high %v1375_v18, %v1379_v0  ;;  %v1419_v45 = vld [vmem:[#allocation15 + $0xba0] sm:$0xff]  ;;  %v1416_v27 = vld [vmem:[#allocation15 + $0xb88] sm:$0xff] }
 0x23a   :  { %4441 = vmatprep.subr.bf16.mxu1 %v5266_v47  ;;  %v5314_v47 = vcombine.high %v1376_v33, %v1380_v35  ;;  %v1420_v28 = vld [vmem:[#allocation15 + $0xba8] sm:$0xff] }
 0x23c   :  { %4278 = vmatpush1.bf16.msra.mxu0 %v5263_v59  ;;  %v5311_v59 = vcombine.low %v1375_v18, %v1379_v0  ;;  %v1423_v18 = vld [vmem:[#allocation15 + $0xbc0] sm:$0xff] }
 0x23d   :  { %4442 = vmatpush1.bf16.msra.mxu1 %v5265_v4  ;;  %4279 = vmatprep.subr.bf16.mxu0 %v5272_v62  ;;  %v5313_v4 = vcombine.low %v1376_v33, %v1380_v35  ;;  %v5320_v62 = vcombine.high %v1383_v48, %v1387_v49  ;;  %v1427_v0 = vld [vmem:[#allocation15 + $0xbe0] sm:$0xff]  ;;  %v1424_v33 = vld [vmem:[#allocation15 + $0xbc8] sm:$0xff] }
 0x23e   :  { %4443 = vmatprep.subr.bf16.mxu1 %v5274_v63  ;;  %v5322_v63 = vcombine.high %v1384_v54, %v1388_v58  ;;  %v1428_v35 = vld [vmem:[#allocation15 + $0xbe8] sm:$0xff] }
 0x240   :  { %4280 = vmatpush1.bf16.msra.mxu0 %v5271_v55  ;;  %v5319_v55 = vcombine.low %v1383_v48, %v1387_v49  ;;  %v1431_v48 = vld [vmem:[#allocation15 + $0xc00] sm:$0xff] }
 0x241   :  { %4444 = vmatpush1.bf16.msra.mxu1 %v5273_v57  ;;  %4281 = vmatprep.subr.bf16.mxu0 %v5280_v61  ;;  %v5321_v57 = vcombine.low %v1384_v54, %v1388_v58  ;;  %v5328_v61 = vcombine.high %v1391_v2, %v1395_v51  ;;  %v1435_v49 = vld [vmem:[#allocation15 + $0xc20] sm:$0xff]  ;;  %v1432_v54 = vld [vmem:[#allocation15 + $0xc08] sm:$0xff] }
 0x242   :  { %4445 = vmatprep.subr.bf16.mxu1 %v5282_v3  ;;  %v5330_v3 = vcombine.high %v1392_v52, %v1396_v56  ;;  %v1436_v58 = vld [vmem:[#allocation15 + $0xc28] sm:$0xff] }
 0x244   :  { %4282 = vmatpush1.bf16.msra.mxu0 %v5279_v30  ;;  %v5327_v30 = vcombine.low %v1391_v2, %v1395_v51  ;;  %v1439_v2 = vld [vmem:[#allocation15 + $0xc40] sm:$0xff] }
 0x245   :  { %4446 = vmatpush1.bf16.msra.mxu1 %v5281_v31  ;;  %4283 = vmatprep.subr.bf16.mxu0 %v5288_v19  ;;  %v5329_v31 = vcombine.low %v1392_v52, %v1396_v56  ;;  %v5336_v19 = vcombine.high %v1399_v9, %v1403_v29  ;;  %v1443_v51 = vld [vmem:[#allocation15 + $0xc60] sm:$0xff]  ;;  %v5367_v52 = vcombine.low %v1431_v48, %v1435_v49  ;;  %v1440_v56 = vld [vmem:[#allocation15 + $0xc48] sm:$0xff] }
 0x246   :  { %4447 = vmatprep.subr.bf16.mxu1 %v5290_v20  ;;  %v5338_v20 = vcombine.high %v1400_v10, %v1404_v11 }
 0x248   :  { %4284 = vmatpush1.bf16.msra.mxu0 %v5287_v42  ;;  %v5335_v42 = vcombine.low %v1399_v9, %v1403_v29  ;;  %v1447_v9 = vld [vmem:[#allocation15 + $0xc80] sm:$0xff] }
 0x249   :  { %4448 = vmatpush1.bf16.msra.mxu1 %v5289_v26  ;;  %4285 = vmatprep.subr.bf16.mxu0 %v5296_v44  ;;  %v5337_v26 = vcombine.low %v1400_v10, %v1404_v11  ;;  %v5344_v44 = vcombine.high %v1407_v32, %v1411_v15  ;;  %v1451_v29 = vld [vmem:[#allocation15 + $0xca0] sm:$0xff]  ;;  %v6284_v10 = vpack.c.bf16 %v6240_v34, %v6240_v34  ;;  %v1456_v34 = vld [vmem:[#allocation15 + $0xcc8] sm:$0xff] }
 0x24a   :  { %4449 = vmatprep.subr.bf16.mxu1 %v5298_v5  ;;  %v5346_v5 = vcombine.high %v1408_v23, %v1412_v24 }
 0x24c   :  { %4286 = vmatpush1.bf16.msra.mxu0 %v5295_v8  ;;  %v5343_v8 = vcombine.low %v1407_v32, %v1411_v15  ;;  %v1455_v15 = vld [vmem:[#allocation15 + $0xcc0] sm:$0xff] }
 0x24d   :  { %4450 = vmatpush1.bf16.msra.mxu1 %v5297_v7  ;;  %4287 = vmatprep.subr.bf16.mxu0 %v5304_v21  ;;  %v5345_v7 = vcombine.low %v1408_v23, %v1412_v24  ;;  %v5352_v21 = vcombine.high %v1415_v6, %v1419_v45  ;;  %v1459_v23 = vld [vmem:[#allocation15 + $0xce0] sm:$0xff]  ;;  %v1460_v24 = vld [vmem:[#allocation15 + $0xce8] sm:$0xff] }
 0x24e   :  { %4451 = vmatprep.subr.bf16.mxu1 %v5306_v1  ;;  %v5354_v1 = vcombine.high %v1416_v27, %v1420_v28 }
 0x250   :  { %4288 = vmatpush1.bf16.msra.mxu0 %v5303_v38  ;;  %v5351_v38 = vcombine.low %v1415_v6, %v1419_v45  ;;  %v1463_v6 = vld [vmem:[#allocation15 + $0xd00] sm:$0xff] }
 0x251   :  { %4452 = vmatpush1.bf16.msra.mxu1 %v5305_v39  ;;  %4289 = vmatprep.subr.bf16.mxu0 %v5312_v46  ;;  %v5353_v39 = vcombine.low %v1416_v27, %v1420_v28  ;;  %v5360_v46 = vcombine.high %v1423_v18, %v1427_v0  ;;  %v1467_v45 = vld [vmem:[#allocation15 + $0xd20] sm:$0xff]  ;;  %v1464_v27 = vld [vmem:[#allocation15 + $0xd08] sm:$0xff] }
 0x252   :  { %4453 = vmatprep.subr.bf16.mxu1 %v5314_v47  ;;  %v5362_v47 = vcombine.high %v1424_v33, %v1428_v35  ;;  %v1468_v28 = vld [vmem:[#allocation15 + $0xd28] sm:$0xff] }
 0x254   :  { %4290 = vmatpush1.bf16.msra.mxu0 %v5311_v59  ;;  %v5359_v59 = vcombine.low %v1423_v18, %v1427_v0  ;;  %v1471_v18 = vld [vmem:[#allocation15 + $0xd40] sm:$0xff] }
 0x255   :  { %4454 = vmatpush1.bf16.msra.mxu1 %v5313_v4  ;;  %4291 = vmatprep.subr.bf16.mxu0 %v5320_v62  ;;  %v5361_v4 = vcombine.low %v1424_v33, %v1428_v35  ;;  %v5368_v62 = vcombine.high %v1431_v48, %v1435_v49  ;;  %v1475_v0 = vld [vmem:[#allocation15 + $0xd60] sm:$0xff]  ;;  %v1472_v33 = vld [vmem:[#allocation15 + $0xd48] sm:$0xff] }
 0x256   :  { %4455 = vmatprep.subr.bf16.mxu1 %v5322_v63  ;;  %v5370_v63 = vcombine.high %v1432_v54, %v1436_v58  ;;  %v1476_v35 = vld [vmem:[#allocation15 + $0xd68] sm:$0xff]  ;;  %v1479_v48 = vld [vmem:[#allocation15 + $0xd80] sm:$0xff] }
 0x257   :  { %v1483_v49 = vld [vmem:[#allocation15 + $0xda0] sm:$0xff] }
 0x258   :  { %4292 = vmatpush1.bf16.msra.mxu0 %v5319_v55  ;;  %v1444_v55 = vld [vmem:[#allocation15 + $0xc68] sm:$0xff] }
 0x259   :  { %4456 = vmatpush1.bf16.msra.mxu1 %v5321_v57  ;;  %4293 = vmatprep.subr.bf16.mxu0 %v5328_v61  ;;  %v6279_v57 = vpack.c.bf16 %v6261_v60, %v6261_v60  ;;  %v5369_v61 = vcombine.low %v1432_v54, %v1436_v58  ;;  %v5378_v11 = vcombine.high %v1440_v56, %v1444_v55  ;;  %v1480_v54 = vld [vmem:[#allocation15 + $0xd88] sm:$0xff] }
 0x25a   :  { %4457 = vmatprep.subr.bf16.mxu1 %v5330_v3  ;;  %v5376_v3 = vcombine.high %v1439_v2, %v1443_v51  ;;  %v5375_v60 = vcombine.low %v1439_v2, %v1443_v51  ;;  %v1484_v58 = vld [vmem:[#allocation15 + $0xda8] sm:$0xff]  ;;  %v1487_v2 = vld [vmem:[#allocation15 + $0xdc0] sm:$0xff] }
 0x25b   :  { %v1491_v51 = vld [vmem:[#allocation15 + $0xde0] sm:$0xff] }
 0x25c   :  { %4294 = vmatpush1.bf16.msra.mxu0 %v5327_v30  ;;  %v1448_v30 = vld [vmem:[#allocation15 + $0xc88] sm:$0xff] }
 0x25d   :  { %4458 = vmatpush1.bf16.msra.mxu1 %v5329_v31  ;;  %4295 = vmatprep.subr.bf16.mxu0 %v5336_v19  ;;  %v1452_v31 = vld [vmem:[#allocation15 + $0xca8] sm:$0xff]  ;;  %v5377_v19 = vcombine.low %v1440_v56, %v1444_v55  ;;  %v5415_v55 = vcombine.low %v1479_v48, %v1483_v49 }
 0x25e   :  { %4459 = vmatprep.subr.bf16.mxu1 %v5338_v20  ;;  %v5384_v20 = vcombine.high %v1447_v9, %v1451_v29  ;;  %v5386_v32 = vcombine.high %v1448_v30, %v1452_v31  ;;  %v1492_v56 = vld [vmem:[#allocation15 + $0xde8] sm:$0xff] }
 0x260   :  { %4296 = vmatpush1.bf16.msra.mxu0 %v5335_v42  ;;  %v5383_v42 = vcombine.low %v1447_v9, %v1451_v29  ;;  %v1495_v29 = vld [vmem:[#allocation15 + $0xe00] sm:$0xff] }
 0x261   :  { %4460 = vmatpush1.bf16.msra.mxu1 %v5337_v26  ;;  %4297 = vmatprep.subr.bf16.mxu0 %v5344_v44  ;;  %v5385_v26 = vcombine.low %v1448_v30, %v1452_v31  ;;  %v5392_v44 = vcombine.high %v1455_v15, %v1459_v23  ;;  %v1496_v30 = vld [vmem:[#allocation15 + $0xe08] sm:$0xff] }
 0x262   :  { %4461 = vmatprep.subr.bf16.mxu1 %v5346_v5  ;;  %v5394_v5 = vcombine.high %v1456_v34, %v1460_v24  ;;  %v1500_v31 = vld [vmem:[#allocation15 + $0xe28] sm:$0xff] }
 0x264   :  { %4298 = vmatpush1.bf16.msra.mxu0 %v5343_v8  ;;  %v5391_v8 = vcombine.low %v1455_v15, %v1459_v23  ;;  %v1503_v15 = vld [vmem:[#allocation15 + $0xe40] sm:$0xff] }
 0x265   :  { %4462 = vmatpush1.bf16.msra.mxu1 %v5345_v7  ;;  %4299 = vmatprep.subr.bf16.mxu0 %v5352_v21  ;;  %v5393_v7 = vcombine.low %v1456_v34, %v1460_v24  ;;  %v5400_v21 = vcombine.high %v1463_v6, %v1467_v45  ;;  %v1507_v23 = vld [vmem:[#allocation15 + $0xe60] sm:$0xff]  ;;  %v1504_v34 = vld [vmem:[#allocation15 + $0xe48] sm:$0xff] }
 0x266   :  { %4463 = vmatprep.subr.bf16.mxu1 %v5354_v1  ;;  %v5402_v1 = vcombine.high %v1464_v27, %v1468_v28  ;;  %v1508_v24 = vld [vmem:[#allocation15 + $0xe68] sm:$0xff] }
 0x268   :  { %4300 = vmatpush1.bf16.msra.mxu0 %v5351_v38  ;;  %v5399_v38 = vcombine.low %v1463_v6, %v1467_v45  ;;  %v1511_v6 = vld [vmem:[#allocation15 + $0xe80] sm:$0xff] }
 0x269   :  { %4464 = vmatpush1.bf16.msra.mxu1 %v5353_v39  ;;  %4301 = vmatprep.subr.bf16.mxu0 %v5360_v46  ;;  %v5401_v39 = vcombine.low %v1464_v27, %v1468_v28  ;;  %v5408_v46 = vcombine.high %v1471_v18, %v1475_v0  ;;  %v1515_v45 = vld [vmem:[#allocation15 + $0xea0] sm:$0xff]  ;;  %v1512_v27 = vld [vmem:[#allocation15 + $0xe88] sm:$0xff] }
 0x26a   :  { %4465 = vmatprep.subr.bf16.mxu1 %v5362_v47  ;;  %v5410_v47 = vcombine.high %v1472_v33, %v1476_v35  ;;  %v1516_v28 = vld [vmem:[#allocation15 + $0xea8] sm:$0xff] }
 0x26c   :  { %4302 = vmatpush1.bf16.msra.mxu0 %v5359_v59  ;;  %v5407_v59 = vcombine.low %v1471_v18, %v1475_v0  ;;  %v1519_v18 = vld [vmem:[#allocation15 + $0xec0] sm:$0xff] }
 0x26d   :  { %4466 = vmatpush1.bf16.msra.mxu1 %v5361_v4  ;;  %4312 = vmatprep.subr.bf16.mxu0 %v5368_v62  ;;  %v5409_v4 = vcombine.low %v1472_v33, %v1476_v35  ;;  %v5416_v62 = vcombine.high %v1479_v48, %v1483_v49  ;;  %v1523_v0 = vld [vmem:[#allocation15 + $0xee0] sm:$0xff]  ;;  %v1520_v33 = vld [vmem:[#allocation15 + $0xec8] sm:$0xff] }
 0x26e   :  { %4476 = vmatprep.subr.bf16.mxu1 %v5370_v63  ;;  %v5418_v63 = vcombine.high %v1480_v54, %v1484_v58  ;;  %v1524_v35 = vld [vmem:[#allocation15 + $0xee8] sm:$0xff]  ;;  %v1527_v48 = vld [vmem:[#allocation15 + $0xf00] sm:$0xff] }
 0x26f   :  { %4304 = vmatmul.mubr.bf16.vlgmr.msra.gmra.mrb[16].mxu0 %v6279_v57  ;;  %v1531_v49 = vld [vmem:[#allocation15 + $0xf20] sm:$0xff] }
 0x270   :  { %4468 = vmatmul.mubr.bf16.vlgmr.msra.gmra.mrb[16].mxu1 %v6279_v57  ;;  %4313 = vmatpush1.bf16.msra.mxu0 %v5367_v52  ;;  %v1488_v52 = vld [vmem:[#allocation15 + $0xdc8] sm:$0xff] }
 0x271   :  { %4344 = vmatprep.mubr.bf16.mxu0 %v6284_v10  ;;  %4477 = vmatpush1.bf16.msra.mxu1 %v5369_v61  ;;  %v5417_v61 = vcombine.low %v1480_v54, %v1484_v58  ;;  %v5426_v9 = vcombine.high %v1488_v52, %v1492_v56  ;;  %v1528_v54 = vld [vmem:[#allocation15 + $0xf08] sm:$0xff] }
 0x272   :  { %4508 = vmatprep.mubr.bf16.mxu1 %v6284_v10  ;;  %4314 = vmatprep.subr.bf16.mxu0 %v5376_v3  ;;  %v5424_v3 = vcombine.high %v1487_v2, %v1491_v51  ;;  %v1532_v58 = vld [vmem:[#allocation15 + $0xf28] sm:$0xff] }
 0x273   :  { %4478 = vmatprep.subr.bf16.mxu1 %v5378_v11  ;;  %v1499_v11 = vld [vmem:[#allocation15 + $0xe20] sm:$0xff] }
 0x274   :  { %4315 = vmatpush1.bf16.msra.mxu0 %v5375_v60  ;;  %v5423_v60 = vcombine.low %v1487_v2, %v1491_v51  ;;  %v1535_v2 = vld [vmem:[#allocation15 + $0xf40] sm:$0xff] }
 0x275   :  { %4479 = vmatpush1.bf16.msra.mxu1 %v5377_v19  ;;  %4316 = vmatprep.subr.bf16.mxu0 %v5384_v20  ;;  %v5425_v19 = vcombine.low %v1488_v52, %v1492_v56  ;;  %v5432_v20 = vcombine.high %v1495_v29, %v1499_v11  ;;  %v1539_v51 = vld [vmem:[#allocation15 + $0xf60] sm:$0xff]  ;;  %v1536_v52 = vld [vmem:[#allocation15 + $0xf48] sm:$0xff] }
 0x276   :  { %4480 = vmatprep.subr.bf16.mxu1 %v5386_v32  ;;  %v5434_v32 = vcombine.high %v1496_v30, %v1500_v31  ;;  %v1540_v56 = vld [vmem:[#allocation15 + $0xf68] sm:$0xff] }
 0x278   :  { %4317 = vmatpush1.bf16.msra.mxu0 %v5383_v42  ;;  %v5431_v42 = vcombine.low %v1495_v29, %v1499_v11  ;;  %v1543_v29 = vld [vmem:[#allocation15 + $0xf80] sm:$0xff] }
 0x279   :  { %4481 = vmatpush1.bf16.msra.mxu1 %v5385_v26  ;;  %4318 = vmatprep.subr.bf16.mxu0 %v5392_v44  ;;  %v5433_v26 = vcombine.low %v1496_v30, %v1500_v31  ;;  %v5440_v44 = vcombine.high %v1503_v15, %v1507_v23  ;;  %v1547_v11 = vld [vmem:[#allocation15 + $0xfa0] sm:$0xff]  ;;  %v1544_v30 = vld [vmem:[#allocation15 + $0xf88] sm:$0xff] }
 0x27a   :  { %4482 = vmatprep.subr.bf16.mxu1 %v5394_v5  ;;  %v5442_v5 = vcombine.high %v1504_v34, %v1508_v24  ;;  %v1548_v31 = vld [vmem:[#allocation15 + $0xfa8] sm:$0xff] }
 0x27c   :  { %4319 = vmatpush1.bf16.msra.mxu0 %v5391_v8  ;;  %v5439_v8 = vcombine.low %v1503_v15, %v1507_v23  ;;  %v1551_v15 = vld [vmem:[#allocation15 + $0xfc0] sm:$0xff] }
 0x27d   :  { %4483 = vmatpush1.bf16.msra.mxu1 %v5393_v7  ;;  %4320 = vmatprep.subr.bf16.mxu0 %v5400_v21  ;;  %v5441_v7 = vcombine.low %v1504_v34, %v1508_v24  ;;  %v5448_v21 = vcombine.high %v1511_v6, %v1515_v45  ;;  %v1555_v23 = vld [vmem:[#allocation15 + $0xfe0] sm:$0xff]  ;;  %v1552_v34 = vld [vmem:[#allocation15 + $0xfc8] sm:$0xff] }
 0x27e   :  { %4484 = vmatprep.subr.bf16.mxu1 %v5402_v1  ;;  %v5450_v1 = vcombine.high %v1512_v27, %v1516_v28  ;;  %v1556_v24 = vld [vmem:[#allocation15 + $0xfe8] sm:$0xff] }
 0x280   :  { %4321 = vmatpush1.bf16.msra.mxu0 %v5399_v38  ;;  %v5447_v38 = vcombine.low %v1511_v6, %v1515_v45  ;;  %v1049_v6 = vld [vmem:[#allocation15 + $0x10] sm:$0xff] }
 0x281   :  { %4485 = vmatpush1.bf16.msra.mxu1 %v5401_v39  ;;  %4322 = vmatprep.subr.bf16.mxu0 %v5408_v46  ;;  %v5449_v39 = vcombine.low %v1512_v27, %v1516_v28  ;;  %v5456_v46 = vcombine.high %v1519_v18, %v1523_v0  ;;  %v1053_v45 = vld [vmem:[#allocation15 + $0x30] sm:$0xff]  ;;  %v1050_v27 = vld [vmem:[#allocation15 + $0x18] sm:$0xff] }
 0x282   :  { %4486 = vmatprep.subr.bf16.mxu1 %v5410_v47  ;;  %v5458_v47 = vcombine.high %v1520_v33, %v1524_v35  ;;  %v1054_v28 = vld [vmem:[#allocation15 + $0x38] sm:$0xff] }
 0x284   :  { %4323 = vmatpush1.bf16.msra.mxu0 %v5407_v59  ;;  %v5455_v59 = vcombine.low %v1519_v18, %v1523_v0  ;;  %v1057_v18 = vld [vmem:[#allocation15 + $0x50] sm:$0xff] }
 0x285   :  { %4487 = vmatpush1.bf16.msra.mxu1 %v5409_v4  ;;  %4324 = vmatprep.subr.bf16.mxu0 %v5416_v62  ;;  %v5457_v4 = vcombine.low %v1520_v33, %v1524_v35  ;;  %v5464_v62 = vcombine.high %v1527_v48, %v1531_v49  ;;  %v1061_v0 = vld [vmem:[#allocation15 + $0x70] sm:$0xff]  ;;  %v4987_v33 = vcombine.low %v1049_v6, %v1053_v45  ;;  %v1058_v35 = vld [vmem:[#allocation15 + $0x58] sm:$0xff] }
 0x286   :  { %4488 = vmatprep.subr.bf16.mxu1 %v5418_v63  ;;  %v5466_v63 = vcombine.high %v1528_v54, %v1532_v58 }
 0x288   :  { %4325 = vmatpush1.bf16.msra.mxu0 %v5415_v55  ;;  %v5463_v55 = vcombine.low %v1527_v48, %v1531_v49  ;;  %v1065_v48 = vld [vmem:[#allocation15 + $0x90] sm:$0xff] }
 0x289   :  { %4489 = vmatpush1.bf16.msra.mxu1 %v5417_v61  ;;  %4326 = vmatprep.subr.bf16.mxu0 %v5424_v3  ;;  %v5465_v61 = vcombine.low %v1528_v54, %v1532_v58  ;;  %v5472_v3 = vcombine.high %v1535_v2, %v1539_v51  ;;  %v1069_v49 = vld [vmem:[#allocation15 + $0xb0] sm:$0xff]  ;;  %v1066_v58 = vld [vmem:[#allocation15 + $0x98] sm:$0xff] }
 0x28a   :  { %4490 = vmatprep.subr.bf16.mxu1 %v5426_v9  ;;  %v5474_v9 = vcombine.high %v1536_v52, %v1540_v56 }
 0x28c   :  { %4327 = vmatpush1.bf16.msra.mxu0 %v5423_v60  ;;  %v5471_v60 = vcombine.low %v1535_v2, %v1539_v51  ;;  %v1073_v2 = vld [vmem:[#allocation15 + $0xd0] sm:$0xff] }
 0x28d   :  { %4491 = vmatpush1.bf16.msra.mxu1 %v5425_v19  ;;  %4328 = vmatprep.subr.bf16.mxu0 %v5432_v20  ;;  %v5473_v19 = vcombine.low %v1536_v52, %v1540_v56  ;;  %v5480_v20 = vcombine.high %v1543_v29, %v1547_v11  ;;  %v1077_v51 = vld [vmem:[#allocation15 + $0xf0] sm:$0xff]  ;;  %v1074_v52 = vld [vmem:[#allocation15 + $0xd8] sm:$0xff] }
 0x28e   :  { %4492 = vmatprep.subr.bf16.mxu1 %v5434_v32  ;;  %v5482_v32 = vcombine.high %v1544_v30, %v1548_v31  ;;  %v1078_v56 = vld [vmem:[#allocation15 + $0xf8] sm:$0xff] }
 0x290   :  { %4329 = vmatpush1.bf16.msra.mxu0 %v5431_v42  ;;  %v5479_v42 = vcombine.low %v1543_v29, %v1547_v11  ;;  %v1081_v29 = vld [vmem:[#allocation15 + $0x110] sm:$0xff] }
 0x291   :  { %4493 = vmatpush1.bf16.msra.mxu1 %v5433_v26  ;;  %4330 = vmatprep.subr.bf16.mxu0 %v5440_v44  ;;  %v5481_v26 = vcombine.low %v1544_v30, %v1548_v31  ;;  %v5488_v44 = vcombine.high %v1551_v15, %v1555_v23  ;;  %v1085_v11 = vld [vmem:[#allocation15 + $0x130] sm:$0xff]  ;;  %v1082_v30 = vld [vmem:[#allocation15 + $0x118] sm:$0xff] }
 0x292   :  { %4494 = vmatprep.subr.bf16.mxu1 %v5442_v5  ;;  %v5490_v5 = vcombine.high %v1552_v34, %v1556_v24  ;;  %v1086_v31 = vld [vmem:[#allocation15 + $0x138] sm:$0xff] }
 0x294   :  { %4331 = vmatpush1.bf16.msra.mxu0 %v5439_v8  ;;  %v5487_v8 = vcombine.low %v1551_v15, %v1555_v23  ;;  %v1093_v15 = vld [vmem:[#allocation15 + $0x170] sm:$0xff]  ;;  %v1090_v23 = vld [vmem:[#allocation15 + $0x158] sm:$0xff] }
 0x295   :  { %4495 = vmatpush1.bf16.msra.mxu1 %v5441_v7  ;;  %4332 = vmatprep.subr.bf16.mxu0 %v5448_v21  ;;  %v5489_v7 = vcombine.low %v1552_v34, %v1556_v24  ;;  %v4988_v21 = vcombine.high %v1049_v6, %v1053_v45  ;;  %v1094_v34 = vld [vmem:[#allocation15 + $0x178] sm:$0xff]  ;;  %v5019_v24 = vcombine.low %v1081_v29, %v1085_v11  ;;  %v1101_v6 = vld [vmem:[#allocation15 + $0x1b0] sm:$0xff] }
 0x296   :  { %4496 = vmatprep.subr.bf16.mxu1 %v5450_v1  ;;  %v4990_v1 = vcombine.high %v1050_v27, %v1054_v28  ;;  %v1098_v45 = vld [vmem:[#allocation15 + $0x198] sm:$0xff] }
 0x298   :  { %4333 = vmatpush1.bf16.msra.mxu0 %v5447_v38  ;;  %v1062_v38 = vld [vmem:[#allocation15 + $0x78] sm:$0xff] }
 0x299   :  { %4497 = vmatpush1.bf16.msra.mxu1 %v5449_v39  ;;  %4334 = vmatprep.subr.bf16.mxu0 %v5456_v46  ;;  %v6291_v39 = vpack.c.bf16 %v6263_v53, %v6263_v53  ;;  %v4989_v46 = vcombine.low %v1050_v27, %v1054_v28  ;;  %v4998_v54 = vcombine.high %v1058_v35, %v1062_v38  ;;  %v1102_v27 = vld [vmem:[#allocation15 + $0x1b8] sm:$0xff] }
 0x29a   :  { %4498 = vmatprep.subr.bf16.mxu1 %v5458_v47  ;;  %v4996_v47 = vcombine.high %v1057_v18, %v1061_v0  ;;  %v4997_v53 = vcombine.low %v1058_v35, %v1062_v38  ;;  %v5037_v38 = vcombine.low %v1098_v45, %v1102_v27 }
 0x29c   :  { %4335 = vmatpush1.bf16.msra.mxu0 %v5455_v59  ;;  %v1070_v59 = vld [vmem:[#allocation15 + $0xb8] sm:$0xff] }
 0x29d   :  { %4499 = vmatpush1.bf16.msra.mxu1 %v5457_v4  ;;  %4336 = vmatprep.subr.bf16.mxu0 %v5464_v62  ;;  %v4995_v4 = vcombine.low %v1057_v18, %v1061_v0  ;;  %v5004_v62 = vcombine.high %v1065_v48, %v1069_v49  ;;  %v1109_v18 = vld [vmem:[#allocation15 + $0x1f0] sm:$0xff]  ;;  %v1106_v0 = vld [vmem:[#allocation15 + $0x1d8] sm:$0xff] }
 0x29e   :  { %4500 = vmatprep.subr.bf16.mxu1 %v5466_v63  ;;  %v5006_v63 = vcombine.high %v1066_v58, %v1070_v59 }
 0x2a0   :  { %4337 = vmatpush1.bf16.msra.mxu0 %v5463_v55  ;;  %v5003_v55 = vcombine.low %v1065_v48, %v1069_v49  ;;  %v1113_v48 = vld [vmem:[#allocation15 + $0x210] sm:$0xff] }
 0x2a1   :  { %4501 = vmatpush1.bf16.msra.mxu1 %v5465_v61  ;;  %4338 = vmatprep.subr.bf16.mxu0 %v5472_v3  ;;  %v5005_v61 = vcombine.low %v1066_v58, %v1070_v59  ;;  %v5012_v3 = vcombine.high %v1073_v2, %v1077_v51  ;;  %v1117_v49 = vld [vmem:[#allocation15 + $0x230] sm:$0xff]  ;;  %v1118_v58 = vld [vmem:[#allocation15 + $0x238] sm:$0xff] }
 0x2a2   :  { %4502 = vmatprep.subr.bf16.mxu1 %v5474_v9  ;;  %v5014_v9 = vcombine.high %v1074_v52, %v1078_v56 }
 0x2a4   :  { %4339 = vmatpush1.bf16.msra.mxu0 %v5471_v60  ;;  %v5013_v60 = vcombine.low %v1074_v52, %v1078_v56  ;;  %v1126_v52 = vld [vmem:[#allocation15 + $0x278] sm:$0xff]  ;;  %v5051_v56 = vcombine.low %v1113_v48, %v1117_v49 }
 0x2a5   :  { %4503 = vmatpush1.bf16.msra.mxu1 %v5473_v19  ;;  %4340 = vmatprep.subr.bf16.mxu0 %v5480_v20  ;;  %v5020_v19 = vcombine.high %v1081_v29, %v1085_v11  ;;  %v5022_v20 = vcombine.high %v1082_v30, %v1086_v31  ;;  %v1133_v29 = vld [vmem:[#allocation15 + $0x2b0] sm:$0xff]  ;;  %v1130_v11 = vld [vmem:[#allocation15 + $0x298] sm:$0xff] }
 0x2a6   :  { %4504 = vmatprep.subr.bf16.mxu1 %v5482_v32  ;;  %v1089_v32 = vld [vmem:[#allocation15 + $0x150] sm:$0xff] }
 0x2a7   :  { %v5027_v28 = vcombine.low %v1089_v32, %v1093_v15 }
 0x2a8   :  { %4341 = vmatpush1.bf16.msra.mxu0 %v5479_v42  ;;  %v5021_v42 = vcombine.low %v1082_v30, %v1086_v31  ;;  %v1134_v30 = vld [vmem:[#allocation15 + $0x2b8] sm:$0xff] }
 0x2a9   :  { %4505 = vmatpush1.bf16.msra.mxu1 %v5481_v26  ;;  %4342 = vmatprep.subr.bf16.mxu0 %v5488_v44  ;;  %v5028_v26 = vcombine.high %v1089_v32, %v1093_v15  ;;  %v5030_v44 = vcombine.high %v1090_v23, %v1094_v34  ;;  %v1141_v32 = vld [vmem:[#allocation15 + $0x2f0] sm:$0xff]  ;;  %v1138_v15 = vld [vmem:[#allocation15 + $0x2d8] sm:$0xff] }
 0x2aa   :  { %4506 = vmatprep.subr.bf16.mxu1 %v5490_v5  ;;  %v1097_v5 = vld [vmem:[#allocation15 + $0x190] sm:$0xff] }
 0x2ab   :  { %v5035_v35 = vcombine.low %v1097_v5, %v1101_v6 }
 0x2ac   :  { %4343 = vmatpush1.bf16.msra.mxu0 %v5487_v8  ;;  %v5029_v8 = vcombine.low %v1090_v23, %v1094_v34  ;;  %v1142_v23 = vld [vmem:[#allocation15 + $0x2f8] sm:$0xff] }
 0x2ad   :  { %4507 = vmatpush1.bf16.msra.mxu1 %v5489_v7  ;;  %4517 = vmatprep.subr.bf16.mxu0 %v4988_v21  ;;  %v5036_v7 = vcombine.high %v1097_v5, %v1101_v6  ;;  %v5038_v21 = vcombine.high %v1098_v45, %v1102_v27  ;;  %v1149_v5 = vld [vmem:[#allocation15 + $0x330] sm:$0xff]  ;;  %v1146_v6 = vld [vmem:[#allocation15 + $0x318] sm:$0xff] }
 0x2ae   :  { %4681 = vmatprep.subr.bf16.mxu1 %v4990_v1  ;;  %v1105_v1 = vld [vmem:[#allocation15 + $0x1d0] sm:$0xff]  ;;  %v1150_v45 = vld [vmem:[#allocation15 + $0x338] sm:$0xff] }
 0x2af   :  { %4345 = vmatmul.mubr.bf16.vlgmr.msra.gmra.mrb[16].mxu0 %v6291_v39  ;;  %v5043_v59 = vcombine.low %v1105_v1, %v1109_v18 }
 0x2b0   :  { %4509 = vmatmul.mubr.bf16.vlgmr.msra.gmra.mrb[16].mxu1 %v6291_v39  ;;  %4518 = vmatpush1.bf16.msra.mxu0 %v4987_v33  ;;  %v1110_v33 = vld [vmem:[#allocation15 + $0x1f8] sm:$0xff] }
 0x2b1   :  { %4549 = vmatprep.mubr.bf16.mxu0 %v6233_v12  ;;  %4682 = vmatpush1.bf16.msra.mxu1 %v4989_v46  ;;  %v5044_v46 = vcombine.high %v1105_v1, %v1109_v18  ;;  %v1157_v1 = vld [vmem:[#allocation15 + $0x370] sm:$0xff]  ;;  %v1154_v18 = vld [vmem:[#allocation15 + $0x358] sm:$0xff] }
 0x2b2   :  { %4713 = vmatprep.mubr.bf16.mxu1 %v6233_v12  ;;  %4519 = vmatprep.subr.bf16.mxu0 %v4996_v47  ;;  %v5011_v12 = vcombine.low %v1073_v2, %v1077_v51  ;;  %v5046_v47 = vcombine.high %v1106_v0, %v1110_v33  ;;  %v1125_v2 = vld [vmem:[#allocation15 + $0x270] sm:$0xff]  ;;  %v1122_v51 = vld [vmem:[#allocation15 + $0x258] sm:$0xff] }
 0x2b3   :  { %4683 = vmatprep.subr.bf16.mxu1 %v4998_v54  ;;  %v1114_v54 = vld [vmem:[#allocation15 + $0x218] sm:$0xff] }
 0x2b4   :  { %4520 = vmatpush1.bf16.msra.mxu0 %v4995_v4  ;;  %v5045_v4 = vcombine.low %v1106_v0, %v1110_v33  ;;  %v1158_v0 = vld [vmem:[#allocation15 + $0x378] sm:$0xff] }
 0x2b5   :  { %4684 = vmatpush1.bf16.msra.mxu1 %v4997_v53  ;;  %4521 = vmatprep.subr.bf16.mxu0 %v5004_v62  ;;  %v5052_v53 = vcombine.high %v1113_v48, %v1117_v49  ;;  %v5054_v62 = vcombine.high %v1114_v54, %v1118_v58  ;;  %v1165_v48 = vld [vmem:[#allocation15 + $0x3b0] sm:$0xff]  ;;  %v1162_v49 = vld [vmem:[#allocation15 + $0x398] sm:$0xff] }
 0x2b6   :  { %4685 = vmatprep.subr.bf16.mxu1 %v5006_v63  ;;  %v1121_v63 = vld [vmem:[#allocation15 + $0x250] sm:$0xff] }
 0x2b7   :  { %v5059_v31 = vcombine.low %v1121_v63, %v1125_v2 }
 0x2b8   :  { %4522 = vmatpush1.bf16.msra.mxu0 %v5003_v55  ;;  %v5053_v55 = vcombine.low %v1114_v54, %v1118_v58  ;;  %v1166_v54 = vld [vmem:[#allocation15 + $0x3b8] sm:$0xff] }
 0x2b9   :  { %4686 = vmatpush1.bf16.msra.mxu1 %v5005_v61  ;;  %4523 = vmatprep.subr.bf16.mxu0 %v5012_v3  ;;  %v5060_v61 = vcombine.high %v1121_v63, %v1125_v2  ;;  %v5062_v3 = vcombine.high %v1122_v51, %v1126_v52  ;;  %v1173_v63 = vld [vmem:[#allocation15 + $0x3f0] sm:$0xff]  ;;  %v1170_v2 = vld [vmem:[#allocation15 + $0x3d8] sm:$0xff] }
 0x2ba   :  { %4687 = vmatprep.subr.bf16.mxu1 %v5014_v9  ;;  %v1129_v9 = vld [vmem:[#allocation15 + $0x290] sm:$0xff] }
 0x2bb   :  { %v5067_v34 = vcombine.low %v1129_v9, %v1133_v29 }
 0x2bc   :  { %4524 = vmatpush1.bf16.msra.mxu0 %v5011_v12  ;;  %v5061_v12 = vcombine.low %v1122_v51, %v1126_v52  ;;  %v1174_v51 = vld [vmem:[#allocation15 + $0x3f8] sm:$0xff] }
 0x2bd   :  { %4688 = vmatpush1.bf16.msra.mxu1 %v5013_v60  ;;  %4525 = vmatprep.subr.bf16.mxu0 %v5020_v19  ;;  %v5068_v60 = vcombine.high %v1129_v9, %v1133_v29  ;;  %v5070_v19 = vcombine.high %v1130_v11, %v1134_v30  ;;  %v1181_v9 = vld [vmem:[#allocation15 + $0x430] sm:$0xff]  ;;  %v1178_v29 = vld [vmem:[#allocation15 + $0x418] sm:$0xff] }
 0x2be   :  { %4689 = vmatprep.subr.bf16.mxu1 %v5022_v20  ;;  %v1137_v20 = vld [vmem:[#allocation15 + $0x2d0] sm:$0xff] }
 0x2bf   :  { %v5075_v27 = vcombine.low %v1137_v20, %v1141_v32 }
 0x2c0   :  { %4526 = vmatpush1.bf16.msra.mxu0 %v5019_v24  ;;  %v5069_v24 = vcombine.low %v1130_v11, %v1134_v30  ;;  %v1182_v11 = vld [vmem:[#allocation15 + $0x438] sm:$0xff] }
 0x2c1   :  { %4690 = vmatpush1.bf16.msra.mxu1 %v5021_v42  ;;  %4527 = vmatprep.subr.bf16.mxu0 %v5028_v26  ;;  %v5076_v42 = vcombine.high %v1137_v20, %v1141_v32  ;;  %v5078_v26 = vcombine.high %v1138_v15, %v1142_v23  ;;  %v1189_v20 = vld [vmem:[#allocation15 + $0x470] sm:$0xff] }
 0x2c2   :  { %4691 = vmatprep.subr.bf16.mxu1 %v5030_v44  ;;  %v1145_v44 = vld [vmem:[#allocation15 + $0x310] sm:$0xff] }
 0x2c3   :  { %v5083_v33 = vcombine.low %v1145_v44, %v1149_v5 }
 0x2c4   :  { %4528 = vmatpush1.bf16.msra.mxu0 %v5027_v28  ;;  %v5077_v28 = vcombine.low %v1138_v15, %v1142_v23  ;;  %v1186_v15 = vld [vmem:[#allocation15 + $0x458] sm:$0xff] }
 0x2c5   :  { %4692 = vmatpush1.bf16.msra.mxu1 %v5029_v8  ;;  %4529 = vmatprep.subr.bf16.mxu0 %v5036_v7  ;;  %v5084_v8 = vcombine.high %v1145_v44, %v1149_v5  ;;  %v5086_v7 = vcombine.high %v1146_v6, %v1150_v45  ;;  %v1190_v23 = vld [vmem:[#allocation15 + $0x478] sm:$0xff] }
 0x2c6   :  { %4693 = vmatprep.subr.bf16.mxu1 %v5038_v21  ;;  %v1153_v21 = vld [vmem:[#allocation15 + $0x350] sm:$0xff]  ;;  %v5126_v44 = vcombine.high %v1186_v15, %v1190_v23  ;;  %v1194_v5 = vld [vmem:[#allocation15 + $0x498] sm:$0xff] }
 0x2c7   :  { %v5091_v58 = vcombine.low %v1153_v21, %v1157_v1 }
 0x2c8   :  { %4530 = vmatpush1.bf16.msra.mxu0 %v5035_v35  ;;  %v5085_v35 = vcombine.low %v1146_v6, %v1150_v45  ;;  %v1198_v6 = vld [vmem:[#allocation15 + $0x4b8] sm:$0xff] }
 0x2c9   :  { %4694 = vmatpush1.bf16.msra.mxu1 %v5037_v38  ;;  %4531 = vmatprep.subr.bf16.mxu0 %v5044_v46  ;;  %v5092_v38 = vcombine.high %v1153_v21, %v1157_v1  ;;  %v5094_v46 = vcombine.high %v1154_v18, %v1158_v0  ;;  %v1205_v21 = vld [vmem:[#allocation15 + $0x4f0] sm:$0xff]  ;;  %v1202_v1 = vld [vmem:[#allocation15 + $0x4d8] sm:$0xff] }
 0x2ca   :  { %4695 = vmatprep.subr.bf16.mxu1 %v5046_v47  ;;  %v1161_v47 = vld [vmem:[#allocation15 + $0x390] sm:$0xff] }
 0x2cb   :  { %v5099_v52 = vcombine.low %v1161_v47, %v1165_v48 }
 0x2cc   :  { %4532 = vmatpush1.bf16.msra.mxu0 %v5043_v59  ;;  %v5093_v59 = vcombine.low %v1154_v18, %v1158_v0  ;;  %v1206_v18 = vld [vmem:[#allocation15 + $0x4f8] sm:$0xff] }
 0x2cd   :  { %4696 = vmatpush1.bf16.msra.mxu1 %v5045_v4  ;;  %4533 = vmatprep.subr.bf16.mxu0 %v5052_v53  ;;  %v5100_v4 = vcombine.high %v1161_v47, %v1165_v48  ;;  %v5102_v53 = vcombine.high %v1162_v49, %v1166_v54  ;;  %v1210_v47 = vld [vmem:[#allocation15 + $0x518] sm:$0xff] }
 0x2ce   :  { %4697 = vmatprep.subr.bf16.mxu1 %v5054_v62  ;;  %v1169_v62 = vld [vmem:[#allocation15 + $0x3d0] sm:$0xff]  ;;  %v1214_v48 = vld [vmem:[#allocation15 + $0x538] sm:$0xff] }
 0x2cf   :  { %v5107_v30 = vcombine.low %v1169_v62, %v1173_v63 }
 0x2d0   :  { %4534 = vmatpush1.bf16.msra.mxu0 %v5051_v56  ;;  %v5101_v56 = vcombine.low %v1162_v49, %v1166_v54  ;;  %v5141_v49 = vcombine.low %v1202_v1, %v1206_v18 }
 0x2d1   :  { %4698 = vmatpush1.bf16.msra.mxu1 %v5053_v55  ;;  %4535 = vmatprep.subr.bf16.mxu0 %v5060_v61  ;;  %v5108_v55 = vcombine.high %v1169_v62, %v1173_v63  ;;  %v5110_v61 = vcombine.high %v1170_v2, %v1174_v51  ;;  %v1222_v62 = vld [vmem:[#allocation15 + $0x578] sm:$0xff] }
 0x2d2   :  { %4699 = vmatprep.subr.bf16.mxu1 %v5062_v3  ;;  %v1177_v3 = vld [vmem:[#allocation15 + $0x410] sm:$0xff] }
 0x2d3   :  { %v5115_v32 = vcombine.low %v1177_v3, %v1181_v9 }
 0x2d4   :  { %4536 = vmatpush1.bf16.msra.mxu0 %v5059_v31  ;;  %v5109_v31 = vcombine.low %v1170_v2, %v1174_v51  ;;  %v5149_v2 = vcombine.low %v1210_v47, %v1214_v48 }
 0x2d5   :  { %4700 = vmatpush1.bf16.msra.mxu1 %v5061_v12  ;;  %4537 = vmatprep.subr.bf16.mxu0 %v5068_v60  ;;  %v5116_v12 = vcombine.high %v1177_v3, %v1181_v9  ;;  %v5118_v60 = vcombine.high %v1178_v29, %v1182_v11  ;;  %v1230_v3 = vld [vmem:[#allocation15 + $0x5b8] sm:$0xff] }
 0x2d6   :  { %4701 = vmatprep.subr.bf16.mxu1 %v5070_v19  ;;  %v1185_v19 = vld [vmem:[#allocation15 + $0x450] sm:$0xff] }
 0x2d7   :  { %v5123_v45 = vcombine.low %v1185_v19, %v1189_v20 }
 0x2d8   :  { %4538 = vmatpush1.bf16.msra.mxu0 %v5067_v34  ;;  %v5117_v34 = vcombine.low %v1178_v29, %v1182_v11 }
 0x2d9   :  { %4702 = vmatpush1.bf16.msra.mxu1 %v5069_v24  ;;  %4539 = vmatprep.subr.bf16.mxu0 %v5076_v42  ;;  %v5124_v24 = vcombine.high %v1185_v19, %v1189_v20  ;;  %v1193_v42 = vld [vmem:[#allocation15 + $0x490] sm:$0xff]  ;;  %v1238_v19 = vld [vmem:[#allocation15 + $0x5f8] sm:$0xff] }
 0x2da   :  { %4703 = vmatprep.subr.bf16.mxu1 %v5078_v26  ;;  %v1197_v26 = vld [vmem:[#allocation15 + $0x4b0] sm:$0xff] }
 0x2db   :  { %v5131_v0 = vcombine.low %v1193_v42, %v1197_v26 }
 0x2dc   :  { %4540 = vmatpush1.bf16.msra.mxu0 %v5075_v27  ;;  %v5125_v27 = vcombine.low %v1186_v15, %v1190_v23 }
 0x2dd   :  { %4704 = vmatpush1.bf16.msra.mxu1 %v5077_v28  ;;  %4541 = vmatprep.subr.bf16.mxu0 %v5084_v8  ;;  %v5132_v28 = vcombine.high %v1193_v42, %v1197_v26  ;;  %v5134_v8 = vcombine.high %v1194_v5, %v1198_v6  ;;  %v1242_v42 = vld [vmem:[#allocation15 + $0x618] sm:$0xff] }
 0x2de   :  { %4705 = vmatprep.subr.bf16.mxu1 %v5086_v7  ;;  %v1201_v7 = vld [vmem:[#allocation15 + $0x4d0] sm:$0xff]  ;;  %v1246_v26 = vld [vmem:[#allocation15 + $0x638] sm:$0xff] }
 0x2e0   :  { %4542 = vmatpush1.bf16.msra.mxu0 %v5083_v33  ;;  %v5140_v33 = vcombine.high %v1201_v7, %v1205_v21 }
 0x2e1   :  { %4706 = vmatpush1.bf16.msra.mxu1 %v5085_v35  ;;  %4543 = vmatprep.subr.bf16.mxu0 %v5092_v38  ;;  %v5142_v35 = vcombine.high %v1202_v1, %v1206_v18  ;;  %v1209_v38 = vld [vmem:[#allocation15 + $0x510] sm:$0xff]  ;;  %v5181_v1 = vcombine.low %v1242_v42, %v1246_v26 }
 0x2e2   :  { %4707 = vmatprep.subr.bf16.mxu1 %v5094_v46  ;;  %v1213_v46 = vld [vmem:[#allocation15 + $0x530] sm:$0xff] }
 0x2e3   :  { %v5148_v54 = vcombine.high %v1209_v38, %v1213_v46  ;;  %v5147_v63 = vcombine.low %v1209_v38, %v1213_v46  ;;  %v1262_v38 = vld [vmem:[#allocation15 + $0x6b8] sm:$0xff] }
 0x2e4   :  { %4544 = vmatpush1.bf16.msra.mxu0 %v5091_v58  ;;  %v5150_v58 = vcombine.high %v1210_v47, %v1214_v48 }
 0x2e5   :  { %4708 = vmatpush1.bf16.msra.mxu1 %v5093_v59  ;;  %4545 = vmatprep.subr.bf16.mxu0 %v5100_v4  ;;  %v1217_v59 = vld [vmem:[#allocation15 + $0x550] sm:$0xff] }
 0x2e6   :  { %4709 = vmatprep.subr.bf16.mxu1 %v5102_v53  ;;  %v1221_v4 = vld [vmem:[#allocation15 + $0x570] sm:$0xff]  ;;  %v1218_v53 = vld [vmem:[#allocation15 + $0x558] sm:$0xff] }
 0x2e7   :  { %v5156_v51 = vcombine.high %v1217_v59, %v1221_v4  ;;  %v5155_v9 = vcombine.low %v1217_v59, %v1221_v4  ;;  %v5157_v29 = vcombine.low %v1218_v53, %v1222_v62  ;;  %v1270_v59 = vld [vmem:[#allocation15 + $0x6f8] sm:$0xff] }
 0x2e8   :  { %4546 = vmatpush1.bf16.msra.mxu0 %v5099_v52  ;;  %v5158_v52 = vcombine.high %v1218_v53, %v1222_v62 }
 0x2e9   :  { %4710 = vmatpush1.bf16.msra.mxu1 %v5101_v56  ;;  %4547 = vmatprep.subr.bf16.mxu0 %v5108_v55  ;;  %v1225_v56 = vld [vmem:[#allocation15 + $0x590] sm:$0xff] }
 0x2ea   :  { %4711 = vmatprep.subr.bf16.mxu1 %v5110_v61  ;;  %v1229_v55 = vld [vmem:[#allocation15 + $0x5b0] sm:$0xff]  ;;  %v1226_v61 = vld [vmem:[#allocation15 + $0x598] sm:$0xff] }
 0x2eb   :  { %v5164_v11 = vcombine.high %v1225_v56, %v1229_v55  ;;  %v5163_v20 = vcombine.low %v1225_v56, %v1229_v55  ;;  %v1278_v56 = vld [vmem:[#allocation15 + $0x738] sm:$0xff] }
 0x2ec   :  { %4548 = vmatpush1.bf16.msra.mxu0 %v5107_v30  ;;  %v5166_v30 = vcombine.high %v1226_v61, %v1230_v3 }
 0x2ed   :  { %4712 = vmatpush1.bf16.msra.mxu1 %v5109_v31  ;;  %4558 = vmatprep.subr.bf16.mxu0 %v5116_v12  ;;  %v1233_v31 = vld [vmem:[#allocation15 + $0x5d0] sm:$0xff] }
 0x2ee   :  { %4722 = vmatprep.subr.bf16.mxu1 %v5118_v60  ;;  %v1237_v12 = vld [vmem:[#allocation15 + $0x5f0] sm:$0xff]  ;;  %v1234_v60 = vld [vmem:[#allocation15 + $0x5d8] sm:$0xff] }
 0x2ef   :  { %4550 = vmatmul.mubr.bf16.vlgmr.msra.gmra.mrb[20].mxu0 %v6235_v22  ;;  %v5172_v15 = vcombine.high %v1233_v31, %v1237_v12  ;;  %v5174_v23 = vcombine.high %v1234_v60, %v1238_v19 }
 0x2f0   :  { %4714 = vmatmul.mubr.bf16.vlgmr.msra.gmra.mrb[20].mxu1 %v6235_v22  ;;  %4559 = vmatpush1.bf16.msra.mxu0 %v5115_v32  ;;  %v5133_v22 = vcombine.low %v1194_v5, %v1198_v6  ;;  %v5165_v32 = vcombine.low %v1226_v61, %v1230_v3  ;;  %v5173_v5 = vcombine.low %v1234_v60, %v1238_v19 }
 0x2f1   :  { %4590 = vmatprep.mubr.bf16.mxu0 %v6249_v50  ;;  %4723 = vmatpush1.bf16.msra.mxu1 %v5117_v34  ;;  %v1241_v34 = vld [vmem:[#allocation15 + $0x610] sm:$0xff] }
 0x2f2   :  { %4754 = vmatprep.mubr.bf16.mxu1 %v6249_v50  ;;  %4560 = vmatprep.subr.bf16.mxu0 %v5124_v24  ;;  %v5139_v50 = vcombine.low %v1201_v7, %v1205_v21  ;;  %v1245_v24 = vld [vmem:[#allocation15 + $0x630] sm:$0xff]  ;;  %v1254_v7 = vld [vmem:[#allocation15 + $0x678] sm:$0xff] }
 0x2f3   :  { %4724 = vmatprep.subr.bf16.mxu1 %v5126_v44  ;;  %v5171_v44 = vcombine.low %v1233_v31, %v1237_v12  ;;  %v5180_v6 = vcombine.high %v1241_v34, %v1245_v24  ;;  %v5179_v21 = vcombine.low %v1241_v34, %v1245_v24  ;;  %v1286_v31 = vld [vmem:[#allocation15 + $0x778] sm:$0xff] }
 0x2f4   :  { %4561 = vmatpush1.bf16.msra.mxu0 %v5123_v45  ;;  %v5182_v45 = vcombine.high %v1242_v42, %v1246_v26  ;;  %v1294_v34 = vld [vmem:[#allocation15 + $0x7b8] sm:$0xff] }
 0x2f5   :  { %4725 = vmatpush1.bf16.msra.mxu1 %v5125_v27  ;;  %4562 = vmatprep.subr.bf16.mxu0 %v5132_v28  ;;  %v1249_v27 = vld [vmem:[#allocation15 + $0x650] sm:$0xff] }
 0x2f6   :  { %4726 = vmatprep.subr.bf16.mxu1 %v5134_v8  ;;  %v1253_v28 = vld [vmem:[#allocation15 + $0x670] sm:$0xff]  ;;  %v1250_v8 = vld [vmem:[#allocation15 + $0x658] sm:$0xff] }
 0x2f7   :  { %v5188_v18 = vcombine.high %v1249_v27, %v1253_v28  ;;  %v5187_v46 = vcombine.low %v1249_v27, %v1253_v28  ;;  %v5189_v47 = vcombine.low %v1250_v8, %v1254_v7  ;;  %v1302_v27 = vld [vmem:[#allocation15 + $0x7f8] sm:$0xff] }
 0x2f8   :  { %4563 = vmatpush1.bf16.msra.mxu0 %v5131_v0  ;;  %v5190_v0 = vcombine.high %v1250_v8, %v1254_v7 }
 0x2f9   :  { %4727 = vmatpush1.bf16.msra.mxu1 %v5133_v22  ;;  %4564 = vmatprep.subr.bf16.mxu0 %v5140_v33  ;;  %v1257_v22 = vld [vmem:[#allocation15 + $0x690] sm:$0xff] }
 0x2fa   :  { %4728 = vmatprep.subr.bf16.mxu1 %v5142_v35  ;;  %v1261_v33 = vld [vmem:[#allocation15 + $0x6b0] sm:$0xff]  ;;  %v1258_v35 = vld [vmem:[#allocation15 + $0x698] sm:$0xff] }
 0x2fb   :  { %v5196_v48 = vcombine.high %v1257_v22, %v1261_v33  ;;  %v5195_v4 = vcombine.low %v1257_v22, %v1261_v33  ;;  %v5197_v53 = vcombine.low %v1258_v35, %v1262_v38  ;;  %v1310_v22 = vld [vmem:[#allocation15 + $0x838] sm:$0xff] }
 0x2fc   :  { %4565 = vmatpush1.bf16.msra.mxu0 %v5139_v50  ;;  %v5198_v50 = vcombine.high %v1258_v35, %v1262_v38 }
 0x2fd   :  { %4729 = vmatpush1.bf16.msra.mxu1 %v5141_v49  ;;  %4566 = vmatprep.subr.bf16.mxu0 %v5148_v54  ;;  %v1265_v49 = vld [vmem:[#allocation15 + $0x6d0] sm:$0xff] }
 0x2fe   :  { %4730 = vmatprep.subr.bf16.mxu1 %v5150_v58  ;;  %v1269_v54 = vld [vmem:[#allocation15 + $0x6f0] sm:$0xff]  ;;  %v1266_v58 = vld [vmem:[#allocation15 + $0x6d8] sm:$0xff] }
 0x2ff   :  { %v5204_v62 = vcombine.high %v1265_v49, %v1269_v54  ;;  %v5203_v55 = vcombine.low %v1265_v49, %v1269_v54  ;;  %v5205_v61 = vcombine.low %v1266_v58, %v1270_v59  ;;  %v1314_v49 = vld [vmem:[#allocation15 + $0x858] sm:$0xff] }
 0x300   :  { %4567 = vmatpush1.bf16.msra.mxu0 %v5147_v63  ;;  %v5206_v63 = vcombine.high %v1266_v58, %v1270_v59  ;;  %v1318_v54 = vld [vmem:[#allocation15 + $0x878] sm:$0xff] }
 0x301   :  { %4731 = vmatpush1.bf16.msra.mxu1 %v5149_v2  ;;  %4568 = vmatprep.subr.bf16.mxu0 %v5156_v51  ;;  %v1273_v2 = vld [vmem:[#allocation15 + $0x710] sm:$0xff] }
 0x302   :  { %4732 = vmatprep.subr.bf16.mxu1 %v5158_v52  ;;  %v1277_v51 = vld [vmem:[#allocation15 + $0x730] sm:$0xff]  ;;  %v1274_v52 = vld [vmem:[#allocation15 + $0x718] sm:$0xff] }
 0x303   :  { %v5212_v3 = vcombine.high %v1273_v2, %v1277_v51  ;;  %v5211_v12 = vcombine.low %v1273_v2, %v1277_v51  ;;  %v5213_v60 = vcombine.low %v1274_v52, %v1278_v56  ;;  %v1326_v2 = vld [vmem:[#allocation15 + $0x8b8] sm:$0xff] }
 0x304   :  { %4569 = vmatpush1.bf16.msra.mxu0 %v5155_v9  ;;  %v5214_v9 = vcombine.high %v1274_v52, %v1278_v56  ;;  %v5253_v52 = vcombine.low %v1314_v49, %v1318_v54 }
 0x305   :  { %4733 = vmatpush1.bf16.msra.mxu1 %v5157_v29  ;;  %4570 = vmatprep.subr.bf16.mxu0 %v5164_v11  ;;  %v1281_v29 = vld [vmem:[#allocation15 + $0x750] sm:$0xff] }
 0x306   :  { %4734 = vmatprep.subr.bf16.mxu1 %v5166_v30  ;;  %v1285_v11 = vld [vmem:[#allocation15 + $0x770] sm:$0xff]  ;;  %v1282_v30 = vld [vmem:[#allocation15 + $0x758] sm:$0xff] }
 0x307   :  { %v5220_v19 = vcombine.high %v1281_v29, %v1285_v11  ;;  %v5219_v24 = vcombine.low %v1281_v29, %v1285_v11  ;;  %v5221_v42 = vcombine.low %v1282_v30, %v1286_v31  ;;  %v1334_v29 = vld [vmem:[#allocation15 + $0x8f8] sm:$0xff] }
 0x308   :  { %4571 = vmatpush1.bf16.msra.mxu0 %v5163_v20  ;;  %v5222_v20 = vcombine.high %v1282_v30, %v1286_v31 }
 0x309   :  { %4735 = vmatpush1.bf16.msra.mxu1 %v5165_v32  ;;  %4572 = vmatprep.subr.bf16.mxu0 %v5172_v15  ;;  %v1289_v32 = vld [vmem:[#allocation15 + $0x790] sm:$0xff] }
 0x30a   :  { %4736 = vmatprep.subr.bf16.mxu1 %v5174_v23  ;;  %v1293_v15 = vld [vmem:[#allocation15 + $0x7b0] sm:$0xff]  ;;  %v1290_v23 = vld [vmem:[#allocation15 + $0x798] sm:$0xff] }
 0x30b   :  { %v5228_v26 = vcombine.high %v1289_v32, %v1293_v15  ;;  %v5227_v28 = vcombine.low %v1289_v32, %v1293_v15  ;;  %v5229_v8 = vcombine.low %v1290_v23, %v1294_v34 }
 0x30c   :  { %4573 = vmatpush1.bf16.msra.mxu0 %v5171_v44  ;;  %v5230_v44 = vcombine.high %v1290_v23, %v1294_v34  ;;  %v1345_v34 = vld [vmem:[#allocation15 + $0x950] sm:$0xff] }
 0x30d   :  { %4737 = vmatpush1.bf16.msra.mxu1 %v5173_v5  ;;  %4574 = vmatprep.subr.bf16.mxu0 %v5180_v6  ;;  %v1297_v5 = vld [vmem:[#allocation15 + $0x7d0] sm:$0xff] }
 0x30e   :  { %4738 = vmatprep.subr.bf16.mxu1 %v5182_v45  ;;  %v1301_v6 = vld [vmem:[#allocation15 + $0x7f0] sm:$0xff]  ;;  %v1298_v45 = vld [vmem:[#allocation15 + $0x7d8] sm:$0xff] }
 0x30f   :  { %v5236_v7 = vcombine.high %v1297_v5, %v1301_v6  ;;  %v5235_v33 = vcombine.low %v1297_v5, %v1301_v6  ;;  %v5237_v35 = vcombine.low %v1298_v45, %v1302_v27 }
 0x310   :  { %4575 = vmatpush1.bf16.msra.mxu0 %v5179_v21  ;;  %v5238_v21 = vcombine.high %v1298_v45, %v1302_v27  ;;  %v1353_v27 = vld [vmem:[#allocation15 + $0x990] sm:$0xff] }
 0x311   :  { %4739 = vmatpush1.bf16.msra.mxu1 %v5181_v1  ;;  %4576 = vmatprep.subr.bf16.mxu0 %v5188_v18  ;;  %v1305_v1 = vld [vmem:[#allocation15 + $0x810] sm:$0xff] }
 0x312   :  { %4740 = vmatprep.subr.bf16.mxu1 %v5190_v0  ;;  %v1309_v18 = vld [vmem:[#allocation15 + $0x830] sm:$0xff]  ;;  %v1306_v0 = vld [vmem:[#allocation15 + $0x818] sm:$0xff] }
 0x313   :  { %v5244_v38 = vcombine.high %v1305_v1, %v1309_v18  ;;  %v5245_v58 = vcombine.low %v1306_v0, %v1310_v22 }
 0x314   :  { %4577 = vmatpush1.bf16.msra.mxu0 %v5187_v46  ;;  %v5246_v46 = vcombine.high %v1306_v0, %v1310_v22  ;;  %v1361_v22 = vld [vmem:[#allocation15 + $0x9d0] sm:$0xff] }
 0x315   :  { %4741 = vmatpush1.bf16.msra.mxu1 %v5189_v47  ;;  %4578 = vmatprep.subr.bf16.mxu0 %v5196_v48  ;;  %v1313_v47 = vld [vmem:[#allocation15 + $0x850] sm:$0xff] }
 0x316   :  { %4742 = vmatprep.subr.bf16.mxu1 %v5198_v50  ;;  %v1317_v48 = vld [vmem:[#allocation15 + $0x870] sm:$0xff]  ;;  %v5243_v50 = vcombine.low %v1305_v1, %v1309_v18 }
 0x317   :  { %v5252_v59 = vcombine.high %v1313_v47, %v1317_v48  ;;  %v5251_v51 = vcombine.low %v1313_v47, %v1317_v48 }
 0x318   :  { %4579 = vmatpush1.bf16.msra.mxu0 %v5195_v4  ;;  %v1321_v4 = vld [vmem:[#allocation15 + $0x890] sm:$0xff] }
 0x319   :  { %4743 = vmatpush1.bf16.msra.mxu1 %v5197_v53  ;;  %4580 = vmatprep.subr.bf16.mxu0 %v5204_v62  ;;  %v1325_v53 = vld [vmem:[#allocation15 + $0x8b0] sm:$0xff]  ;;  %v5254_v62 = vcombine.high %v1314_v49, %v1318_v54 }
 0x31a   :  { %4744 = vmatprep.subr.bf16.mxu1 %v5206_v63  ;;  %v1322_v63 = vld [vmem:[#allocation15 + $0x898] sm:$0xff]  ;;  %v5260_v56 = vcombine.high %v1321_v4, %v1325_v53  ;;  %v5259_v11 = vcombine.low %v1321_v4, %v1325_v53  ;;  %v1369_v49 = vld [vmem:[#allocation15 + $0xa10] sm:$0xff] }
 0x31b   :  { %v1373_v54 = vld [vmem:[#allocation15 + $0xa30] sm:$0xff] }
 0x31c   :  { %4581 = vmatpush1.bf16.msra.mxu0 %v5203_v55  ;;  %v5262_v55 = vcombine.high %v1322_v63, %v1326_v2 }
 0x31d   :  { %4745 = vmatpush1.bf16.msra.mxu1 %v5205_v61  ;;  %4582 = vmatprep.subr.bf16.mxu0 %v5212_v3  ;;  %v1329_v61 = vld [vmem:[#allocation15 + $0x8d0] sm:$0xff] }
 0x31e   :  { %4746 = vmatprep.subr.bf16.mxu1 %v5214_v9  ;;  %v1333_v3 = vld [vmem:[#allocation15 + $0x8f0] sm:$0xff]  ;;  %v1330_v9 = vld [vmem:[#allocation15 + $0x8d8] sm:$0xff] }
 0x31f   :  { %v5268_v30 = vcombine.high %v1329_v61, %v1333_v3  ;;  %v5270_v31 = vcombine.high %v1330_v9, %v1334_v29  ;;  %v5269_v32 = vcombine.low %v1330_v9, %v1334_v29  ;;  %v1385_v29 = vld [vmem:[#allocation15 + $0xa90] sm:$0xff] }
 0x320   :  { %4583 = vmatpush1.bf16.msra.mxu0 %v5211_v12  ;;  %v1337_v12 = vld [vmem:[#allocation15 + $0x910] sm:$0xff] }
 0x321   :  { %4747 = vmatpush1.bf16.msra.mxu1 %v5213_v60  ;;  %4584 = vmatprep.subr.bf16.mxu0 %v5220_v19  ;;  %v1341_v60 = vld [vmem:[#allocation15 + $0x930] sm:$0xff]  ;;  %v1338_v19 = vld [vmem:[#allocation15 + $0x918] sm:$0xff] }
 0x322   :  { %4748 = vmatprep.subr.bf16.mxu1 %v5222_v20  ;;  %v1342_v20 = vld [vmem:[#allocation15 + $0x938] sm:$0xff]  ;;  %v5276_v15 = vcombine.high %v1337_v12, %v1341_v60 }
 0x323   :  { %v5278_v23 = vcombine.high %v1338_v19, %v1342_v20  ;;  %v5277_v5 = vcombine.low %v1338_v19, %v1342_v20  ;;  %v1393_v20 = vld [vmem:[#allocation15 + $0xad0] sm:$0xff] }
 0x324   :  { %4585 = vmatpush1.bf16.msra.mxu0 %v5219_v24  ;;  %v1349_v24 = vld [vmem:[#allocation15 + $0x970] sm:$0xff] }
 0x325   :  { %4749 = vmatpush1.bf16.msra.mxu1 %v5221_v42  ;;  %4586 = vmatprep.subr.bf16.mxu0 %v5228_v26  ;;  %v1346_v42 = vld [vmem:[#allocation15 + $0x958] sm:$0xff]  ;;  %v5284_v6 = vcombine.high %v1345_v34, %v1349_v24 }
 0x326   :  { %4750 = vmatprep.subr.bf16.mxu1 %v5230_v44  ;;  %v1350_v26 = vld [vmem:[#allocation15 + $0x978] sm:$0xff]  ;;  %v5275_v44 = vcombine.low %v1337_v12, %v1341_v60 }
 0x327   :  { %v5286_v45 = vcombine.high %v1346_v42, %v1350_v26  ;;  %v5285_v1 = vcombine.low %v1346_v42, %v1350_v26  ;;  %v1401_v26 = vld [vmem:[#allocation15 + $0xb10] sm:$0xff] }
 0x328   :  { %4587 = vmatpush1.bf16.msra.mxu0 %v5227_v28  ;;  %v1357_v28 = vld [vmem:[#allocation15 + $0x9b0] sm:$0xff] }
 0x329   :  { %4751 = vmatpush1.bf16.msra.mxu1 %v5229_v8  ;;  %4588 = vmatprep.subr.bf16.mxu0 %v5236_v7  ;;  %v1354_v8 = vld [vmem:[#allocation15 + $0x998] sm:$0xff]  ;;  %v5292_v18 = vcombine.high %v1353_v27, %v1357_v28 }
 0x32a   :  { %4752 = vmatprep.subr.bf16.mxu1 %v5238_v21  ;;  %v1358_v7 = vld [vmem:[#allocation15 + $0x9b8] sm:$0xff]  ;;  %v5283_v21 = vcombine.low %v1345_v34, %v1349_v24 }
 0x32b   :  { %v5294_v0 = vcombine.high %v1354_v8, %v1358_v7  ;;  %v5293_v47 = vcombine.low %v1354_v8, %v1358_v7  ;;  %v1409_v7 = vld [vmem:[#allocation15 + $0xb50] sm:$0xff] }
 0x32c   :  { %4589 = vmatpush1.bf16.msra.mxu0 %v5235_v33  ;;  %v1365_v33 = vld [vmem:[#allocation15 + $0x9f0] sm:$0xff] }
 0x32d   :  { %4753 = vmatpush1.bf16.msra.mxu1 %v5237_v35  ;;  %4599 = vmatprep.subr.bf16.mxu0 %v5244_v38  ;;  %v1362_v35 = vld [vmem:[#allocation15 + $0x9d8] sm:$0xff]  ;;  %v5300_v48 = vcombine.high %v1361_v22, %v1365_v33  ;;  %v5299_v4 = vcombine.low %v1361_v22, %v1365_v33 }
 0x32e   :  { %4763 = vmatprep.subr.bf16.mxu1 %v5246_v46  ;;  %v1366_v38 = vld [vmem:[#allocation15 + $0x9f8] sm:$0xff]  ;;  %v5291_v46 = vcombine.low %v1353_v27, %v1357_v28 }
 0x32f   :  { %4591 = vmatmul.mubr.bf16.vlgmr.msra.gmra.mrb[20].mxu0 %v6267_v25  ;;  %v5301_v53 = vcombine.low %v1362_v35, %v1366_v38 }
 0x330   :  { %4755 = vmatmul.mubr.bf16.vlgmr.msra.gmra.mrb[20].mxu1 %v6267_v25  ;;  %4600 = vmatpush1.bf16.msra.mxu0 %v5243_v50  ;;  %v5261_v25 = vcombine.low %v1322_v63, %v1326_v2  ;;  %v5302_v50 = vcombine.high %v1362_v35, %v1366_v38  ;;  %v1377_v2 = vld [vmem:[#allocation15 + $0xa50] sm:$0xff] }
 0x331   :  { %4631 = vmatprep.mubr.bf16.mxu0 %v6271_v43  ;;  %4764 = vmatpush1.bf16.msra.mxu1 %v5245_v58  ;;  %v1370_v58 = vld [vmem:[#allocation15 + $0xa18] sm:$0xff]  ;;  %v1417_v38 = vld [vmem:[#allocation15 + $0xb90] sm:$0xff] }
 0x332   :  { %4795 = vmatprep.mubr.bf16.mxu1 %v6271_v43  ;;  %4601 = vmatprep.subr.bf16.mxu0 %v5252_v59  ;;  %v5267_v43 = vcombine.low %v1329_v61, %v1333_v3  ;;  %v1374_v59 = vld [vmem:[#allocation15 + $0xa38] sm:$0xff] }
 0x333   :  { %4765 = vmatprep.subr.bf16.mxu1 %v5254_v62  ;;  %v5308_v62 = vcombine.high %v1369_v49, %v1373_v54  ;;  %v5310_v63 = vcombine.high %v1370_v58, %v1374_v59  ;;  %v5309_v61 = vcombine.low %v1370_v58, %v1374_v59  ;;  %v1425_v59 = vld [vmem:[#allocation15 + $0xbd0] sm:$0xff] }
 0x334   :  { %4602 = vmatpush1.bf16.msra.mxu0 %v5251_v51  ;;  %v1381_v51 = vld [vmem:[#allocation15 + $0xa70] sm:$0xff] }
 0x335   :  { %4766 = vmatpush1.bf16.msra.mxu1 %v5253_v52  ;;  %4603 = vmatprep.subr.bf16.mxu0 %v5260_v56  ;;  %v1378_v52 = vld [vmem:[#allocation15 + $0xa58] sm:$0xff]  ;;  %v5316_v3 = vcombine.high %v1377_v2, %v1381_v51 }
 0x336   :  { %4767 = vmatprep.subr.bf16.mxu1 %v5262_v55  ;;  %v1382_v56 = vld [vmem:[#allocation15 + $0xa78] sm:$0xff]  ;;  %v5307_v55 = vcombine.low %v1369_v49, %v1373_v54 }
 0x337   :  { %v5318_v9 = vcombine.high %v1378_v52, %v1382_v56  ;;  %v5317_v12 = vcombine.low %v1378_v52, %v1382_v56  ;;  %v1433_v56 = vld [vmem:[#allocation15 + $0xc10] sm:$0xff] }
 0x338   :  { %4604 = vmatpush1.bf16.msra.mxu0 %v5259_v11  ;;  %v1389_v11 = vld [vmem:[#allocation15 + $0xab0] sm:$0xff] }
 0x339   :  { %4768 = vmatpush1.bf16.msra.mxu1 %v5261_v25  ;;  %4605 = vmatprep.subr.bf16.mxu0 %v5268_v30  ;;  %v1386_v25 = vld [vmem:[#allocation15 + $0xa98] sm:$0xff]  ;;  %v5324_v60 = vcombine.high %v1385_v29, %v1389_v11 }
 0x33a   :  { %4769 = vmatprep.subr.bf16.mxu1 %v5270_v31  ;;  %v1390_v30 = vld [vmem:[#allocation15 + $0xab8] sm:$0xff]  ;;  %v5315_v31 = vcombine.low %v1377_v2, %v1381_v51 }
 0x33b   :  { %v5326_v19 = vcombine.high %v1386_v25, %v1390_v30  ;;  %v5325_v34 = vcombine.low %v1386_v25, %v1390_v30  ;;  %v1441_v30 = vld [vmem:[#allocation15 + $0xc50] sm:$0xff] }
 0x33c   :  { %4606 = vmatpush1.bf16.msra.mxu0 %v5267_v43  ;;  %v1397_v43 = vld [vmem:[#allocation15 + $0xaf0] sm:$0xff] }
 0x33d   :  { %4770 = vmatpush1.bf16.msra.mxu1 %v5269_v32  ;;  %4607 = vmatprep.subr.bf16.mxu0 %v5276_v15  ;;  %v1394_v32 = vld [vmem:[#allocation15 + $0xad8] sm:$0xff]  ;;  %v5332_v24 = vcombine.high %v1393_v20, %v1397_v43 }
 0x33e   :  { %4771 = vmatprep.subr.bf16.mxu1 %v5278_v23  ;;  %v1398_v15 = vld [vmem:[#allocation15 + $0xaf8] sm:$0xff]  ;;  %v5323_v23 = vcombine.low %v1385_v29, %v1389_v11 }
 0x33f   :  { %v5334_v42 = vcombine.high %v1394_v32, %v1398_v15  ;;  %v5333_v27 = vcombine.low %v1394_v32, %v1398_v15  ;;  %v1449_v32 = vld [vmem:[#allocation15 + $0xc90] sm:$0xff] }
 0x340   :  { %4608 = vmatpush1.bf16.msra.mxu0 %v5275_v44  ;;  %v1405_v44 = vld [vmem:[#allocation15 + $0xb30] sm:$0xff] }
 0x341   :  { %4772 = vmatpush1.bf16.msra.mxu1 %v5277_v5  ;;  %4609 = vmatprep.subr.bf16.mxu0 %v5284_v6  ;;  %v1402_v5 = vld [vmem:[#allocation15 + $0xb18] sm:$0xff]  ;;  %v5340_v28 = vcombine.high %v1401_v26, %v1405_v44  ;;  %v1453_v15 = vld [vmem:[#allocation15 + $0xcb0] sm:$0xff] }
 0x342   :  { %4773 = vmatprep.subr.bf16.mxu1 %v5286_v45  ;;  %v1406_v6 = vld [vmem:[#allocation15 + $0xb38] sm:$0xff]  ;;  %v5331_v45 = vcombine.low %v1393_v20, %v1397_v43 }
 0x343   :  { %v5342_v8 = vcombine.high %v1402_v5, %v1406_v6  ;;  %v5341_v22 = vcombine.low %v1402_v5, %v1406_v6  ;;  %v1457_v6 = vld [vmem:[#allocation15 + $0xcd0] sm:$0xff] }
 0x344   :  { %4610 = vmatpush1.bf16.msra.mxu0 %v5283_v21  ;;  %v1413_v21 = vld [vmem:[#allocation15 + $0xb70] sm:$0xff] }
 0x345   :  { %4774 = vmatpush1.bf16.msra.mxu1 %v5285_v1  ;;  %4611 = vmatprep.subr.bf16.mxu0 %v5292_v18  ;;  %v1410_v1 = vld [vmem:[#allocation15 + $0xb58] sm:$0xff]  ;;  %v5348_v33 = vcombine.high %v1409_v7, %v1413_v21 }
 0x346   :  { %4775 = vmatprep.subr.bf16.mxu1 %v5294_v0  ;;  %v1414_v18 = vld [vmem:[#allocation15 + $0xb78] sm:$0xff]  ;;  %v5339_v0 = vcombine.low %v1401_v26, %v1405_v44  ;;  %v5388_v44 = vcombine.high %v1449_v32, %v1453_v15 }
 0x347   :  { %v5350_v35 = vcombine.high %v1410_v1, %v1414_v18  ;;  %v5349_v49 = vcombine.low %v1410_v1, %v1414_v18  ;;  %v1465_v1 = vld [vmem:[#allocation15 + $0xd10] sm:$0xff] }
 0x348   :  { %4612 = vmatpush1.bf16.msra.mxu0 %v5291_v46  ;;  %v1421_v46 = vld [vmem:[#allocation15 + $0xbb0] sm:$0xff] }
 0x349   :  { %4776 = vmatpush1.bf16.msra.mxu1 %v5293_v47  ;;  %4613 = vmatprep.subr.bf16.mxu0 %v5300_v48  ;;  %v1418_v47 = vld [vmem:[#allocation15 + $0xb98] sm:$0xff]  ;;  %v5356_v54 = vcombine.high %v1417_v38, %v1421_v46  ;;  %v1469_v18 = vld [vmem:[#allocation15 + $0xd30] sm:$0xff] }
 0x34a   :  { %4777 = vmatprep.subr.bf16.mxu1 %v5302_v50  ;;  %v1422_v48 = vld [vmem:[#allocation15 + $0xbb8] sm:$0xff]  ;;  %v5347_v50 = vcombine.low %v1409_v7, %v1413_v21 }
 0x34b   :  { %v5358_v58 = vcombine.high %v1418_v47, %v1422_v48  ;;  %v5357_v2 = vcombine.low %v1418_v47, %v1422_v48  ;;  %v1477_v47 = vld [vmem:[#allocation15 + $0xd70] sm:$0xff]  ;;  %v1474_v48 = vld [vmem:[#allocation15 + $0xd58] sm:$0xff] }
 0x34c   :  { %4614 = vmatpush1.bf16.msra.mxu0 %v5299_v4  ;;  %v1429_v4 = vld [vmem:[#allocation15 + $0xbf0] sm:$0xff] }
 0x34d   :  { %4778 = vmatpush1.bf16.msra.mxu1 %v5301_v53  ;;  %4615 = vmatprep.subr.bf16.mxu0 %v5308_v62  ;;  %v1426_v53 = vld [vmem:[#allocation15 + $0xbd8] sm:$0xff]  ;;  %v5364_v51 = vcombine.high %v1425_v59, %v1429_v4 }
 0x34e   :  { %4779 = vmatprep.subr.bf16.mxu1 %v5310_v63  ;;  %v1430_v62 = vld [vmem:[#allocation15 + $0xbf8] sm:$0xff]  ;;  %v5355_v63 = vcombine.low %v1417_v38, %v1421_v46  ;;  %v1473_v46 = vld [vmem:[#allocation15 + $0xd50] sm:$0xff] }
 0x34f   :  { %v5366_v52 = vcombine.high %v1426_v53, %v1430_v62  ;;  %v5365_v29 = vcombine.low %v1426_v53, %v1430_v62  ;;  %v1481_v53 = vld [vmem:[#allocation15 + $0xd90] sm:$0xff] }
 0x350   :  { %4616 = vmatpush1.bf16.msra.mxu0 %v5307_v55  ;;  %v1437_v55 = vld [vmem:[#allocation15 + $0xc30] sm:$0xff] }
 0x351   :  { %4780 = vmatpush1.bf16.msra.mxu1 %v5309_v61  ;;  %4617 = vmatprep.subr.bf16.mxu0 %v5316_v3  ;;  %v1434_v61 = vld [vmem:[#allocation15 + $0xc18] sm:$0xff]  ;;  %v5372_v11 = vcombine.high %v1433_v56, %v1437_v55  ;;  %v1485_v62 = vld [vmem:[#allocation15 + $0xdb0] sm:$0xff] }
 0x352   :  { %4781 = vmatprep.subr.bf16.mxu1 %v5318_v9  ;;  %v1438_v3 = vld [vmem:[#allocation15 + $0xc38] sm:$0xff]  ;;  %v5363_v9 = vcombine.low %v1425_v59, %v1429_v4  ;;  %v5412_v59 = vcombine.high %v1473_v46, %v1477_v47 }
 0x353   :  { %v5374_v25 = vcombine.high %v1434_v61, %v1438_v3  ;;  %v5373_v20 = vcombine.low %v1434_v61, %v1438_v3  ;;  %v5411_v61 = vcombine.low %v1473_v46, %v1477_v47 }
 0x354   :  { %4618 = vmatpush1.bf16.msra.mxu0 %v5315_v31  ;;  %v1445_v31 = vld [vmem:[#allocation15 + $0xc70] sm:$0xff] }
 0x355   :  { %4782 = vmatpush1.bf16.msra.mxu1 %v5317_v12  ;;  %4619 = vmatprep.subr.bf16.mxu0 %v5324_v60  ;;  %v5371_v12 = vcombine.low %v1433_v56, %v1437_v55  ;;  %v1442_v60 = vld [vmem:[#allocation15 + $0xc58] sm:$0xff]  ;;  %v5380_v43 = vcombine.high %v1441_v30, %v1445_v31 }
 0x356   :  { %4783 = vmatprep.subr.bf16.mxu1 %v5326_v19  ;;  %v1446_v19 = vld [vmem:[#allocation15 + $0xc78] sm:$0xff] }
 0x357   :  { %v5381_v26 = vcombine.low %v1442_v60, %v1446_v19 }
 0x358   :  { %4620 = vmatpush1.bf16.msra.mxu0 %v5323_v23  ;;  %v5382_v23 = vcombine.high %v1442_v60, %v1446_v19 }
 0x359   :  { %4784 = vmatpush1.bf16.msra.mxu1 %v5325_v34  ;;  %4621 = vmatprep.subr.bf16.mxu0 %v5332_v24  ;;  %v1450_v34 = vld [vmem:[#allocation15 + $0xc98] sm:$0xff] }
 0x35a   :  { %4785 = vmatprep.subr.bf16.mxu1 %v5334_v42  ;;  %v1454_v24 = vld [vmem:[#allocation15 + $0xcb8] sm:$0xff]  ;;  %v5379_v42 = vcombine.low %v1441_v30, %v1445_v31  ;;  %v1489_v30 = vld [vmem:[#allocation15 + $0xdd0] sm:$0xff] }
 0x35b   :  { %v5390_v5 = vcombine.high %v1450_v34, %v1454_v24  ;;  %v1493_v31 = vld [vmem:[#allocation15 + $0xdf0] sm:$0xff] }
 0x35c   :  { %4622 = vmatpush1.bf16.msra.mxu0 %v5331_v45  ;;  %v1461_v45 = vld [vmem:[#allocation15 + $0xcf0] sm:$0xff] }
 0x35d   :  { %4786 = vmatpush1.bf16.msra.mxu1 %v5333_v27  ;;  %4623 = vmatprep.subr.bf16.mxu0 %v5340_v28  ;;  %v1458_v27 = vld [vmem:[#allocation15 + $0xcd8] sm:$0xff]  ;;  %v5396_v7 = vcombine.high %v1457_v6, %v1461_v45 }
 0x35e   :  { %4787 = vmatprep.subr.bf16.mxu1 %v5342_v8  ;;  %v1462_v28 = vld [vmem:[#allocation15 + $0xcf8] sm:$0xff]  ;;  %v5387_v8 = vcombine.low %v1449_v32, %v1453_v15 }
 0x35f   :  { %v5398_v21 = vcombine.high %v1458_v27, %v1462_v28  ;;  %v1494_v32 = vld [vmem:[#allocation15 + $0xdf8] sm:$0xff] }
 0x360   :  { %4624 = vmatpush1.bf16.msra.mxu0 %v5339_v0  ;;  %v1466_v0 = vld [vmem:[#allocation15 + $0xd18] sm:$0xff] }
 0x361   :  { %4788 = vmatpush1.bf16.msra.mxu1 %v5341_v22  ;;  %4625 = vmatprep.subr.bf16.mxu0 %v5348_v33  ;;  %v1470_v22 = vld [vmem:[#allocation15 + $0xd38] sm:$0xff]  ;;  %v5397_v33 = vcombine.low %v1458_v27, %v1462_v28  ;;  %v5428_v27 = vcombine.high %v1489_v30, %v1493_v31 }
 0x362   :  { %4789 = vmatprep.subr.bf16.mxu1 %v5350_v35  ;;  %v5404_v35 = vcombine.high %v1465_v1, %v1469_v18  ;;  %v5406_v38 = vcombine.high %v1466_v0, %v1470_v22 }
 0x364   :  { %4626 = vmatpush1.bf16.msra.mxu0 %v5347_v50  ;;  %v1478_v50 = vld [vmem:[#allocation15 + $0xd78] sm:$0xff] }
 0x365   :  { %4790 = vmatpush1.bf16.msra.mxu1 %v5349_v49  ;;  %4627 = vmatprep.subr.bf16.mxu0 %v5356_v54  ;;  %v5403_v49 = vcombine.low %v1465_v1, %v1469_v18  ;;  %v6309_v54 = vld [vmem:[#allocation17] sm:$0xff]  ;;  %v5414_v4 = vcombine.high %v1474_v48, %v1478_v50  ;;  %v1501_v1 = vld [vmem:[#allocation15 + $0xe30] sm:$0xff] }
 0x366   :  { %4791 = vmatprep.subr.bf16.mxu1 %v5358_v58  ;;  %v5405_v58 = vcombine.low %v1466_v0, %v1470_v22  ;;  %v1572_v56 = vrot.slane %v6309_v54, %v6092_v14  ;;  %v1568_v55 = vrot.slane %v6309_v54, %v6097_v16  ;;  %v1576_v3 = vrot.slane %v6309_v54, %v6100_v17  ;;  %v1498_v0 = vld [vmem:[#allocation15 + $0xe18] sm:$0xff] }
 0x367   :  { %v1502_v22 = vld [vmem:[#allocation15 + $0xe38] sm:$0xff] }
 0x368   :  { %4628 = vmatpush1.bf16.msra.mxu0 %v5355_v63  ;;  %v1564_v63 = vrot.slane %v6309_v54, %v6089_v13 }
 0x369   :  { %4792 = vmatpush1.bf16.msra.mxu1 %v5357_v2  ;;  %4629 = vmatprep.subr.bf16.mxu0 %v5364_v51  ;;  %v1482_v2 = vld [vmem:[#allocation15 + $0xd98] sm:$0xff] }
 0x36a   :  { %4793 = vmatprep.subr.bf16.mxu1 %v5366_v52  ;;  %v1486_v51 = vld [vmem:[#allocation15 + $0xdb8] sm:$0xff]  ;;  %v6313_v52 = vld [vmem:[#allocation18] sm:$0xff] }
 0x36b   :  { %v4859_v60 = vrot.slane %v6313_v52, %v6089_v13  ;;  %v5421_v13 = vcombine.low %v1482_v2, %v1486_v51 }
 0x36c   :  { %4630 = vmatpush1.bf16.msra.mxu0 %v5363_v9  ;;  %v5413_v9 = vcombine.low %v1474_v48, %v1478_v50  ;;  %v5438_v50 = vcombine.high %v1498_v0, %v1502_v22 }
 0x36d   :  { %4794 = vmatpush1.bf16.msra.mxu1 %v5365_v29  ;;  %4640 = vmatprep.subr.bf16.mxu0 %v5372_v11  ;;  %v5420_v29 = vcombine.high %v1481_v53, %v1485_v62 }
 0x36e   :  { %4804 = vmatprep.subr.bf16.mxu1 %v5374_v25  ;;  %v5422_v25 = vcombine.high %v1482_v2, %v1486_v51 }
 0x36f   :  { %4632 = vmatmul.mubr.bf16.vlgmr.msra.gmra.mrb[20].mxu0 %v6279_v57 }
 0x370   :  { %4796 = vmatmul.mubr.bf16.vlgmr.msra.gmra.mrb[20].mxu1 %v6279_v57  ;;  %4641 = vmatpush1.bf16.msra.mxu0 %v5371_v12  ;;  %v5389_v57 = vcombine.low %v1450_v34, %v1454_v24  ;;  %v4863_v34 = vrot.slane %v6313_v52, %v6097_v16 }
 0x371   :  { %4672 = vmatprep.mubr.bf16.mxu0 %v6284_v10  ;;  %4805 = vmatpush1.bf16.msra.mxu1 %v5373_v20 }
 0x372   :  { %4836 = vmatprep.mubr.bf16.mxu1 %v6284_v10  ;;  %4642 = vmatprep.subr.bf16.mxu0 %v5380_v43  ;;  %v5395_v10 = vcombine.low %v1457_v6, %v1461_v45  ;;  %v1490_v43 = vld [vmem:[#allocation15 + $0xdd8] sm:$0xff] }
 0x373   :  { %4806 = vmatprep.subr.bf16.mxu1 %v5382_v23  ;;  %v5430_v16 = vcombine.high %v1490_v43, %v1494_v32  ;;  %v5429_v46 = vcombine.low %v1490_v43, %v1494_v32 }
 0x374   :  { %4643 = vmatpush1.bf16.msra.mxu0 %v5379_v42 }
 0x375   :  { %4807 = vmatpush1.bf16.msra.mxu1 %v5381_v26  ;;  %4644 = vmatprep.subr.bf16.mxu0 %v5388_v44  ;;  %v5419_v26 = vcombine.low %v1481_v53, %v1485_v62 }
 0x376   :  { %4808 = vmatprep.subr.bf16.mxu1 %v5390_v5 }
 0x378   :  { %4645 = vmatpush1.bf16.msra.mxu0 %v5387_v8  ;;  %v4867_v8 = vrot.slane %v6313_v52, %v6092_v14 }
 0x379   :  { %4809 = vmatpush1.bf16.msra.mxu1 %v5389_v57  ;;  %4646 = vmatprep.subr.bf16.mxu0 %v5396_v7 }
 0x37a   :  { %4810 = vmatprep.subr.bf16.mxu1 %v5398_v21  ;;  %v1497_v21 = vld [vmem:[#allocation15 + $0xe10] sm:$0xff] }
 0x37b   :  { %v5436_v14 = vcombine.high %v1497_v21, %v1501_v1 }
 0x37c   :  { %4647 = vmatpush1.bf16.msra.mxu0 %v5395_v10 }
 0x37d   :  { %4811 = vmatpush1.bf16.msra.mxu1 %v5397_v33  ;;  %4648 = vmatprep.subr.bf16.mxu0 %v5404_v35  ;;  %v4871_v35 = vrot.slane %v6313_v52, %v6100_v17  ;;  %v5437_v17 = vcombine.low %v1498_v0, %v1502_v22  ;;  %v1550_v0 = vld [vmem:[#allocation15 + $0xfb8] sm:$0xff] }
 0x37e   :  { %4812 = vmatprep.subr.bf16.mxu1 %v5406_v38  ;;  %v5427_v38 = vcombine.low %v1489_v30, %v1493_v31  ;;  %v1521_v31 = vld [vmem:[#allocation15 + $0xed0] sm:$0xff] }
 0x380   :  { %4649 = vmatpush1.bf16.msra.mxu0 %v5403_v49  ;;  %v1505_v49 = vld [vmem:[#allocation15 + $0xe50] sm:$0xff] }
 0x381   :  { %4813 = vmatpush1.bf16.msra.mxu1 %v5405_v58  ;;  %4650 = vmatprep.subr.bf16.mxu0 %v5412_v59  ;;  %v1509_v58 = vld [vmem:[#allocation15 + $0xe70] sm:$0xff]  ;;  %v1506_v59 = vld [vmem:[#allocation15 + $0xe58] sm:$0xff] }
 0x382   :  { %v4346_v11 = vpop.f32.mrb[16].mxu0  ;;  %4814 = vmatprep.subr.bf16.mxu1 %v5414_v4  ;;  %v1510_v4 = vld [vmem:[#allocation15 + $0xe78] sm:$0xff]  ;;  %v5444_v2 = vcombine.high %v1505_v49, %v1509_v58 }
 0x383   :  { %v5507_v12 = vadd.f32 %v4346_v11, %v1564_v63  ;;  %v4510_v19 = vpop.f32.mrb[16].mxu1  ;;  %v4348_v20 = vpop.f32.mrb[17].mxu0  ;;  %v5435_v63 = vcombine.low %v1497_v21, %v1501_v1  ;;  %v5445_v11 = vcombine.low %v1506_v59, %v1510_v4  ;;  %v1545_v21 = vld [vmem:[#allocation15 + $0xf90] sm:$0xff] }
 0x384   :  { %v5509_v15 = vadd.f32 %v4510_v19, %v1572_v56  ;;  %v5508_v23 = vadd.f32 %v4348_v20, %v1568_v55  ;;  %v4512_v24 = vpop.f32.mrb[17].mxu1  ;;  %v4350_v42 = vpop.f32.mrb[18].mxu0  ;;  %4651 = vmatpush1.bf16.msra.mxu0 %v5411_v61  ;;  %v5446_v56 = vcombine.high %v1506_v59, %v1510_v4  ;;  %v1513_v55 = vld [vmem:[#allocation15 + $0xe90] sm:$0xff]  ;;  %v1526_v19 = vld [vmem:[#allocation15 + $0xef8] sm:$0xff] }
 0x385   :  { %v4845_v44 = vmax.f32 %v5507_v12, 0.0  ;;  %v5510_v5 = vadd.f32 %v4512_v24, %v1576_v3  ;;  %v4514_v6 = vpop.f32.mrb[18].mxu1  ;;  %4815 = vmatpush1.bf16.msra.mxu1 %v5413_v9  ;;  %v4351_v45 = vpop.f32.mrb[19].mxu0  ;;  %4652 = vmatprep.subr.bf16.mxu0 %v5420_v29  ;;  %v1517_v61 = vld [vmem:[#allocation15 + $0xeb0] sm:$0xff]  ;;  %v1514_v3 = vld [vmem:[#allocation15 + $0xe98] sm:$0xff]  ;;  %v5443_v29 = vcombine.low %v1505_v49, %v1509_v58 }
 0x386   :  { %v4847_v28 = vmax.f32 %v5509_v15, 0.0  ;;  %v4846_v57 = vmax.f32 %v5508_v23, 0.0  ;;  %v4515_v7 = vpop.f32.mrb[19].mxu1  ;;  %4816 = vmatprep.subr.bf16.mxu1 %v5422_v25  ;;  %v1518_v9 = vld [vmem:[#allocation15 + $0xeb8] sm:$0xff]  ;;  %v5452_v25 = vcombine.high %v1513_v55, %v1517_v61  ;;  %v1525_v12 = vld [vmem:[#allocation15 + $0xef0] sm:$0xff]  ;;  %v5451_v20 = vcombine.low %v1513_v55, %v1517_v61 }
 0x387   :  { %v4896_v18 = vmul.f32 %v4859_v60, %v4845_v44  ;;  %v4848_v33 = vmax.f32 %v5510_v5, 0.0  ;;  %v5454_v30 = vcombine.high %v1514_v3, %v1518_v9  ;;  %v1522_v60 = vld [vmem:[#allocation15 + $0xed8] sm:$0xff]  ;;  %v5453_v43 = vcombine.low %v1514_v3, %v1518_v9  ;;  %v1529_v23 = vld [vmem:[#allocation15 + $0xf10] sm:$0xff] }
 0x388   :  { %v4897_v10 = vmul.f32 %v4863_v34, %v4846_v57  ;;  %4653 = vmatpush1.bf16.msra.mxu0 %v5419_v26  ;;  %v4898_v47 = vmul.f32 %v4867_v8, %v4847_v28  ;;  %v5460_v32 = vcombine.high %v1521_v31, %v1525_v12  ;;  %v5462_v15 = vcombine.high %v1522_v60, %v1526_v19  ;;  %v1533_v34 = vld [vmem:[#allocation15 + $0xf30] sm:$0xff]  ;;  %v1530_v24 = vld [vmem:[#allocation15 + $0xf18] sm:$0xff] }
 0x389   :  { %4817 = vmatpush1.bf16.msra.mxu1 %v5421_v13  ;;  %4654 = vmatprep.subr.bf16.mxu0 %v5428_v27  ;;  %v4899_v53 = vmul.f32 %v4871_v35, %v4848_v33  ;;  %v1534_v42 = vld [vmem:[#allocation15 + $0xf38] sm:$0xff]  ;;  %v5459_v26 = vcombine.low %v1521_v31, %v1525_v12  ;;  %v5461_v44 = vcombine.low %v1522_v60, %v1526_v19  ;;  %v1537_v45 = vld [vmem:[#allocation15 + $0xf50] sm:$0xff] }
 0x38a   :  { %v4904_v48 = vadd.f32 %v4897_v10, %v4896_v18  ;;  %4818 = vmatprep.subr.bf16.mxu1 %v5430_v16  ;;  %v5468_v5 = vcombine.high %v1529_v23, %v1533_v34  ;;  %v5470_v6 = vcombine.high %v1530_v24, %v1534_v42  ;;  %v1541_v13 = vld [vmem:[#allocation15 + $0xf70] sm:$0xff]  ;;  %v1538_v27 = vld [vmem:[#allocation15 + $0xf58] sm:$0xff]  ;;  %v5467_v8 = vcombine.low %v1529_v23, %v1533_v34 }
 0x38b   :  { %v1542_v28 = vld [vmem:[#allocation15 + $0xf78] sm:$0xff]  ;;  %v5469_v57 = vcombine.low %v1530_v24, %v1534_v42  ;;  %v5476_v7 = vcombine.high %v1537_v45, %v1541_v13  ;;  %v1549_v1 = vld [vmem:[#allocation15 + $0xfb0] sm:$0xff]  ;;  %v5475_v22 = vcombine.low %v1537_v45, %v1541_v13 }
 0x38c   :  { %v4905_v62 = vadd.f32 %v4904_v48, %v4898_v47  ;;  %4655 = vmatpush1.bf16.msra.mxu0 %v5427_v38  ;;  %v5478_v16 = vcombine.high %v1538_v27, %v1542_v28  ;;  %v1546_v18 = vld [vmem:[#allocation15 + $0xf98] sm:$0xff]  ;;  %v5477_v10 = vcombine.low %v1538_v27, %v1542_v28  ;;  %v5484_v33 = vcombine.high %v1545_v21, %v1549_v1  ;;  %v1553_v38 = vld [vmem:[#allocation15 + $0xfd0] sm:$0xff] }
 0x38d   :  { %4819 = vmatpush1.bf16.msra.mxu1 %v5429_v46  ;;  %4656 = vmatprep.subr.bf16.mxu0 %v5436_v14  ;;  %v5486_v35 = vcombine.high %v1546_v18, %v1550_v0  ;;  %v1557_v46 = vld [vmem:[#allocation15 + $0xff0] sm:$0xff]  ;;  %v1554_v14 = vld [vmem:[#allocation15 + $0xfd8] sm:$0xff]  ;;  %v5483_v48 = vcombine.low %v1545_v21, %v1549_v1 }
 0x38e   :  { %v6329_v51 = vadd.f32 %v4905_v62, %v4899_v53  ;;  %4820 = vmatprep.subr.bf16.mxu1 %v5438_v50  ;;  %v1558_v47 = vld [vmem:[#allocation15 + $0xff8] sm:$0xff]  ;;  %v5485_v50 = vcombine.low %v1546_v18, %v1550_v0  ;;  %v5492_v49 = vcombine.high %v1553_v38, %v1557_v46  ;;  %v5491_v59 = vcombine.low %v1553_v38, %v1557_v46 }
 0x38f   :  { %v5494_v58 = vcombine.high %v1554_v14, %v1558_v47  ;;  %v5493_v4 = vcombine.low %v1554_v14, %v1558_v47  ;;  %v5856_v53 = vmov 0.0   ;;  %v1580_v62 = vrot.slane %v6309_v54, %v6111_v36 }
 0x390   :  { %4657 = vmatpush1.bf16.msra.mxu0 %v5435_v63  ;;  %1042 = vst.msk [vmem:[#allocation3] sm:$0xff] %vm1041_vm3, %v5856_v53  ;;  %v1588_v63 = vrot.slane %v6309_v54, %v6114_v37 }
 0x391   :  { %4821 = vmatpush1.bf16.msra.mxu1 %v5437_v17  ;;  %4658 = vmatprep.subr.bf16.mxu0 %v5444_v2  ;;  %v1584_v17 = vrot.slane %v6309_v54, %v6117_v40  ;;  %v1592_v2 = vrot.slane %v6309_v54, %v6120_v41 }
 0x392   :  { %4822 = vmatprep.subr.bf16.mxu1 %v5446_v56 }
 0x394   :  { %4659 = vmatpush1.bf16.msra.mxu0 %v5443_v29 }
 0x395   :  { %4823 = vmatpush1.bf16.msra.mxu1 %v5445_v11  ;;  %4660 = vmatprep.subr.bf16.mxu0 %v5452_v25  ;;  %v4879_v11 = vrot.slane %v6313_v52, %v6117_v40  ;;  %v4887_v40 = vrot.slane %v6313_v52, %v6120_v41 }
 0x396   :  { %4824 = vmatprep.subr.bf16.mxu1 %v5454_v30 }
 0x398   :  { %4661 = vmatpush1.bf16.msra.mxu0 %v5451_v20 }
 0x399   :  { %4825 = vmatpush1.bf16.msra.mxu1 %v5453_v43  ;;  %4662 = vmatprep.subr.bf16.mxu0 %v5460_v32 }
 0x39a   :  { %4826 = vmatprep.subr.bf16.mxu1 %v5462_v15 }
 0x39c   :  { %4663 = vmatpush1.bf16.msra.mxu0 %v5459_v26 }
 0x39d   :  { %4827 = vmatpush1.bf16.msra.mxu1 %v5461_v44  ;;  %4664 = vmatprep.subr.bf16.mxu0 %v5468_v5 }
 0x39e   :  { %4828 = vmatprep.subr.bf16.mxu1 %v5470_v6  ;;  %v4853_v6 = vld [vmem:[#allocation3] sm:$0xff] }
 0x3a0   :  { %4665 = vmatpush1.bf16.msra.mxu0 %v5467_v8 }
 0x3a1   :  { %4829 = vmatpush1.bf16.msra.mxu1 %v5469_v57  ;;  %4666 = vmatprep.subr.bf16.mxu0 %v5476_v7 }
 0x3a2   :  { %4830 = vmatprep.subr.bf16.mxu1 %v5478_v16 }
 0x3a4   :  { %4667 = vmatpush1.bf16.msra.mxu0 %v5475_v22 }
 0x3a5   :  { %4831 = vmatpush1.bf16.msra.mxu1 %v5477_v10  ;;  %4668 = vmatprep.subr.bf16.mxu0 %v5484_v33 }
 0x3a6   :  { %4832 = vmatprep.subr.bf16.mxu1 %v5486_v35 }
 0x3a8   :  { %4669 = vmatpush1.bf16.msra.mxu0 %v5483_v48 }
 0x3a9   :  { %4833 = vmatpush1.bf16.msra.mxu1 %v5485_v50  ;;  %4670 = vmatprep.subr.bf16.mxu0 %v5492_v49 }
 0x3aa   :  { %4834 = vmatprep.subr.bf16.mxu1 %v5494_v58 }
 0x3ac   :  { %4671 = vmatpush1.bf16.msra.mxu0 %v5491_v59 }
 0x3ad   :  { %4835 = vmatpush1.bf16.msra.mxu1 %v5493_v4 }
 0x3af   :  { %4673 = vmatmul.mubr.bf16.vlgmr.msra.gmra.mrb[20].mxu0 %v6291_v39 }
 0x3b0   :  { %4837 = vmatmul.mubr.bf16.vlgmr.msra.gmra.mrb[20].mxu1 %v6291_v39  ;;  %v4875_v39 = vrot.slane %v6313_v52, %v6111_v36  ;;  %v4883_v36 = vrot.slane %v6313_v52, %v6114_v37 }
 0x482   :  { %v4674_v56 = vpop.f32.mrb[20].mxu0 }
 0x483   :  { %v5511_v55 = vadd.f32 %v4674_v56, %v1580_v62  ;;  %v4838_v61 = vpop.f32.mrb[20].mxu1  ;;  %v4676_v3 = vpop.f32.mrb[21].mxu0 }
 0x484   :  { %v5513_v9 = vadd.f32 %v4838_v61, %v1588_v63  ;;  %v5512_v29 = vadd.f32 %v4676_v3, %v1584_v17  ;;  %v4840_v25 = vpop.f32.mrb[21].mxu1  ;;  %v4678_v30 = vpop.f32.mrb[22].mxu0 }
 0x485   :  { %v4849_v31 = vmax.f32 %v5511_v55, 0.0  ;;  %v5514_v12 = vadd.f32 %v4840_v25, %v1592_v2  ;;  %v4842_v60 = vpop.f32.mrb[22].mxu1  ;;  %v4679_v19 = vpop.f32.mrb[23].mxu0 }
 0x486   :  { %v4850_v20 = vmax.f32 %v5512_v29, 0.0  ;;  %v4843_v54 = vpop.f32.mrb[23].mxu1  ;;  %v4851_v32 = vmax.f32 %v5513_v9, 0.0 }
 0x487   :  { %v4900_v43 = vmul.f32 %v4875_v39, %v4849_v31  ;;  %v4852_v34 = vmax.f32 %v5514_v12, 0.0 }
 0x488   :  { %v4901_v15 = vmul.f32 %v4879_v11, %v4850_v20  ;;  %v4902_v24 = vmul.f32 %v4883_v36, %v4851_v32 }
 0x489   :  { %v4907_v23 = vadd.f32 %v6329_v51, %v4900_v43  ;;  %v4903_v26 = vmul.f32 %v4887_v40, %v4852_v34 }
 0x48b   :  { %v4908_v42 = vadd.f32 %v4907_v23, %v4901_v15 }
 0x48d   :  { %v4909_v44 = vadd.f32 %v4908_v42, %v4902_v24 }
 0x48f   :  { %v4910_v5 = vadd.f32 %v4909_v44, %v4903_v26 }
 0x491   :  { %4911 = vadd.xlane.f32.xlu0 %v4910_v5 }
 0x51e   :  { %v4912_v45 = vpop.xlane.xlu0 %4911 }
 0x51f   :  { %v4913_v13 = vadd.f32 %v4912_v45, %v4853_v6 }
 0x521   :  { %4915 = vst.msk [vmem:[#allocation3] sm:$0xff] %vm1041_vm3, %v4913_v13 }
 0x528   :  { %v4919_v27 = vld [vmem:[#allocation3] sm:$0xff] }
 0x529   :  { %4920 = vst.msk [vmem:[%s6366_s10] sm:$0xff] %vm1041_vm3, %v4919_v27 }
 0x52a   :  { %4925 = vsyncpa [#allocation5], 1 }
 0x52b   :  { %4926 = vsyncpa [#allocation7], 1 }
 0x52c   :  { %4927 = vsyncpa [#allocation10], 1 }
 0x52d   :  { %4928 = vsyncpa [#allocation13], 1 }
 0x52e   :  { %4929 = vsyncpa [#allocation16], 1 }
 0x52f   :  { %4930 = vsyncpa [#allocation19], 1 }

</bundles_post_ra>
